<compile_context>
chip_gen: v6e
topology: v6e:2x2x1
jax: 0.10.0
libtpu: 0.0.40
codegen_flags: <defaults>
</compile_context>

<pallas_src>
import jax
import jax.numpy as jnp
from jax.experimental import pallas as pl
from jax.experimental.pallas import tpu as pltpu

QMIN, QMAX = 0.0, 255.0  # torch default activation quantization range (quint8)


# ----------------------------------------------------------------------------
# One fused kernel invocation per batch element (grid over N):
#   fake-quant -> conv3x3(+folded BN)+ReLU -> conv3x3(+folded BN)
#   -> + identity (fake-quanted input) -> ReLU.   DeQuantStub = identity.
# ----------------------------------------------------------------------------
def _fused_basic_block_kernel(x_ref, w1_ref, b1_ref, w2_ref, b2_ref,
                              scale_ref, zp_ref, o_ref,
                              xpad_ref, ypad_ref, patch_ref):
    _, H, W, Cin = x_ref.shape
    Cout = o_ref.shape[3]

    scale = scale_ref[0, 0]
    zp = zp_ref[0, 0]

    # --- QuantStub: per-tensor affine fake quantization (quint8 range) ------
    x = x_ref[0]                                              # (H, W, Cin) f32
    q = jnp.clip(jnp.round(x / scale) + zp, QMIN, QMAX)
    xq = (q - zp) * scale                                     # also the identity

    # --- zero-padded input tile in VMEM scratch (SAME halo handled in-kernel)
    xpad_ref[...] = jnp.zeros_like(xpad_ref)
    xpad_ref[1:H + 1, 1:W + 1, :] = xq

    def im2col(src_ref, cin):
        # Build the (H*W, 9*cin) patch matrix once in VMEM scratch, then issue
        # one MXU matmul with a 9x deeper contraction than per-tap dots.
        for kh in range(3):
            for kw in range(3):
                col = kh * 3 + kw
                patch_ref[:, col * cin:(col + 1) * cin] = (
                    src_ref[kh:kh + H, kw:kw + W, :].reshape(H * W, cin))
        return patch_ref[...]

    # --- conv1 (3x3, BN folded) + bias + ReLU --------------------------------
    y1 = jnp.dot(im2col(xpad_ref, Cin), w1_ref[...],
                 preferred_element_type=jnp.float32)          # (H*W, Cout)
    y1 = jnp.maximum(y1 + b1_ref[...], 0.0)

    # --- pad conv1 output for conv2 (never leaves VMEM) ----------------------
    ypad_ref[...] = jnp.zeros_like(ypad_ref)
    ypad_ref[1:H + 1, 1:W + 1, :] = y1.reshape(H, W, Cout)

    # --- conv2 (3x3, BN folded) + bias + residual + ReLU ----------------------
    y2 = jnp.dot(im2col(ypad_ref, Cout), w2_ref[...],
                 preferred_element_type=jnp.float32)          # (H*W, Cout)
    y2 = jnp.maximum(y2 + b2_ref[...] + xq.reshape(H * W, Cin), 0.0)

    # DeQuantStub is the identity in this fp32 simulation.
    o_ref[...] = y2.reshape(1, H, W, Cout).astype(o_ref.dtype)


def fused_basic_block_nhwc(x_nhwc, w1, b1, w2, b2, scale, zero_point):
    N, H, W, Cin = x_nhwc.shape
    Cout = w1.shape[-1]
    assert Cin == Cout, "BasicBlock identity residual requires Cin == Cout"

    # im2col weight layout: (3,3,Cin,Cout) -> (9*Cin, Cout). BN already folded.
    w1_r = w1.reshape(9 * Cin, Cout).astype(jnp.float32)
    w2_r = w2.reshape(9 * Cout, Cout).astype(jnp.float32)
    b1_r = b1.reshape(1, Cout).astype(jnp.float32)
    b2_r = b2.reshape(1, Cout).astype(jnp.float32)
    scale_arr = jnp.asarray(scale, jnp.float32).reshape(1, 1)
    zp_arr = jnp.asarray(zero_point, jnp.float32).reshape(1, 1)

    flops = 2 * (2 * N * H * W * 9 * Cin * Cout)              # two 3x3 convs
    bytes_accessed = 4 * (N * H * W * Cin + N * H * W * Cout
                          + w1_r.size + w2_r.size + 2 * Cout)
    cost = pl.CostEstimate(flops=flops, transcendentals=0,
                           bytes_accessed=bytes_accessed)

    return pl.pallas_call(
        _fused_basic_block_kernel,
        out_shape=jax.ShapeDtypeStruct((N, H, W, Cout), x_nhwc.dtype),
        grid=(N,),
        in_specs=[
            pl.BlockSpec((1, H, W, Cin), lambda n: (n, 0, 0, 0)),   # x tile
            pl.BlockSpec((9 * Cin, Cout), lambda n: (0, 0)),        # w1 (resident)
            pl.BlockSpec((1, Cout), lambda n: (0, 0)),              # b1
            pl.BlockSpec((9 * Cout, Cout), lambda n: (0, 0)),       # w2 (resident)
            pl.BlockSpec((1, Cout), lambda n: (0, 0)),              # b2
            pl.BlockSpec((1, 1), lambda n: (0, 0),
                         memory_space=pltpu.MemorySpace.SMEM),      # scale
            pl.BlockSpec((1, 1), lambda n: (0, 0),
                         memory_space=pltpu.MemorySpace.SMEM),      # zero point
        ],
        out_specs=pl.BlockSpec((1, H, W, Cout), lambda n: (n, 0, 0, 0)),
        scratch_shapes=[
            pltpu.VMEM((H + 2, W + 2, Cin), jnp.float32),    # padded fake-q x
            pltpu.VMEM((H + 2, W + 2, Cout), jnp.float32),   # padded conv1 out
            pltpu.VMEM((H * W, 9 * Cin), jnp.float32),       # im2col patches
        ],
        compiler_params=pltpu.CompilerParams(
            dimension_semantics=("parallel",),
            vmem_limit_bytes=32 * 1024 * 1024,   # fits v5e/v6e and v7x budgets
        ),
        cost_estimate=cost,
    )(x_nhwc, w1_r, b1_r, w2_r, b2_r, scale_arr, zp_arr)


# ----------------------------------------------------------------------------
# Glue: BN folding, parameter init, full forward
# ----------------------------------------------------------------------------
def fold_bn(w, gamma, beta, mean, var, eps=1e-5):
    inv = gamma / jnp.sqrt(var + eps)
    return w * inv[None, None, None, :], beta - mean * inv


def init_params(key, channels):
    ks = jax.random.split(key, 8)
    shape_w = (3, 3, channels, channels)  # HWIO
    return dict(
        act_scale=jnp.float32(0.05),
        act_zero_point=jnp.float32(128.0),
        w1=jax.random.normal(ks[0], shape_w, jnp.float32) * 0.2,
        gamma1=1.0 + 0.1 * jax.random.normal(ks[1], (channels,), jnp.float32),
        beta1=0.1 * jax.random.normal(ks[2], (channels,), jnp.float32),
        mean1=0.1 * jax.random.normal(ks[3], (channels,), jnp.float32),
        var1=1.0 + 0.1 * jax.random.uniform(ks[4], (channels,), jnp.float32),
        w2=jax.random.normal(ks[5], shape_w, jnp.float32) * 0.2,
        gamma2=1.0 + 0.1 * jax.random.normal(ks[6], (channels,), jnp.float32),
        beta2=0.1 * jax.random.normal(ks[7], (channels,), jnp.float32),
        mean2=jnp.zeros((channels,), jnp.float32),
        var2=jnp.ones((channels,), jnp.float32),
    )


def _forward_nhwc(x_nhwc, params):
    w1, b1 = fold_bn(params["w1"], params["gamma1"], params["beta1"],
                     params["mean1"], params["var1"])
    w2, b2 = fold_bn(params["w2"], params["gamma2"], params["beta2"],
                     params["mean2"], params["var2"])
    return fused_basic_block_nhwc(x_nhwc, w1, b1, w2, b2,
                                  params["act_scale"], params["act_zero_point"])


@jax.jit
def quantized_resnet_forward_nhwc(x_nhwc, params):
    """Preferred entry point (NHWC in/out): no HBM transpose passes."""
    return _forward_nhwc(x_nhwc, params)


@jax.jit
def quantized_resnet_forward(x_nchw, params):
    """PyTorch-layout (NCHW) wrapper for parity with the nn.Module."""
    x = jnp.transpose(x_nchw, (0, 2, 3, 1))   # NCHW -> NHWC
    y = _forward_nhwc(x, params)
    return jnp.transpose(y, (0, 3, 1, 2))     # NHWC -> NCHW


# ----------------------------------------------------------------------------
# Pure-JAX reference for a correctness check
# ----------------------------------------------------------------------------
def reference_forward(x_nchw, params):
    x = jnp.transpose(x_nchw, (0, 2, 3, 1))
    s, zp = params["act_scale"], params["act_zero_point"]
    x = (jnp.clip(jnp.round(x / s) + zp, QMIN, QMAX) - zp) * s
    identity = x

    def conv(x, w, b):
        y = jax.lax.conv_general_dilated(
            x, w, (1, 1), "SAME", dimension_numbers=("NHWC", "HWIO", "NHWC"))
        return y + b[None, None, None, :]

    w1, b1 = fold_bn(params["w1"], params["gamma1"], params["beta1"],
                     params["mean1"], params["var1"])
    w2, b2 = fold_bn(params["w2"], params["gamma2"], params["beta2"],
                     params["mean2"], params["var2"])
    y = jnp.maximum(conv(x, w1, b1), 0.0)
    y = jnp.maximum(conv(y, w2, b2) + identity, 0.0)
    return jnp.transpose(y, (0, 3, 1, 2))


if __name__ == "__main__":
    key = jax.random.PRNGKey(0)
    k_x, k_p = jax.random.split(key)
    N, C, H, W = 2, 4, 16, 16
    x = jax.random.normal(k_x, (N, C, H, W), jnp.float32)  # PyTorch NCHW input
    params = init_params(k_p, C)

    out = jax.block_until_ready(quantized_resnet_forward(x, params))
    ref = reference_forward(x, params)

    assert out.shape == (N, C, H, W)
    assert jnp.allclose(out, ref, atol=1e-3, rtol=1e-3), "mismatch vs reference"
    print("KERNEL_OK")
</pallas_src>

<mosaic_0001>
module attributes {stable_mosaic.version = 11 : i64} {
  func.func @_fused_basic_block_kernel(%arg0: i32, %arg1: memref<1x16x16x4xf32, #tpu.memory_space<vmem>>, %arg2: memref<36x4xf32, #tpu.memory_space<vmem>>, %arg3: memref<1x4xf32, #tpu.memory_space<vmem>>, %arg4: memref<36x4xf32, #tpu.memory_space<vmem>>, %arg5: memref<1x4xf32, #tpu.memory_space<vmem>>, %arg6: memref<1x1xf32, #tpu.memory_space<smem>>, %arg7: memref<1x1xf32, #tpu.memory_space<smem>>, %arg8: memref<1x16x16x4xf32, #tpu.memory_space<vmem>>, %arg9: memref<18x18x4xf32, #tpu.memory_space<vmem>>, %arg10: memref<18x18x4xf32, #tpu.memory_space<vmem>>, %arg11: memref<256x36xf32, #tpu.memory_space<vmem>>) attributes {dimension_semantics = [#tpu.dimension_semantics<parallel>], iteration_bounds = array<i64: 2>, scalar_prefetch = 0 : i64, scratch_operands = 3 : i64, tpu.core_type = #tpu.core_type<tc>, window_params = [{transform_indices = @transform_0, window_bounds = array<i64: 1, 16, 16, 4>}, {pipeline_mode = #tpu.pipeline_mode<synchronous>, transform_indices = @transform_1, window_bounds = array<i64: 36, 4>}, {pipeline_mode = #tpu.pipeline_mode<synchronous>, transform_indices = @transform_2, window_bounds = array<i64: 1, 4>}, {pipeline_mode = #tpu.pipeline_mode<synchronous>, transform_indices = @transform_3, window_bounds = array<i64: 36, 4>}, {pipeline_mode = #tpu.pipeline_mode<synchronous>, transform_indices = @transform_4, window_bounds = array<i64: 1, 4>}, {transform_indices = @transform_5, window_bounds = array<i64: 1, 1>}, {transform_indices = @transform_6, window_bounds = array<i64: 1, 1>}, {transform_indices = @transform_7, window_bounds = array<i64: 1, 16, 16, 4>}]} {
    %c0 = arith.constant 0 : index
    %c0_0 = arith.constant 0 : index
    %0 = memref.load %arg6[%c0, %c0_0] : memref<1x1xf32, #tpu.memory_space<smem>>
    %c0_1 = arith.constant 0 : index
    %c0_2 = arith.constant 0 : index
    %1 = memref.load %arg7[%c0_1, %c0_2] : memref<1x1xf32, #tpu.memory_space<smem>>
    %c0_3 = arith.constant 0 : index
    %c0_4 = arith.constant 0 : index
    %c0_5 = arith.constant 0 : index
    %c0_6 = arith.constant 0 : index
    %2 = vector.load %arg1[%c0_3, %c0_4, %c0_5, %c0_6] : memref<1x16x16x4xf32, #tpu.memory_space<vmem>>, vector<1x16x16x4xf32>
    %3 = vector.shape_cast %2 : vector<1x16x16x4xf32> to vector<16x16x4xf32>
    %4 = vector.broadcast %0 : f32 to vector<16x16x4xf32>
    %5 = arith.divf %3, %4 : vector<16x16x4xf32>
    %6 = math.roundeven %5 : vector<16x16x4xf32>
    %7 = vector.broadcast %1 : f32 to vector<16x16x4xf32>
    %8 = arith.addf %6, %7 : vector<16x16x4xf32>
    %cst = arith.constant 0.000000e+00 : f32
    %cst_7 = arith.constant 2.550000e+02 : f32
    %9 = vector.broadcast %cst : f32 to vector<16x16x4xf32>
    %10 = arith.maximumf %9, %8 : vector<16x16x4xf32>
    %11 = vector.broadcast %cst_7 : f32 to vector<16x16x4xf32>
    %12 = arith.minimumf %11, %10 : vector<16x16x4xf32>
    %13 = vector.broadcast %1 : f32 to vector<16x16x4xf32>
    %14 = arith.subf %12, %13 : vector<16x16x4xf32>
    %15 = vector.broadcast %0 : f32 to vector<16x16x4xf32>
    %16 = arith.mulf %14, %15 : vector<16x16x4xf32>
    %cst_8 = arith.constant 0.000000e+00 : f32
    %17 = vector.broadcast %cst_8 : f32 to vector<18x18x4xf32>
    %c0_9 = arith.constant 0 : index
    %c0_10 = arith.constant 0 : index
    %c0_11 = arith.constant 0 : index
    %18 = vector.load %arg9[%c0_9, %c0_10, %c0_11] : memref<18x18x4xf32, #tpu.memory_space<vmem>>, vector<18x18x4xf32>
    tpu.vector_store %arg9[%c0_9, %c0_10, %c0_11], %17 {strides = array<i32>} : memref<18x18x4xf32, #tpu.memory_space<vmem>>, vector<18x18x4xf32>,
    %c1 = arith.constant 1 : index
    %c1_12 = arith.constant 1 : index
    %c0_13 = arith.constant 0 : index
    %19 = vector.load %arg9[%c1, %c1_12, %c0_13] : memref<18x18x4xf32, #tpu.memory_space<vmem>>, vector<16x16x4xf32>
    tpu.vector_store %arg9[%c1, %c1_12, %c0_13], %16 {strides = array<i32>} : memref<18x18x4xf32, #tpu.memory_space<vmem>>, vector<16x16x4xf32>,
    %c0_14 = arith.constant 0 : index
    %c0_15 = arith.constant 0 : index
    %c0_16 = arith.constant 0 : index
    %20 = vector.load %arg9[%c0_14, %c0_15, %c0_16] : memref<18x18x4xf32, #tpu.memory_space<vmem>>, vector<16x16x4xf32>
    %21 = vector.shape_cast %20 : vector<16x16x4xf32> to vector<256x4xf32>
    %c0_17 = arith.constant 0 : index
    %c0_18 = arith.constant 0 : index
    %22 = vector.load %arg11[%c0_17, %c0_18] : memref<256x36xf32, #tpu.memory_space<vmem>>, vector<256x4xf32>
    tpu.vector_store %arg11[%c0_17, %c0_18], %21 {strides = array<i32>} : memref<256x36xf32, #tpu.memory_space<vmem>>, vector<256x4xf32>,
    %c0_19 = arith.constant 0 : index
    %c1_20 = arith.constant 1 : index
    %c0_21 = arith.constant 0 : index
    %23 = vector.load %arg9[%c0_19, %c1_20, %c0_21] : memref<18x18x4xf32, #tpu.memory_space<vmem>>, vector<16x16x4xf32>
    %24 = vector.shape_cast %23 : vector<16x16x4xf32> to vector<256x4xf32>
    %c0_22 = arith.constant 0 : index
    %c4 = arith.constant 4 : index
    %25 = vector.load %arg11[%c0_22, %c4] : memref<256x36xf32, #tpu.memory_space<vmem>>, vector<256x4xf32>
    tpu.vector_store %arg11[%c0_22, %c4], %24 {strides = array<i32>} : memref<256x36xf32, #tpu.memory_space<vmem>>, vector<256x4xf32>,
    %c0_23 = arith.constant 0 : index
    %c2 = arith.constant 2 : index
    %c0_24 = arith.constant 0 : index
    %26 = vector.load %arg9[%c0_23, %c2, %c0_24] : memref<18x18x4xf32, #tpu.memory_space<vmem>>, vector<16x16x4xf32>
    %27 = vector.shape_cast %26 : vector<16x16x4xf32> to vector<256x4xf32>
    %c0_25 = arith.constant 0 : index
    %c8 = arith.constant 8 : index
    %28 = vector.load %arg11[%c0_25, %c8] : memref<256x36xf32, #tpu.memory_space<vmem>>, vector<256x4xf32>
    tpu.vector_store %arg11[%c0_25, %c8], %27 {strides = array<i32>} : memref<256x36xf32, #tpu.memory_space<vmem>>, vector<256x4xf32>,
    %c1_26 = arith.constant 1 : index
    %c0_27 = arith.constant 0 : index
    %c0_28 = arith.constant 0 : index
    %29 = vector.load %arg9[%c1_26, %c0_27, %c0_28] : memref<18x18x4xf32, #tpu.memory_space<vmem>>, vector<16x16x4xf32>
    %30 = vector.shape_cast %29 : vector<16x16x4xf32> to vector<256x4xf32>
    %c0_29 = arith.constant 0 : index
    %c12 = arith.constant 12 : index
    %31 = vector.load %arg11[%c0_29, %c12] : memref<256x36xf32, #tpu.memory_space<vmem>>, vector<256x4xf32>
    tpu.vector_store %arg11[%c0_29, %c12], %30 {strides = array<i32>} : memref<256x36xf32, #tpu.memory_space<vmem>>, vector<256x4xf32>,
    %c1_30 = arith.constant 1 : index
    %c1_31 = arith.constant 1 : index
    %c0_32 = arith.constant 0 : index
    %32 = vector.load %arg9[%c1_30, %c1_31, %c0_32] : memref<18x18x4xf32, #tpu.memory_space<vmem>>, vector<16x16x4xf32>
    %33 = vector.shape_cast %32 : vector<16x16x4xf32> to vector<256x4xf32>
    %c0_33 = arith.constant 0 : index
    %c16 = arith.constant 16 : index
    %34 = vector.load %arg11[%c0_33, %c16] : memref<256x36xf32, #tpu.memory_space<vmem>>, vector<256x4xf32>
    tpu.vector_store %arg11[%c0_33, %c16], %33 {strides = array<i32>} : memref<256x36xf32, #tpu.memory_space<vmem>>, vector<256x4xf32>,
    %c1_34 = arith.constant 1 : index
    %c2_35 = arith.constant 2 : index
    %c0_36 = arith.constant 0 : index
    %35 = vector.load %arg9[%c1_34, %c2_35, %c0_36] : memref<18x18x4xf32, #tpu.memory_space<vmem>>, vector<16x16x4xf32>
    %36 = vector.shape_cast %35 : vector<16x16x4xf32> to vector<256x4xf32>
    %c0_37 = arith.constant 0 : index
    %c20 = arith.constant 20 : index
    %37 = vector.load %arg11[%c0_37, %c20] : memref<256x36xf32, #tpu.memory_space<vmem>>, vector<256x4xf32>
    tpu.vector_store %arg11[%c0_37, %c20], %36 {strides = array<i32>} : memref<256x36xf32, #tpu.memory_space<vmem>>, vector<256x4xf32>,
    %c2_38 = arith.constant 2 : index
    %c0_39 = arith.constant 0 : index
    %c0_40 = arith.constant 0 : index
    %38 = vector.load %arg9[%c2_38, %c0_39, %c0_40] : memref<18x18x4xf32, #tpu.memory_space<vmem>>, vector<16x16x4xf32>
    %39 = vector.shape_cast %38 : vector<16x16x4xf32> to vector<256x4xf32>
    %c0_41 = arith.constant 0 : index
    %c24 = arith.constant 24 : index
    %40 = vector.load %arg11[%c0_41, %c24] : memref<256x36xf32, #tpu.memory_space<vmem>>, vector<256x4xf32>
    tpu.vector_store %arg11[%c0_41, %c24], %39 {strides = array<i32>} : memref<256x36xf32, #tpu.memory_space<vmem>>, vector<256x4xf32>,
    %c2_42 = arith.constant 2 : index
    %c1_43 = arith.constant 1 : index
    %c0_44 = arith.constant 0 : index
    %41 = vector.load %arg9[%c2_42, %c1_43, %c0_44] : memref<18x18x4xf32, #tpu.memory_space<vmem>>, vector<16x16x4xf32>
    %42 = vector.shape_cast %41 : vector<16x16x4xf32> to vector<256x4xf32>
    %c0_45 = arith.constant 0 : index
    %c28 = arith.constant 28 : index
    %43 = vector.load %arg11[%c0_45, %c28] : memref<256x36xf32, #tpu.memory_space<vmem>>, vector<256x4xf32>
    tpu.vector_store %arg11[%c0_45, %c28], %42 {strides = array<i32>} : memref<256x36xf32, #tpu.memory_space<vmem>>, vector<256x4xf32>,
    %c2_46 = arith.constant 2 : index
    %c2_47 = arith.constant 2 : index
    %c0_48 = arith.constant 0 : index
    %44 = vector.load %arg9[%c2_46, %c2_47, %c0_48] : memref<18x18x4xf32, #tpu.memory_space<vmem>>, vector<16x16x4xf32>
    %45 = vector.shape_cast %44 : vector<16x16x4xf32> to vector<256x4xf32>
    %c0_49 = arith.constant 0 : index
    %c32 = arith.constant 32 : index
    %46 = vector.load %arg11[%c0_49, %c32] : memref<256x36xf32, #tpu.memory_space<vmem>>, vector<256x4xf32>
    tpu.vector_store %arg11[%c0_49, %c32], %45 {strides = array<i32>} : memref<256x36xf32, #tpu.memory_space<vmem>>, vector<256x4xf32>,
    %c0_50 = arith.constant 0 : index
    %c0_51 = arith.constant 0 : index
    %47 = vector.load %arg11[%c0_50, %c0_51] : memref<256x36xf32, #tpu.memory_space<vmem>>, vector<256x36xf32>
    %c0_52 = arith.constant 0 : index
    %c0_53 = arith.constant 0 : index
    %48 = vector.load %arg2[%c0_52, %c0_53] : memref<36x4xf32, #tpu.memory_space<vmem>>, vector<36x4xf32>
    %cst_54 = arith.constant dense<0.000000e+00> : vector<256x4xf32>
    %49 = tpu.matmul %47, %48, %cst_54 {dimension_numbers = #tpu.dot_dimension_numbers<[1], [0], [0], [1], [0, 0, 1, 1], [], []>} : vector<256x36xf32>, vector<36x4xf32>, vector<256x4xf32> -> vector<256x4xf32>
    %c0_55 = arith.constant 0 : index
    %c0_56 = arith.constant 0 : index
    %50 = vector.load %arg3[%c0_55, %c0_56] : memref<1x4xf32, #tpu.memory_space<vmem>>, vector<1x4xf32>
    %51 = vector.broadcast %50 : vector<1x4xf32> to vector<256x4xf32>
    %52 = arith.addf %49, %51 : vector<256x4xf32>
    %cst_57 = arith.constant 0.000000e+00 : f32
    %53 = vector.broadcast %cst_57 : f32 to vector<256x4xf32>
    %54 = arith.maximumf %52, %53 : vector<256x4xf32>
    %cst_58 = arith.constant 0.000000e+00 : f32
    %55 = vector.broadcast %cst_58 : f32 to vector<18x18x4xf32>
    %c0_59 = arith.constant 0 : index
    %c0_60 = arith.constant 0 : index
    %c0_61 = arith.constant 0 : index
    %56 = vector.load %arg10[%c0_59, %c0_60, %c0_61] : memref<18x18x4xf32, #tpu.memory_space<vmem>>, vector<18x18x4xf32>
    tpu.vector_store %arg10[%c0_59, %c0_60, %c0_61], %55 {strides = array<i32>} : memref<18x18x4xf32, #tpu.memory_space<vmem>>, vector<18x18x4xf32>,
    %57 = vector.shape_cast %54 : vector<256x4xf32> to vector<16x16x4xf32>
    %c1_62 = arith.constant 1 : index
    %c1_63 = arith.constant 1 : index
    %c0_64 = arith.constant 0 : index
    %58 = vector.load %arg10[%c1_62, %c1_63, %c0_64] : memref<18x18x4xf32, #tpu.memory_space<vmem>>, vector<16x16x4xf32>
    tpu.vector_store %arg10[%c1_62, %c1_63, %c0_64], %57 {strides = array<i32>} : memref<18x18x4xf32, #tpu.memory_space<vmem>>, vector<16x16x4xf32>,
    %c0_65 = arith.constant 0 : index
    %c0_66 = arith.constant 0 : index
    %c0_67 = arith.constant 0 : index
    %59 = vector.load %arg10[%c0_65, %c0_66, %c0_67] : memref<18x18x4xf32, #tpu.memory_space<vmem>>, vector<16x16x4xf32>
    %60 = vector.shape_cast %59 : vector<16x16x4xf32> to vector<256x4xf32>
    %c0_68 = arith.constant 0 : index
    %c0_69 = arith.constant 0 : index
    %61 = vector.load %arg11[%c0_68, %c0_69] : memref<256x36xf32, #tpu.memory_space<vmem>>, vector<256x4xf32>
    tpu.vector_store %arg11[%c0_68, %c0_69], %60 {strides = array<i32>} : memref<256x36xf32, #tpu.memory_space<vmem>>, vector<256x4xf32>,
    %c0_70 = arith.constant 0 : index
    %c1_71 = arith.constant 1 : index
    %c0_72 = arith.constant 0 : index
    %62 = vector.load %arg10[%c0_70, %c1_71, %c0_72] : memref<18x18x4xf32, #tpu.memory_space<vmem>>, vector<16x16x4xf32>
    %63 = vector.shape_cast %62 : vector<16x16x4xf32> to vector<256x4xf32>
    %c0_73 = arith.constant 0 : index
    %c4_74 = arith.constant 4 : index
    %64 = vector.load %arg11[%c0_73, %c4_74] : memref<256x36xf32, #tpu.memory_space<vmem>>, vector<256x4xf32>
    tpu.vector_store %arg11[%c0_73, %c4_74], %63 {strides = array<i32>} : memref<256x36xf32, #tpu.memory_space<vmem>>, vector<256x4xf32>,
    %c0_75 = arith.constant 0 : index
    %c2_76 = arith.constant 2 : index
    %c0_77 = arith.constant 0 : index
    %65 = vector.load %arg10[%c0_75, %c2_76, %c0_77] : memref<18x18x4xf32, #tpu.memory_space<vmem>>, vector<16x16x4xf32>
    %66 = vector.shape_cast %65 : vector<16x16x4xf32> to vector<256x4xf32>
    %c0_78 = arith.constant 0 : index
    %c8_79 = arith.constant 8 : index
    %67 = vector.load %arg11[%c0_78, %c8_79] : memref<256x36xf32, #tpu.memory_space<vmem>>, vector<256x4xf32>
    tpu.vector_store %arg11[%c0_78, %c8_79], %66 {strides = array<i32>} : memref<256x36xf32, #tpu.memory_space<vmem>>, vector<256x4xf32>,
    %c1_80 = arith.constant 1 : index
    %c0_81 = arith.constant 0 : index
    %c0_82 = arith.constant 0 : index
    %68 = vector.load %arg10[%c1_80, %c0_81, %c0_82] : memref<18x18x4xf32, #tpu.memory_space<vmem>>, vector<16x16x4xf32>
    %69 = vector.shape_cast %68 : vector<16x16x4xf32> to vector<256x4xf32>
    %c0_83 = arith.constant 0 : index
    %c12_84 = arith.constant 12 : index
    %70 = vector.load %arg11[%c0_83, %c12_84] : memref<256x36xf32, #tpu.memory_space<vmem>>, vector<256x4xf32>
    tpu.vector_store %arg11[%c0_83, %c12_84], %69 {strides = array<i32>} : memref<256x36xf32, #tpu.memory_space<vmem>>, vector<256x4xf32>,
    %c1_85 = arith.constant 1 : index
    %c1_86 = arith.constant 1 : index
    %c0_87 = arith.constant 0 : index
    %71 = vector.load %arg10[%c1_85, %c1_86, %c0_87] : memref<18x18x4xf32, #tpu.memory_space<vmem>>, vector<16x16x4xf32>
    %72 = vector.shape_cast %71 : vector<16x16x4xf32> to vector<256x4xf32>
    %c0_88 = arith.constant 0 : index
    %c16_89 = arith.constant 16 : index
    %73 = vector.load %arg11[%c0_88, %c16_89] : memref<256x36xf32, #tpu.memory_space<vmem>>, vector<256x4xf32>
    tpu.vector_store %arg11[%c0_88, %c16_89], %72 {strides = array<i32>} : memref<256x36xf32, #tpu.memory_space<vmem>>, vector<256x4xf32>,
    %c1_90 = arith.constant 1 : index
    %c2_91 = arith.constant 2 : index
    %c0_92 = arith.constant 0 : index
    %74 = vector.load %arg10[%c1_90, %c2_91, %c0_92] : memref<18x18x4xf32, #tpu.memory_space<vmem>>, vector<16x16x4xf32>
    %75 = vector.shape_cast %74 : vector<16x16x4xf32> to vector<256x4xf32>
    %c0_93 = arith.constant 0 : index
    %c20_94 = arith.constant 20 : index
    %76 = vector.load %arg11[%c0_93, %c20_94] : memref<256x36xf32, #tpu.memory_space<vmem>>, vector<256x4xf32>
    tpu.vector_store %arg11[%c0_93, %c20_94], %75 {strides = array<i32>} : memref<256x36xf32, #tpu.memory_space<vmem>>, vector<256x4xf32>,
    %c2_95 = arith.constant 2 : index
    %c0_96 = arith.constant 0 : index
    %c0_97 = arith.constant 0 : index
    %77 = vector.load %arg10[%c2_95, %c0_96, %c0_97] : memref<18x18x4xf32, #tpu.memory_space<vmem>>, vector<16x16x4xf32>
    %78 = vector.shape_cast %77 : vector<16x16x4xf32> to vector<256x4xf32>
    %c0_98 = arith.constant 0 : index
    %c24_99 = arith.constant 24 : index
    %79 = vector.load %arg11[%c0_98, %c24_99] : memref<256x36xf32, #tpu.memory_space<vmem>>, vector<256x4xf32>
    tpu.vector_store %arg11[%c0_98, %c24_99], %78 {strides = array<i32>} : memref<256x36xf32, #tpu.memory_space<vmem>>, vector<256x4xf32>,
    %c2_100 = arith.constant 2 : index
    %c1_101 = arith.constant 1 : index
    %c0_102 = arith.constant 0 : index
    %80 = vector.load %arg10[%c2_100, %c1_101, %c0_102] : memref<18x18x4xf32, #tpu.memory_space<vmem>>, vector<16x16x4xf32>
    %81 = vector.shape_cast %80 : vector<16x16x4xf32> to vector<256x4xf32>
    %c0_103 = arith.constant 0 : index
    %c28_104 = arith.constant 28 : index
    %82 = vector.load %arg11[%c0_103, %c28_104] : memref<256x36xf32, #tpu.memory_space<vmem>>, vector<256x4xf32>
    tpu.vector_store %arg11[%c0_103, %c28_104], %81 {strides = array<i32>} : memref<256x36xf32, #tpu.memory_space<vmem>>, vector<256x4xf32>,
    %c2_105 = arith.constant 2 : index
    %c2_106 = arith.constant 2 : index
    %c0_107 = arith.constant 0 : index
    %83 = vector.load %arg10[%c2_105, %c2_106, %c0_107] : memref<18x18x4xf32, #tpu.memory_space<vmem>>, vector<16x16x4xf32>
    %84 = vector.shape_cast %83 : vector<16x16x4xf32> to vector<256x4xf32>
    %c0_108 = arith.constant 0 : index
    %c32_109 = arith.constant 32 : index
    %85 = vector.load %arg11[%c0_108, %c32_109] : memref<256x36xf32, #tpu.memory_space<vmem>>, vector<256x4xf32>
    tpu.vector_store %arg11[%c0_108, %c32_109], %84 {strides = array<i32>} : memref<256x36xf32, #tpu.memory_space<vmem>>, vector<256x4xf32>,
    %c0_110 = arith.constant 0 : index
    %c0_111 = arith.constant 0 : index
    %86 = vector.load %arg11[%c0_110, %c0_111] : memref<256x36xf32, #tpu.memory_space<vmem>>, vector<256x36xf32>
    %c0_112 = arith.constant 0 : index
    %c0_113 = arith.constant 0 : index
    %87 = vector.load %arg4[%c0_112, %c0_113] : memref<36x4xf32, #tpu.memory_space<vmem>>, vector<36x4xf32>
    %cst_114 = arith.constant dense<0.000000e+00> : vector<256x4xf32>
    %88 = tpu.matmul %86, %87, %cst_114 {dimension_numbers = #tpu.dot_dimension_numbers<[1], [0], [0], [1], [0, 0, 1, 1], [], []>} : vector<256x36xf32>, vector<36x4xf32>, vector<256x4xf32> -> vector<256x4xf32>
    %c0_115 = arith.constant 0 : index
    %c0_116 = arith.constant 0 : index
    %89 = vector.load %arg5[%c0_115, %c0_116] : memref<1x4xf32, #tpu.memory_space<vmem>>, vector<1x4xf32>
    %90 = vector.broadcast %89 : vector<1x4xf32> to vector<256x4xf32>
    %91 = arith.addf %88, %90 : vector<256x4xf32>
    %92 = vector.shape_cast %16 : vector<16x16x4xf32> to vector<256x4xf32>
    %93 = arith.addf %91, %92 : vector<256x4xf32>
    %cst_117 = arith.constant 0.000000e+00 : f32
    %94 = vector.broadcast %cst_117 : f32 to vector<256x4xf32>
    %95 = arith.maximumf %93, %94 : vector<256x4xf32>
    %96 = vector.shape_cast %95 : vector<256x4xf32> to vector<1x16x16x4xf32>
    %c0_118 = arith.constant 0 : index
    %c0_119 = arith.constant 0 : index
    %c0_120 = arith.constant 0 : index
    %c0_121 = arith.constant 0 : index
    %97 = vector.load %arg8[%c0_118, %c0_119, %c0_120, %c0_121] : memref<1x16x16x4xf32, #tpu.memory_space<vmem>>, vector<1x16x16x4xf32>
    tpu.vector_store %arg8[%c0_118, %c0_119, %c0_120, %c0_121], %96 {strides = array<i32>} : memref<1x16x16x4xf32, #tpu.memory_space<vmem>>, vector<1x16x16x4xf32>,
    return
  }
  func.func @transform_0(%arg0: i32) -> (i32, i32, i32, i32) {
    %c0_i32 = arith.constant 0 : i32
    %c0_i32_0 = arith.constant 0 : i32
    %c0_i32_1 = arith.constant 0 : i32
    %c0_i32_2 = arith.constant 0 : i32
    return %arg0, %c0_i32, %c0_i32_0, %c0_i32_1 : i32, i32, i32, i32
  }
  func.func @transform_1(%arg0: i32) -> (i32, i32) {
    %c0_i32 = arith.constant 0 : i32
    %c0_i32_0 = arith.constant 0 : i32
    %c0_i32_1 = arith.constant 0 : i32
    return %c0_i32, %c0_i32_0 : i32, i32
  }
  func.func @transform_2(%arg0: i32) -> (i32, i32) {
    %c0_i32 = arith.constant 0 : i32
    %c0_i32_0 = arith.constant 0 : i32
    %c0_i32_1 = arith.constant 0 : i32
    return %c0_i32, %c0_i32_0 : i32, i32
  }
  func.func @transform_3(%arg0: i32) -> (i32, i32) {
    %c0_i32 = arith.constant 0 : i32
    %c0_i32_0 = arith.constant 0 : i32
    %c0_i32_1 = arith.constant 0 : i32
    return %c0_i32, %c0_i32_0 : i32, i32
  }
  func.func @transform_4(%arg0: i32) -> (i32, i32) {
    %c0_i32 = arith.constant 0 : i32
    %c0_i32_0 = arith.constant 0 : i32
    %c0_i32_1 = arith.constant 0 : i32
    return %c0_i32, %c0_i32_0 : i32, i32
  }
  func.func @transform_5(%arg0: i32) -> (i32, i32) {
    %c0_i32 = arith.constant 0 : i32
    %c0_i32_0 = arith.constant 0 : i32
    %c0_i32_1 = arith.constant 0 : i32
    return %c0_i32, %c0_i32_0 : i32, i32
  }
  func.func @transform_6(%arg0: i32) -> (i32, i32) {
    %c0_i32 = arith.constant 0 : i32
    %c0_i32_0 = arith.constant 0 : i32
    %c0_i32_1 = arith.constant 0 : i32
    return %c0_i32, %c0_i32_0 : i32, i32
  }
  func.func @transform_7(%arg0: i32) -> (i32, i32, i32, i32) {
    %c0_i32 = arith.constant 0 : i32
    %c0_i32_0 = arith.constant 0 : i32
    %c0_i32_1 = arith.constant 0 : i32
    %c0_i32_2 = arith.constant 0 : i32
    return %arg0, %c0_i32, %c0_i32_0, %c0_i32_1 : i32, i32, i32, i32
  }
}

</mosaic_0001>

<bundles_post_ra>
// kernel: quantized_resnet_forward.1
= control target key start
LH: loop header
LB: loop body
LE: loop exit
PB: predicated region body
PF: predicated region fallthrough
CT: control target
= control target key end

     0   :  { %s5458_s28 = smov 0   ;;  %s8364_s0 = inlined_call_operand.vmem [shape: f32[2,16,16,4], index: 0, kind: input, shape index: {}]   ;;  %s8365_s1 = inlined_call_operand.vmem [shape: f32[36,4], index: 1, kind: input, shape index: {}]   ;;  %s8366_s2 = inlined_call_operand.vmem [shape: f32[1,4], index: 2, kind: input, shape index: {}]   ;;  %s8367_s3 = inlined_call_operand.vmem [shape: f32[36,4], index: 3, kind: input, shape index: {}]   ;;  %s8368_s4 = inlined_call_operand.vmem [shape: f32[1,4], index: 4, kind: input, shape index: {}]   ;;  %s8369_s5 = inlined_call_operand.<no memory space> [shape: f32[1,1], index: 5, kind: input, shape index: {}]   ;;  %s8370_s6 = inlined_call_operand.<no memory space> [shape: f32[1,1], index: 6, kind: input, shape index: {}]   ;;  %s8371_s7 = inlined_call_operand.vmem [shape: f32[2,16,16,4], index: 7, kind: output, shape index: {}]  }
   0x1   :  { %12 = sst [smem:[#allocation5]] %s8369_s5 }
   0x2   :  { %13 = sst [smem:[#allocation6]] %s8370_s6 }
   0x3 LB: > { %s4849_s29 = sadd.s32 4294967295, %s5401_s28   ;;  %p4853_p0 = scmp.ge.s32.totalorder %s5401_s28, 1  ;;  %s5401_s28 = sphi %s5458_s28, %s19_s28  }
   0x4   : > { %p239_p1 = scmp.lt.s32.totalorder %s5401_s28, 3 }
   0x6   : > { %p240_p2 = pnand %p4853_p0, %p239_p1 }
   0x8   : > { %243 = sbr.rel (%p240_p2) target bundleno = 1724 (0x6bc), region = 48 }
   0xd   : > { %vm542_vm0 = vcmask 31744   ;;  %vm545_vm1 = vcmask 25600   ;;  %v5403_v0 = vmov 0.0   ;;  %s5610_s5 = sld [smem:[#allocation5]]  ;;  %p271_p3 = scmp.lt.s32.totalorder %s4849_s29, 1 }
   0xe   : > { %543 = vst.msk [vmem:[#allocation2] sm:$0xff] %vm542_vm0, %v5403_v0  ;;  %544 = vst.msk [vmem:[#allocation2 + $0x8] sm:$0xff] %vm542_vm0, %v5403_v0  ;;  %s5404_s6 = smov 4   ;;  %s282_s8 = sld [smem:[#allocation6]] }
   0xf   : > { %547 = vst.msk [vmem:[#allocation2 + $0x18] sm:$0xff] %vm542_vm0, %v5403_v0  ;;  %548 = vst.msk [vmem:[#allocation2 + $0x20] sm:$0xff] %vm542_vm0, %v5403_v0  ;;  %s8615_s29 = smov (!%p271_p3, %s4849_s29), 1  ;;  %s5405_s12 = smov 8  }
  0x10   : > { %550 = vst.msk [vmem:[#allocation2 + $0x30] sm:$0xff] %vm542_vm0, %v5403_v0  ;;  %551 = vst.msk [vmem:[#allocation2 + $0x38] sm:$0xff] %vm542_vm0, %v5403_v0  ;;  %s4928_s30 = sshll.u32 %s8615_s29, 8  ;;  %s5406_s13 = smov 12  }
  0x11   : > { %553 = vst.msk [vmem:[#allocation2 + $0x48] sm:$0xff] %vm542_vm0, %v5403_v0  ;;  %554 = vst.msk [vmem:[#allocation2 + $0x50] sm:$0xff] %vm542_vm0, %v5403_v0  ;;  %s5702_s11 = scalar_lea.vmem %s8364_s0, %s4928_s30  ;;  %s5407_s14 = smov 16  }
  0x12   : > { %556 = vst.msk [vmem:[#allocation2 + $0x60] sm:$0xff] %vm542_vm0, %v5403_v0  ;;  %557 = vst.msk [vmem:[#allocation2 + $0x68] sm:$0xff] %vm542_vm0, %v5403_v0  ;;  %v283_v4 = vld [vmem:[%s5702_s11] sm:$0xff]  ;;  %v284_v5 = vld [vmem:[%s5702_s11 + $0x8] sm:$0xff]  ;;  %s5408_s15 = smov 20   ;;  %s5409_s16 = smov 24  }
  0x13   : > { %559 = vst.msk [vmem:[#allocation2 + $0x78] sm:$0xff] %vm542_vm0, %v5403_v0  ;;  %560 = vst.msk [vmem:[#allocation2 + $0x80] sm:$0xff] %vm542_vm0, %v5403_v0  ;;  %v5687_v1 = vstv %s5610_s5  ;;  %v285_v6 = vld [vmem:[%s5702_s11 + $0x10] sm:$0xff]  ;;  %v286_v7 = vld [vmem:[%s5702_s11 + $0x18] sm:$0xff]  ;;  %s5410_s17 = smov 28   ;;  %s5411_s5 = smov 32  }
  0x14   : > { %562 = vst.msk [vmem:[#allocation2 + $0x90] sm:$0xff] %vm542_vm0, %v5403_v0  ;;  %563 = vst.msk [vmem:[#allocation2 + $0x98] sm:$0xff] %vm542_vm0, %v5403_v0  ;;  %5393 = vrcp.f32 %v5687_v1  ;;  %v287_v8 = vld [vmem:[%s5702_s11 + $0x20] sm:$0xff]  ;;  %v288_v9 = vld [vmem:[%s5702_s11 + $0x28] sm:$0xff]  ;;  %v5714_v13 = vstv %s282_s8 }
  0x15   : > { %565 = vst.msk [vmem:[#allocation2 + $0xa8] sm:$0xff] %vm542_vm0, %v5403_v0  ;;  %566 = vst.msk [vmem:[#allocation2 + $0xb0] sm:$0xff] %vm542_vm0, %v5403_v0  ;;  %v695_v2 = vld [vmem:[#allocation2 + $0x1] sm:$0xff]  ;;  %v289_v10 = vld [vmem:[%s5702_s11 + $0x30] sm:$0xff] }
  0x16   : > { %568 = vst.msk [vmem:[#allocation2 + $0xc0] sm:$0xff] %vm542_vm0, %v5403_v0  ;;  %569 = vst.msk [vmem:[#allocation2 + $0xc8] sm:$0xff] %vm542_vm0, %v5403_v0  ;;  %759 = vrot.lane.b32.xlu0 %v695_v2, %s5404_s6  ;;  %v290_v11 = vld [vmem:[%s5702_s11 + $0x38] sm:$0xff] }
  0x17   : > { %571 = vst.msk [vmem:[#allocation2 + $0xd8] sm:$0xff] %vm542_vm0, %v5403_v0  ;;  %572 = vst.msk [vmem:[#allocation2 + $0xe0] sm:$0xff] %vm542_vm0, %v5403_v0 }
  0x18   : > { %574 = vst.msk [vmem:[#allocation2 + $0xf0] sm:$0xff] %vm542_vm0, %v5403_v0  ;;  %575 = vst.msk [vmem:[#allocation2 + $0xf8] sm:$0xff] %vm542_vm0, %v5403_v0 }
  0x19   : > { %577 = vst.msk [vmem:[#allocation2 + $0x108] sm:$0xff] %vm542_vm0, %v5403_v0  ;;  %578 = vst.msk [vmem:[#allocation2 + $0x110] sm:$0xff] %vm542_vm0, %v5403_v0 }
  0x1a   : > { %580 = vst.msk [vmem:[#allocation2 + $0x120] sm:$0xff] %vm542_vm0, %v5403_v0  ;;  %581 = vst.msk [vmem:[#allocation2 + $0x128] sm:$0xff] %vm542_vm0, %v5403_v0 }
  0x1b   : > { %583 = vst.msk [vmem:[#allocation2 + $0x138] sm:$0xff] %vm542_vm0, %v5403_v0  ;;  %584 = vst.msk [vmem:[#allocation2 + $0x140] sm:$0xff] %vm542_vm0, %v5403_v0 }
  0x1c   : > { %586 = vst.msk [vmem:[#allocation2 + $0x150] sm:$0xff] %vm542_vm0, %v5403_v0  ;;  %587 = vst.msk [vmem:[#allocation2 + $0x158] sm:$0xff] %vm542_vm0, %v5403_v0 }
  0x1d   : > { %589 = vst.msk [vmem:[#allocation2 + $0x168] sm:$0xff] %vm542_vm0, %v5403_v0  ;;  %590 = vst.msk [vmem:[#allocation2 + $0x170] sm:$0xff] %vm542_vm0, %v5403_v0 }
  0x1e   : > { %592 = vst.msk [vmem:[#allocation2 + $0x180] sm:$0xff] %vm542_vm0, %v5403_v0  ;;  %593 = vst.msk [vmem:[#allocation2 + $0x188] sm:$0xff] %vm542_vm0, %v5403_v0 }
  0x1f   : > { %595 = vst.msk [vmem:[#allocation2 + $0x198] sm:$0xff] %vm542_vm0, %v5403_v0  ;;  %596 = vst.msk [vmem:[#allocation2 + $0x1a0] sm:$0xff] %vm542_vm0, %v5403_v0 }
  0x20   : > { %2642 = vst.msk [vmem:[#allocation3] sm:$0xff] %vm542_vm0, %v5403_v0  ;;  %2643 = vst.msk [vmem:[#allocation3 + $0x8] sm:$0xff] %vm542_vm0, %v5403_v0 }
  0x21   : > { %2645 = vst.msk [vmem:[#allocation3 + $0x18] sm:$0xff] %vm542_vm0, %v5403_v0  ;;  %2646 = vst.msk [vmem:[#allocation3 + $0x20] sm:$0xff] %vm542_vm0, %v5403_v0  ;;  %v5712_v12 = vpop.eup %5393 }
  0x22   : > { %2648 = vst.msk [vmem:[#allocation3 + $0x30] sm:$0xff] %vm542_vm0, %v5403_v0  ;;  %2649 = vst.msk [vmem:[#allocation3 + $0x38] sm:$0xff] %vm542_vm0, %v5403_v0  ;;  %v317_v14 = vmul.f32 %v5712_v12, %v283_v4  ;;  %v318_v15 = vmul.f32 %v5712_v12, %v284_v5  ;;  %v319_v16 = vmul.f32 %v5712_v12, %v285_v6 }
  0x23   : > { %2651 = vst.msk [vmem:[#allocation3 + $0x48] sm:$0xff] %vm542_vm0, %v5403_v0  ;;  %2652 = vst.msk [vmem:[#allocation3 + $0x50] sm:$0xff] %vm542_vm0, %v5403_v0  ;;  %v320_v17 = vmul.f32 %v5712_v12, %v286_v7  ;;  %v5721_v18 = vmul.f32 %v5712_v12, %v287_v8  ;;  %v5724_v19 = vmul.f32 %v5712_v12, %v288_v9 }
  0x24   : > { %2654 = vst.msk [vmem:[#allocation3 + $0x60] sm:$0xff] %vm542_vm0, %v5403_v0  ;;  %2655 = vst.msk [vmem:[#allocation3 + $0x68] sm:$0xff] %vm542_vm0, %v5403_v0  ;;  %v5727_v20 = vmul.f32 %v5712_v12, %v289_v10  ;;  %v5730_v21 = vmul.f32 %v5712_v12, %v290_v11  ;;  %v5120_v22 = vand.u32 2147483647, %v317_v14  ;;  %v5122_v23 = vcvt.f32.s32 %v317_v14 }
  0x25   : > { %2657 = vst.msk [vmem:[#allocation3 + $0x78] sm:$0xff] %vm542_vm0, %v5403_v0  ;;  %2658 = vst.msk [vmem:[#allocation3 + $0x80] sm:$0xff] %vm542_vm0, %v5403_v0  ;;  %v5125_v24 = vand.u32 2147483648, %v317_v14  ;;  %v5128_v25 = vand.u32 2147483647, %v318_v15  ;;  %v5130_v26 = vcvt.f32.s32 %v318_v15  ;;  %v5133_v27 = vand.u32 2147483648, %v318_v15 }
  0x26   : > { %2660 = vst.msk [vmem:[#allocation3 + $0x90] sm:$0xff] %vm542_vm0, %v5403_v0  ;;  %2661 = vst.msk [vmem:[#allocation3 + $0x98] sm:$0xff] %vm542_vm0, %v5403_v0  ;;  %v5136_v28 = vand.u32 2147483647, %v319_v16  ;;  %v5138_v29 = vcvt.f32.s32 %v319_v16  ;;  %vm5732_vm2 = vcmp.lt.f32.partialorder %v5120_v22, 8388608.0  ;;  %v5123_v31 = vcvt.s32.f32 %v5122_v23 }
  0x27   : > { %2663 = vst.msk [vmem:[#allocation3 + $0xa8] sm:$0xff] %vm542_vm0, %v5403_v0  ;;  %2664 = vst.msk [vmem:[#allocation3 + $0xb0] sm:$0xff] %vm542_vm0, %v5403_v0  ;;  %vm5736_vm3 = vcmp.lt.f32.partialorder %v5128_v25, 8388608.0  ;;  %v5141_v33 = vand.u32 2147483648, %v319_v16  ;;  %v5131_v34 = vcvt.s32.f32 %v5130_v26  ;;  %v5144_v37 = vand.u32 2147483647, %v320_v17 }
  0x28   : > { %2666 = vst.msk [vmem:[#allocation3 + $0xc0] sm:$0xff] %vm542_vm0, %v5403_v0  ;;  %2667 = vst.msk [vmem:[#allocation3 + $0xc8] sm:$0xff] %vm542_vm0, %v5403_v0  ;;  %vm5740_vm4 = vcmp.lt.f32.partialorder %v5136_v28, 8388608.0  ;;  %v5139_v36 = vcvt.s32.f32 %v5138_v29  ;;  %v5124_v38 = vand.u32 2147483647, %v5123_v31  ;;  %v5146_v39 = vcvt.f32.s32 %v320_v17 }
  0x29   : > { %2669 = vst.msk [vmem:[#allocation3 + $0xd8] sm:$0xff] %vm542_vm0, %v5403_v0  ;;  %2670 = vst.msk [vmem:[#allocation3 + $0xe0] sm:$0xff] %vm542_vm0, %v5403_v0  ;;  %v5149_v40 = vand.u32 2147483648, %v320_v17  ;;  %v5152_v41 = vand.u32 2147483647, %v5721_v18  ;;  %vm5745_vm5 = vcmp.lt.f32.partialorder %v5144_v37, 8388608.0  ;;  %v5154_v45 = vcvt.f32.s32 %v5721_v18 }
  0x2a   : > { %2672 = vst.msk [vmem:[#allocation3 + $0xf0] sm:$0xff] %vm542_vm0, %v5403_v0  ;;  %2673 = vst.msk [vmem:[#allocation3 + $0xf8] sm:$0xff] %vm542_vm0, %v5403_v0  ;;  %v5132_v42 = vand.u32 2147483647, %v5131_v34  ;;  %v5140_v43 = vand.u32 2147483647, %v5139_v36  ;;  %v5126_v46 = vor.u32 %v5125_v24, %v5124_v38  ;;  %v5147_v47 = vcvt.s32.f32 %v5146_v39 }
  0x2b   : > { %2675 = vst.msk [vmem:[#allocation3 + $0x108] sm:$0xff] %vm542_vm0, %v5403_v0  ;;  %2676 = vst.msk [vmem:[#allocation3 + $0x110] sm:$0xff] %vm542_vm0, %v5403_v0  ;;  %vm5750_vm6 = vcmp.lt.f32.partialorder %v5152_v41, 8388608.0  ;;  %v5157_v49 = vand.u32 2147483648, %v5721_v18  ;;  %v5155_v52 = vcvt.s32.f32 %v5154_v45  ;;  %v5160_v53 = vand.u32 2147483647, %v5724_v19 }
  0x2c   : > { %2678 = vst.msk [vmem:[#allocation3 + $0x120] sm:$0xff] %vm542_vm0, %v5403_v0  ;;  %2679 = vst.msk [vmem:[#allocation3 + $0x128] sm:$0xff] %vm542_vm0, %v5403_v0  ;;  %v5134_v50 = vor.u32 %v5133_v27, %v5132_v42  ;;  %v5142_v51 = vor.u32 %v5141_v33, %v5140_v43  ;;  %v5127_v54 = vsel %vm5732_vm2, %v5126_v46, %v317_v14  ;;  %v5148_v55 = vand.u32 2147483647, %v5147_v47  ;;  %v291_v36 = vld [vmem:[%s5702_s11 + $0x40] sm:$0xff]  ;;  %v292_v47 = vld [vmem:[%s5702_s11 + $0x48] sm:$0xff] }
  0x2d   : > { %2681 = vst.msk [vmem:[#allocation3 + $0x138] sm:$0xff] %vm542_vm0, %v5403_v0  ;;  %2682 = vst.msk [vmem:[#allocation3 + $0x140] sm:$0xff] %vm542_vm0, %v5403_v0  ;;  %v5162_v56 = vcvt.f32.s32 %v5724_v19  ;;  %v5165_v57 = vand.u32 2147483648, %v5724_v19  ;;  %v382_v58 = vadd.f32 %v5127_v54, %v5714_v13  ;;  %v5156_v61 = vand.u32 2147483647, %v5155_v52  ;;  %v293_v52 = vld [vmem:[%s5702_s11 + $0x50] sm:$0xff] }
  0x2e   : > { %2684 = vst.msk [vmem:[#allocation3 + $0x150] sm:$0xff] %vm542_vm0, %v5403_v0  ;;  %2685 = vst.msk [vmem:[#allocation3 + $0x158] sm:$0xff] %vm542_vm0, %v5403_v0  ;;  %v5135_v59 = vsel %vm5736_vm3, %v5134_v50, %v318_v15  ;;  %v5143_v60 = vsel %vm5740_vm4, %v5142_v51, %v319_v16  ;;  %vm5767_vm7 = vcmp.lt.f32.partialorder %v5160_v53, 8388608.0  ;;  %v5168_v6 = vand.u32 2147483647, %v5727_v20 }
  0x2f   : > { %2687 = vst.msk [vmem:[#allocation3 + $0x168] sm:$0xff] %vm542_vm0, %v5403_v0  ;;  %2688 = vst.msk [vmem:[#allocation3 + $0x170] sm:$0xff] %vm542_vm0, %v5403_v0  ;;  %v383_v62 = vadd.f32 %v5135_v59, %v5714_v13  ;;  %v384_v63 = vadd.f32 %v5143_v60, %v5714_v13  ;;  %v5158_v4 = vor.u32 %v5157_v49, %v5156_v61  ;;  %v5163_v5 = vcvt.s32.f32 %v5162_v56 }
  0x30   : > { %2690 = vst.msk [vmem:[#allocation3 + $0x180] sm:$0xff] %vm542_vm0, %v5403_v0  ;;  %2691 = vst.msk [vmem:[#allocation3 + $0x188] sm:$0xff] %vm542_vm0, %v5403_v0  ;;  %v5170_v10 = vcvt.f32.s32 %v5727_v20  ;;  %vm5780_vm8 = vcmp.lt.f32.partialorder %v5168_v6, 8388608.0  ;;  %v5173_v31 = vand.u32 2147483648, %v5727_v20  ;;  %v5178_v43 = vcvt.f32.s32 %v5730_v21 }
  0x31   : > { %2693 = vst.msk [vmem:[#allocation3 + $0x198] sm:$0xff] %vm542_vm0, %v5403_v0  ;;  %2694 = vst.msk [vmem:[#allocation3 + $0x1a0] sm:$0xff] %vm542_vm0, %v5403_v0  ;;  %v415_v7 = vmax.f32 %v383_v62, 0.0  ;;  %v416_v8 = vmax.f32 %v384_v63, 0.0  ;;  %v5159_v15 = vsel %vm5750_vm6, %v5158_v4, %v5721_v18  ;;  %v5164_v16 = vand.u32 2147483647, %v5163_v5 }
  0x32   : > { %546 = vst.msk [vmem:[#allocation2 + $0x10] sm:$0x3] %vm545_vm1, %v5403_v0  ;;  %549 = vst.msk [vmem:[#allocation2 + $0x28] sm:$0x3] %vm545_vm1, %v5403_v0  ;;  %v386_v24 = vadd.f32 %v5159_v15, %v5714_v13  ;;  %v5171_v28 = vcvt.s32.f32 %v5170_v10  ;;  %v5813_v46 = vmul.f32 %v5712_v12, %v291_v36  ;;  %v5179_v50 = vcvt.s32.f32 %v5178_v43  ;;  %v294_v10 = vld [vmem:[%s5702_s11 + $0x58] sm:$0xff] }
  0x33   : > { %552 = vst.msk [vmem:[#allocation2 + $0x40] sm:$0x3] %vm545_vm1, %v5403_v0  ;;  %555 = vst.msk [vmem:[#allocation2 + $0x58] sm:$0x3] %vm545_vm1, %v5403_v0  ;;  %v447_v22 = vmin.f32 %v415_v7, 255.0  ;;  %v448_v23 = vmin.f32 %v416_v8, 255.0  ;;  %v5166_v27 = vor.u32 %v5165_v57, %v5164_v16  ;;  %v326_v59 = vmul.f32 %v5712_v12, %v292_v47 }
  0x34   : > { %558 = vst.msk [vmem:[#allocation2 + $0x70] sm:$0x3] %vm545_vm1, %v5403_v0  ;;  %561 = vst.msk [vmem:[#allocation2 + $0x88] sm:$0x3] %vm545_vm1, %v5403_v0  ;;  %v418_v18 = vmax.f32 %v386_v24, 0.0  ;;  %v5181_v51 = vand.u32 2147483648, %v5730_v21  ;;  %v5842_v63 = vmul.f32 %v5712_v12, %v293_v52 }
  0x35   : > { %564 = vst.msk [vmem:[#allocation2 + $0xa0] sm:$0x3] %vm545_vm1, %v5403_v0  ;;  %567 = vst.msk [vmem:[#allocation2 + $0xb8] sm:$0x3] %vm545_vm1, %v5403_v0  ;;  %v479_v29 = vsub.f32 %v447_v22, %v5714_v13  ;;  %v480_v30 = vsub.f32 %v448_v23, %v5714_v13  ;;  %v5167_v34 = vsel %vm5767_vm7, %v5166_v27, %v5724_v19  ;;  %v5172_v35 = vand.u32 2147483647, %v5171_v28 }
  0x36   : > { %570 = vst.msk [vmem:[#allocation2 + $0xd0] sm:$0x3] %vm545_vm1, %v5403_v0  ;;  %573 = vst.msk [vmem:[#allocation2 + $0xe8] sm:$0x3] %vm545_vm1, %v5403_v0  ;;  %v450_v39 = vmin.f32 %v418_v18, 255.0  ;;  %v5189_v62 = vand.u32 2147483648, %v5813_v46  ;;  %v5194_v4 = vcvt.f32.s32 %v326_v59 }
  0x37   : > { %576 = vst.msk [vmem:[#allocation2 + $0x100] sm:$0x3] %vm545_vm1, %v5403_v0  ;;  %579 = vst.msk [vmem:[#allocation2 + $0x118] sm:$0x3] %vm545_vm1, %v5403_v0  ;;  %v5796_v37 = vmul.f32 %v479_v29, %v5687_v1  ;;  %v5799_v38 = vmul.f32 %v480_v30, %v5687_v1  ;;  %v5174_v42 = vor.u32 %v5173_v31, %v5172_v35  ;;  %v5176_v19 = vand.u32 2147483647, %v5730_v21 }
  0x38   : > { %582 = vst.msk [vmem:[#allocation2 + $0x130] sm:$0x3] %vm545_vm1, %v5403_v0  ;;  %585 = vst.msk [vmem:[#allocation2 + $0x148] sm:$0x3] %vm545_vm1, %v5403_v0  ;;  %v482_v44 = vsub.f32 %v450_v39, %v5714_v13  ;;  %v5184_v56 = vand.u32 2147483647, %v5813_v46  ;;  %v5195_v16 = vcvt.s32.f32 %v5194_v4  ;;  %v328_v30 = vmul.f32 %v5712_v12, %v294_v10 }
  0x39   : > { %588 = vst.msk [vmem:[#allocation2 + $0x160] sm:$0x3] %vm545_vm1, %v5403_v0  ;;  %591 = vst.msk [vmem:[#allocation2 + $0x178] sm:$0x3] %vm545_vm1, %v5403_v0  ;;  %v696_v3 = vld [vmem:[#allocation2 + $0x9] sm:$0xff]  ;;  %v5175_v49 = vsel %vm5780_vm8, %v5174_v42, %v5727_v20  ;;  %vm5831_vm9 = vcmp.lt.f32.partialorder %v5176_v19, 8388608.0 }
  0x3a   : > { %594 = vst.msk [vmem:[#allocation2 + $0x190] sm:$0x3] %vm545_vm1, %v5403_v0  ;;  %597 = vst.msk [vmem:[#allocation2 + $0x1a8] sm:$0x3] %vm545_vm1, %v5403_v0  ;;  %761 = vrot.lane.b32.xlu0 %v696_v3, %s5404_s6  ;;  %v414_v3 = vmax.f32 %v382_v58, 0.0  ;;  %v5825_v53 = vmul.f32 %v482_v44, %v5687_v1  ;;  %v5186_v58 = vcvt.f32.s32 %v5813_v46  ;;  %vm5847_vm10 = vcmp.lt.f32.partialorder %v5184_v56, 8388608.0 }
  0x3b   : > { %2644 = vst.msk [vmem:[#allocation3 + $0x10] sm:$0x3] %vm545_vm1, %v5403_v0  ;;  %2647 = vst.msk [vmem:[#allocation3 + $0x28] sm:$0x3] %vm545_vm1, %v5403_v0  ;;  %v5180_v20 = vand.u32 2147483647, %v5179_v50 }
  0x3c   : > { %2650 = vst.msk [vmem:[#allocation3 + $0x40] sm:$0x3] %vm545_vm1, %v5403_v0  ;;  %2653 = vst.msk [vmem:[#allocation3 + $0x58] sm:$0x3] %vm545_vm1, %v5403_v0  ;;  %v446_v11 = vmin.f32 %v414_v3, 255.0  ;;  %v5187_v2 = vcvt.s32.f32 %v5186_v58  ;;  %v295_v23 = vld [vmem:[%s5702_s11 + $0x60] sm:$0xff] }
  0x3d   : > { %2656 = vst.msk [vmem:[#allocation3 + $0x70] sm:$0x3] %vm545_vm1, %v5403_v0  ;;  %2659 = vst.msk [vmem:[#allocation3 + $0x88] sm:$0x3] %vm545_vm1, %v5403_v0  ;;  %v5192_v3 = vand.u32 2147483647, %v326_v59 }
  0x3e   : > { %2662 = vst.msk [vmem:[#allocation3 + $0xa0] sm:$0x3] %vm545_vm1, %v5403_v0  ;;  %2665 = vst.msk [vmem:[#allocation3 + $0xb8] sm:$0x3] %vm545_vm1, %v5403_v0  ;;  %v5188_v15 = vand.u32 2147483647, %v5187_v2 }
  0x3f   : > { %2668 = vst.msk [vmem:[#allocation3 + $0xd0] sm:$0x3] %vm545_vm1, %v5403_v0  ;;  %2671 = vst.msk [vmem:[#allocation3 + $0xe8] sm:$0x3] %vm545_vm1, %v5403_v0  ;;  %v5200_v22 = vand.u32 2147483647, %v5842_v63 }
  0x40   : > { %2674 = vst.msk [vmem:[#allocation3 + $0x100] sm:$0x3] %vm545_vm1, %v5403_v0  ;;  %2677 = vst.msk [vmem:[#allocation3 + $0x118] sm:$0x3] %vm545_vm1, %v5403_v0  ;;  %vm5863_vm11 = vcmp.lt.f32.partialorder %v5192_v3, 8388608.0  ;;  %v5190_v27 = vor.u32 %v5189_v62, %v5188_v15  ;;  %v5205_v29 = vand.u32 2147483648, %v5842_v63 }
  0x41   : > { %2680 = vst.msk [vmem:[#allocation3 + $0x130] sm:$0x3] %vm545_vm1, %v5403_v0  ;;  %2683 = vst.msk [vmem:[#allocation3 + $0x148] sm:$0x3] %vm545_vm1, %v5403_v0  ;;  %v5196_v28 = vand.u32 2147483647, %v5195_v16 }
  0x42   : > { %2686 = vst.msk [vmem:[#allocation3 + $0x160] sm:$0x3] %vm545_vm1, %v5403_v0  ;;  %2689 = vst.msk [vmem:[#allocation3 + $0x178] sm:$0x3] %vm545_vm1, %v5403_v0  ;;  %v5191_v36 = vsel %vm5847_vm10, %v5190_v27, %v5813_v46  ;;  %vm5884_vm12 = vcmp.lt.f32.partialorder %v5200_v22, 8388608.0  ;;  %v296_v56 = vld [vmem:[%s5702_s11 + $0x68] sm:$0xff] }
  0x43   : > { %2692 = vst.msk [vmem:[#allocation3 + $0x190] sm:$0x3] %vm545_vm1, %v5403_v0  ;;  %2695 = vst.msk [vmem:[#allocation3 + $0x1a8] sm:$0x3] %vm545_vm1, %v5403_v0  ;;  %v5150_v0 = vor.u32 %v5149_v40, %v5148_v55  ;;  %v387_v40 = vadd.f32 %v5167_v34, %v5714_v13  ;;  %v388_v55 = vadd.f32 %v5175_v49, %v5714_v13  ;;  %v5213_v49 = vand.u32 2147483648, %v328_v30 }
  0x44   : > { %8447 = vst [vmem:[#allocation8_spill] sm:$0xff] %v5796_v37  ;;  %8448 = vst [vmem:[#allocation9_spill] sm:$0xff] %v5799_v38  ;;  %v5874_v34 = vmul.f32 %v5712_v12, %v295_v23  ;;  %v390_v43 = vadd.f32 %v5191_v36, %v5714_v13  ;;  %v5910_v8 = vmul.f32 %v5712_v12, %v296_v56 }
  0x45   : > { %v5151_v9 = vsel %vm5745_vm5, %v5150_v0, %v320_v17  ;;  %v478_v17 = vsub.f32 %v446_v11, %v5714_v13  ;;  %600 = vst.msk [vmem:[#allocation2 + $0x21] sm:$0xff] %vm542_vm0, %v5796_v37  ;;  %601 = vst.msk [vmem:[#allocation2 + $0x31] sm:$0xff] %vm542_vm0, %v5799_v38  ;;  %v419_v45 = vmax.f32 %v387_v40, 0.0  ;;  %v420_v61 = vmax.f32 %v388_v55, 0.0 }
  0x46   : > { %v385_v14 = vadd.f32 %v5151_v9, %v5714_v13  ;;  %8450 = vst [vmem:[#allocation11_spill] sm:$0xff] %v5825_v53  ;;  %603 = vst.msk [vmem:[#allocation2 + $0x49] sm:$0xff] %vm542_vm0, %v5825_v53  ;;  %v5182_v0 = vor.u32 %v5181_v51, %v5180_v20  ;;  %v5197_v9 = vand.u32 2147483648, %v326_v59  ;;  %v5208_v40 = vand.u32 2147483647, %v328_v30 }
  0x47   : > { %v5789_v32 = vmul.f32 %v478_v17, %v5687_v1  ;;  %v451_v54 = vmin.f32 %v419_v45, 255.0  ;;  %v452_v7 = vmin.f32 %v420_v61, 255.0  ;;  %v5216_v50 = vand.u32 2147483647, %v5874_v34 }
  0x48   : > { %v417_v26 = vmax.f32 %v385_v14, 0.0  ;;  %v5183_v14 = vsel %vm5831_vm9, %v5182_v0, %v5730_v21  ;;  %v5202_v21 = vcvt.f32.s32 %v5842_v63  ;;  %v5198_v39 = vor.u32 %v5197_v9, %v5196_v28 }
  0x49   : > { %8446 = vst [vmem:[#allocation7_spill] sm:$0xff] %v5789_v32  ;;  %599 = vst.msk [vmem:[#allocation2 + $0x19] sm:$0xff] %vm542_vm0, %v5789_v32  ;;  %v483_v60 = vsub.f32 %v451_v54, %v5714_v13  ;;  %v484_v25 = vsub.f32 %v452_v7, %v5714_v13  ;;  %v389_v17 = vadd.f32 %v5183_v14, %v5714_v13  ;;  %v422_v52 = vmax.f32 %v390_v43, 0.0 }
  0x4a   : > { %v449_v33 = vmin.f32 %v417_v26, 255.0  ;;  %v5199_v46 = vsel %vm5863_vm11, %v5198_v39, %v326_v59  ;;  %vm5895_vm13 = vcmp.lt.f32.partialorder %v5208_v40, 8388608.0  ;;  %v5218_v58 = vcvt.f32.s32 %v5874_v34 }
  0x4b   : > { %v5845_v6 = vmul.f32 %v483_v60, %v5687_v1  ;;  %v5871_v18 = vmul.f32 %v484_v25, %v5687_v1  ;;  %v421_v31 = vmax.f32 %v389_v17, 0.0  ;;  %v391_v54 = vadd.f32 %v5199_v46, %v5714_v13  ;;  %v297_v60 = vld [vmem:[%s5702_s11 + $0x70] sm:$0xff]  ;;  %v299_v46 = vld [vmem:[%s5702_s11 + $0x80] sm:$0xff] }
  0x4c   : > { %v481_v41 = vsub.f32 %v449_v33, %v5714_v13  ;;  %v699_v11 = vld [vmem:[#allocation2 + $0x31] sm:$0xff]  ;;  %v698_v24 = vld [vmem:[#allocation2 + $0x21] sm:$0xff]  ;;  %v5203_v33 = vcvt.s32.f32 %v5202_v21  ;;  %v5221_v59 = vand.u32 2147483648, %v5874_v34  ;;  %v454_v0 = vmin.f32 %v422_v52, 255.0 }
  0x4d   : > { %8453 = vst [vmem:[#allocation12_spill] sm:$0xff] %v5845_v6  ;;  %767 = vrot.lane.b32.xlu0 %v699_v11, %s5404_s6  ;;  %604 = vst.msk [vmem:[#allocation2 + $0x51] sm:$0xff] %vm542_vm0, %v5845_v6  ;;  %v701_v35 = vld [vmem:[#allocation2 + $0x49] sm:$0xff]  ;;  %v453_v19 = vmin.f32 %v421_v31, 255.0  ;;  %v423_v2 = vmax.f32 %v391_v54, 0.0  ;;  %v5219_v7 = vcvt.s32.f32 %v5218_v58  ;;  %vm5915_vm14 = vcmp.lt.f32.partialorder %v5216_v50, 8388608.0 }
  0x4e   : > { %v5817_v48 = vmul.f32 %v481_v41, %v5687_v1  ;;  %8458 = vst [vmem:[#allocation13_spill] sm:$0xff] %v5871_v18  ;;  %v5210_v41 = vcvt.f32.s32 %v328_v30  ;;  %605 = vst.msk [vmem:[#allocation2 + $0x61] sm:$0xff] %vm542_vm0, %v5871_v18  ;;  %v5204_v45 = vand.u32 2147483647, %v5203_v33  ;;  %v486_v9 = vsub.f32 %v454_v0, %v5714_v13  ;;  %v300_v52 = vld [vmem:[%s5702_s11 + $0x88] sm:$0xff] }
  0x4f   : > { %v485_v51 = vsub.f32 %v453_v19, %v5714_v13  ;;  %v455_v10 = vmin.f32 %v423_v2, 255.0  ;;  %v5920_v14 = vmul.f32 %v5712_v12, %v297_v60  ;;  %v5220_v23 = vand.u32 2147483647, %v5219_v7 }
  0x50   : > { %8449 = vst [vmem:[#allocation10_spill] sm:$0xff] %v5817_v48  ;;  %602 = vst.msk [vmem:[#allocation2 + $0x39] sm:$0xff] %vm542_vm0, %v5817_v48  ;;  %v697_v5 = vld [vmem:[#allocation2 + $0x19] sm:$0xff]  ;;  %v5211_v47 = vcvt.s32.f32 %v5210_v41  ;;  %v5206_v55 = vor.u32 %v5205_v29, %v5204_v45  ;;  %v5929_v25 = vmul.f32 %v486_v9, %v5687_v1  ;;  %v5226_v21 = vcvt.f32.s32 %v5910_v8 }
  0x51   : > { %763 = vrot.lane.b32.xlu1 %v697_v5, %s5404_s6  ;;  %771 = vrot.lane.b32.xlu0 %v701_v35, %s5404_s6  ;;  %v5903_v62 = vmul.f32 %v485_v51, %v5687_v1  ;;  %v487_v17 = vsub.f32 %v455_v10, %v5714_v13  ;;  %v5222_v28 = vor.u32 %v5221_v59, %v5220_v23  ;;  %v5229_v29 = vand.u32 2147483648, %v5910_v8  ;;  %v5970_v58 = vld [vmem:[#allocation2 + $0x18] sm:$0xff]  ;;  %v632_v23 = vld [vmem:[#allocation2 + $0x8] sm:$0xff] }
  0x52   : > { %v5212_v20 = vand.u32 2147483647, %v5211_v47  ;;  %v5207_v3 = vsel %vm5884_vm12, %v5206_v55, %v5842_v63  ;;  %v298_v63 = vld [vmem:[%s5702_s11 + $0x78] sm:$0xff]  ;;  %8466 = vst [vmem:[#allocation15_spill] sm:$0xff] %v5929_v25  ;;  %607 = vst.msk [vmem:[#allocation2 + $0x79] sm:$0xff] %vm542_vm0, %v5929_v25  ;;  %v5227_v35 = vcvt.s32.f32 %v5226_v21  ;;  %v5237_v45 = vand.u32 2147483648, %v5920_v14 }
  0x53   : > { %8463 = vst [vmem:[#allocation14_spill] sm:$0xff] %v5903_v62  ;;  %v392_v4 = vadd.f32 %v5207_v3, %v5714_v13  ;;  %606 = vst.msk [vmem:[#allocation2 + $0x69] sm:$0xff] %vm542_vm0, %v5903_v62  ;;  %v5941_v31 = vmul.f32 %v487_v17, %v5687_v1  ;;  %v5232_v36 = vand.u32 2147483647, %v5920_v14  ;;  %v5223_v40 = vsel %vm5915_vm14, %v5222_v28, %v5874_v34 }
  0x54   : > { %v702_v61 = vld [vmem:[#allocation2 + $0x51] sm:$0xff]  ;;  %v5214_v5 = vor.u32 %v5213_v49, %v5212_v20  ;;  %v394_v43 = vadd.f32 %v5223_v40, %v5714_v13  ;;  %v5228_v44 = vand.u32 2147483647, %v5227_v35  ;;  %v631_v20 = vld [vmem:[#allocation2] sm:$0xff]  ;;  %v5976_v0 = vmul.f32 %v5712_v12, %v299_v46  ;;  %665 = vst.msk [vmem:[#allocation4 + $0x10] sm:$0xff] %vm542_vm0, %v5970_v58  ;;  %664 = vst.msk [vmem:[#allocation4 + $0x8] sm:$0xff] %vm542_vm0, %v632_v23 }
  0x55   : > { %765 = vrot.lane.b32.xlu1 %v698_v24, %s5404_s6  ;;  %v703_v15 = vld [vmem:[#allocation2 + $0x61] sm:$0xff]  ;;  %v424_v16 = vmax.f32 %v392_v4, 0.0  ;;  %v5224_v24 = vand.u32 2147483647, %v5910_v8  ;;  %8467 = vst [vmem:[#allocation16_spill] sm:$0xff] %v5941_v31  ;;  %608 = vst.msk [vmem:[#allocation2 + $0x81] sm:$0xff] %vm542_vm0, %v5941_v31 }
  0x56   : > { %v5215_v22 = vsel %vm5895_vm13, %v5214_v5, %v328_v30  ;;  %775 = vrot.lane.b32.xlu0 %v703_v15, %s5404_s6  ;;  %v5936_v30 = vmul.f32 %v5712_v12, %v298_v63  ;;  %vm5961_vm1 = vcmp.lt.f32.partialorder %v5232_v36, 8388608.0  ;;  %v426_v55 = vmax.f32 %v394_v43, 0.0  ;;  %663 = vst.msk [vmem:[#allocation4] sm:$0xff] %vm542_vm0, %v631_v20  ;;  %v303_v43 = vld [vmem:[%s5702_s11 + $0xa0] sm:$0xff] }
  0x57   : > { %v700_v42 = vld [vmem:[#allocation2 + $0x39] sm:$0xff]  ;;  %v393_v26 = vadd.f32 %v5215_v22, %v5714_v13  ;;  %v456_v27 = vmin.f32 %v424_v16, 255.0  ;;  %vm5948_vm15 = vcmp.lt.f32.partialorder %v5224_v24, 8388608.0  ;;  %v5230_v56 = vor.u32 %v5229_v29, %v5228_v44  ;;  %v301_v29 = vld [vmem:[%s5702_s11 + $0x90] sm:$0xff] }
  0x58   : > { %v5242_v51 = vcvt.f32.s32 %v5936_v30  ;;  %v5240_v57 = vand.u32 2147483647, %v5936_v30  ;;  %v458_v3 = vmin.f32 %v426_v55, 255.0  ;;  %v5988_v5 = vmul.f32 %v5712_v12, %v300_v52  ;;  %v6002_v24 = vld [vmem:[#allocation2 + $0x20] sm:$0xff] }
  0x59   : > { %769 = vrot.lane.b32.xlu1 %v700_v42, %s5404_s6  ;;  %v425_v33 = vmax.f32 %v393_v26, 0.0  ;;  %v488_v39 = vsub.f32 %v456_v27, %v5714_v13  ;;  %v5234_v42 = vcvt.f32.s32 %v5920_v14  ;;  %v5231_v4 = vsel %vm5948_vm15, %v5230_v56, %v5910_v8  ;;  %v705_v7 = vld [vmem:[#allocation2 + $0x79] sm:$0xff]  ;;  %666 = vst.msk [vmem:[#allocation4 + $0x18] sm:$0xff] %vm542_vm0, %v6002_v24  ;;  %v6067_v8 = vld [vmem:[#allocation2 + $0x50] sm:$0xff] }
  0x5a   : > { %v704_v47 = vld [vmem:[#allocation2 + $0x69] sm:$0xff]  ;;  %v5243_v60 = vcvt.s32.f32 %v5242_v51  ;;  %v395_v9 = vadd.f32 %v5231_v4, %v5714_v13  ;;  %v5248_v63 = vand.u32 2147483647, %v5976_v0  ;;  %779 = vrot.lane.b32.xlu0 %v705_v7, %s5404_s6  ;;  %v490_v15 = vsub.f32 %v458_v3, %v5714_v13  ;;  %670 = vst.msk [vmem:[#allocation4 + $0x38] sm:$0xff] %vm542_vm0, %v6067_v8 }
  0x5b   : > { %v457_v19 = vmin.f32 %v425_v33, 255.0  ;;  %v5959_v49 = vmul.f32 %v488_v39, %v5687_v1  ;;  %v5235_v50 = vcvt.s32.f32 %v5234_v42  ;;  %vm5996_vm2 = vcmp.lt.f32.partialorder %v5240_v57, 8388608.0  ;;  %v302_v39 = vld [vmem:[%s5702_s11 + $0x98] sm:$0xff] }
  0x5c   : > { %v5244_v11 = vand.u32 2147483647, %v5243_v60  ;;  %v5250_v16 = vcvt.f32.s32 %v5976_v0  ;;  %v5256_v22 = vand.u32 2147483647, %v5988_v5  ;;  %v706_v17 = vld [vmem:[#allocation2 + $0x81] sm:$0xff]  ;;  %v427_v26 = vmax.f32 %v395_v9, 0.0 }
  0x5d   : > { %773 = vrot.lane.b32.xlu1 %v702_v61, %s5404_s6  ;;  %8470 = vst [vmem:[#allocation17_spill] sm:$0xff] %v5959_v49  ;;  %v489_v54 = vsub.f32 %v457_v19, %v5714_v13  ;;  %609 = vst.msk [vmem:[#allocation2 + $0x91] sm:$0xff] %vm542_vm0, %v5959_v49  ;;  %v5236_v59 = vand.u32 2147483647, %v5235_v50  ;;  %v5245_v61 = vand.u32 2147483648, %v5936_v30  ;;  %v5253_v28 = vand.u32 2147483648, %v5976_v0 }
  0x5e   : > { %v6014_v33 = vmul.f32 %v490_v15, %v5687_v1  ;;  %vm6017_vm3 = vcmp.lt.f32.partialorder %v5248_v63, 8388608.0  ;;  %v459_v40 = vmin.f32 %v427_v26, 255.0  ;;  %vm6025_vm4 = vcmp.lt.f32.partialorder %v5256_v22, 8388608.0  ;;  %v6037_v50 = vld [vmem:[#allocation2 + $0x30] sm:$0xff]  ;;  %v6065_v15 = vld [vmem:[#allocation2 + $0x48] sm:$0xff] }
  0x5f   : > { %v5982_v2 = vmul.f32 %v489_v54, %v5687_v1  ;;  %v5238_v10 = vor.u32 %v5237_v45, %v5236_v59  ;;  %v5246_v27 = vor.u32 %v5245_v61, %v5244_v11  ;;  %v5258_v19 = vcvt.f32.s32 %v5988_v5  ;;  %667 = vst.msk [vmem:[#allocation4 + $0x20] sm:$0xff] %vm542_vm0, %v6037_v50  ;;  %669 = vst.msk [vmem:[#allocation4 + $0x30] sm:$0xff] %vm542_vm0, %v6065_v15 }
  0x60   : > { %8476 = vst [vmem:[#allocation19_spill] sm:$0xff] %v6014_v33  ;;  %611 = vst.msk [vmem:[#allocation2 + $0xa9] sm:$0xff] %vm542_vm0, %v6014_v33  ;;  %v6035_v34 = vmul.f32 %v5712_v12, %v301_v29  ;;  %v491_v51 = vsub.f32 %v459_v40, %v5714_v13  ;;  %v5261_v54 = vand.u32 2147483648, %v5988_v5  ;;  %v6045_v55 = vmul.f32 %v5712_v12, %v302_v39  ;;  %v304_v39 = vld [vmem:[%s5702_s11 + $0xa8] sm:$0xff] }
  0x61   : > { %777 = vrot.lane.b32.xlu1 %v704_v47, %s5404_s6  ;;  %8473 = vst [vmem:[#allocation18_spill] sm:$0xff] %v5982_v2  ;;  %610 = vst.msk [vmem:[#allocation2 + $0x99] sm:$0xff] %vm542_vm0, %v5982_v2  ;;  %v5239_v21 = vsel %vm5961_vm1, %v5238_v10, %v5920_v14  ;;  %v5251_v14 = vcvt.s32.f32 %v5250_v16  ;;  %v5247_v41 = vsel %vm5996_vm2, %v5246_v27, %v5936_v30  ;;  %v6039_v30 = vld [vmem:[#allocation2 + $0x38] sm:$0xff]  ;;  %v5259_v52 = vcvt.s32.f32 %v5258_v19 }
  0x62   : > { %v396_v35 = vadd.f32 %v5239_v21, %v5714_v13  ;;  %v397_v46 = vadd.f32 %v5247_v41, %v5714_v13  ;;  %668 = vst.msk [vmem:[#allocation4 + $0x28] sm:$0xff] %vm542_vm0, %v6039_v30  ;;  %v5264_v59 = vand.u32 2147483647, %v6035_v34  ;;  %v6053_v61 = vmul.f32 %v491_v51, %v5687_v1 }
  0x63   : > { %v5252_v47 = vand.u32 2147483647, %v5251_v14  ;;  %v5260_v3 = vand.u32 2147483647, %v5259_v52  ;;  %v5266_v4 = vcvt.f32.s32 %v6035_v34  ;;  %v6057_v7 = vmul.f32 %v5712_v12, %v303_v43  ;;  %v6103_v43 = vld [vmem:[#allocation2 + $0x60] sm:$0xff] }
  0x64   : > { %v707_v44 = vld [vmem:[#allocation2 + $0x91] sm:$0xff]  ;;  %v428_v45 = vmax.f32 %v396_v35, 0.0  ;;  %v429_v57 = vmax.f32 %v397_v46, 0.0  ;;  %8481 = vst [vmem:[#allocation20_spill] sm:$0xff] %v6053_v61  ;;  %v5269_v63 = vand.u32 2147483648, %v6035_v34  ;;  %612 = vst.msk [vmem:[#allocation2 + $0xb1] sm:$0xff] %vm542_vm0, %v6053_v61  ;;  %v5274_v27 = vcvt.f32.s32 %v6045_v55 }
  0x65   : > { %781 = vrot.lane.b32.xlu1 %v706_v17, %s5404_s6  ;;  %783 = vrot.lane.b32.xlu0 %v707_v44, %s5404_s6  ;;  %v5254_v20 = vor.u32 %v5253_v28, %v5252_v47  ;;  %v5262_v22 = vor.u32 %v5261_v54, %v5260_v3  ;;  %v5267_v23 = vcvt.s32.f32 %v5266_v4  ;;  %v5272_v17 = vand.u32 2147483647, %v6045_v55  ;;  %v6105_v44 = vld [vmem:[#allocation2 + $0x68] sm:$0xff]  ;;  %671 = vst.msk [vmem:[#allocation4 + $0x40] sm:$0xff] %vm542_vm0, %v6103_v43 }
  0x66   : > { %v460_v56 = vmin.f32 %v428_v45, 255.0  ;;  %v461_v10 = vmin.f32 %v429_v57, 255.0  ;;  %vm6081_vm5 = vcmp.lt.f32.partialorder %v5264_v59, 8388608.0  ;;  %v5277_v14 = vand.u32 2147483648, %v6045_v55  ;;  %672 = vst.msk [vmem:[#allocation4 + $0x48] sm:$0xff] %vm542_vm0, %v6105_v44 }
  0x67   : > { %v5255_v11 = vsel %vm6017_vm3, %v5254_v20, %v5976_v0  ;;  %v709_v28 = vld [vmem:[#allocation2 + $0xa9] sm:$0xff]  ;;  %v5263_v35 = vsel %vm6025_vm4, %v5262_v22, %v5988_v5  ;;  %v5268_v36 = vand.u32 2147483647, %v5267_v23  ;;  %vm6098_vm6 = vcmp.lt.f32.partialorder %v5272_v17, 8388608.0  ;;  %v6137_v17 = vld [vmem:[#allocation2 + $0x78] sm:$0xff] }
  0x68   : > { %v708_v60 = vld [vmem:[#allocation2 + $0x99] sm:$0xff]  ;;  %v492_v9 = vsub.f32 %v460_v56, %v5714_v13  ;;  %v398_v16 = vadd.f32 %v5255_v11, %v5714_v13  ;;  %v493_v26 = vsub.f32 %v461_v10, %v5714_v13  ;;  %v399_v41 = vadd.f32 %v5263_v35, %v5714_v13  ;;  %v305_v5 = vld [vmem:[%s5702_s11 + $0xb0] sm:$0xff]  ;;  %673 = vst.msk [vmem:[#allocation4 + $0x50] sm:$0xff] %vm542_vm0, %v6137_v17 }
  0x69   : > { %785 = vrot.lane.b32.xlu1 %v708_v60, %s5404_s6  ;;  %787 = vrot.lane.b32.xlu0 %v709_v28, %s5404_s6  ;;  %v5275_v42 = vcvt.s32.f32 %v5274_v27  ;;  %v5270_v46 = vor.u32 %v5269_v63, %v5268_v36  ;;  %v5280_v47 = vand.u32 2147483647, %v6057_v7  ;;  %v5282_v51 = vcvt.f32.s32 %v6057_v7 }
  0x6a   : > { %v6078_v0 = vmul.f32 %v492_v9, %v5687_v1  ;;  %v430_v29 = vmax.f32 %v398_v16, 0.0  ;;  %v6095_v40 = vmul.f32 %v493_v26, %v5687_v1  ;;  %v431_v52 = vmax.f32 %v399_v41, 0.0  ;;  %v6139_v26 = vld [vmem:[#allocation2 + $0x80] sm:$0xff] }
  0x6b   : > { %v5276_v54 = vand.u32 2147483647, %v5275_v42  ;;  %v5285_v56 = vand.u32 2147483648, %v6057_v7  ;;  %v6117_v57 = vmul.f32 %v5712_v12, %v304_v39  ;;  %v5271_v59 = vsel %vm6081_vm5, %v5270_v46, %v6035_v34  ;;  %v710_v4 = vld [vmem:[#allocation2 + $0xb1] sm:$0xff]  ;;  %674 = vst.msk [vmem:[#allocation4 + $0x58] sm:$0xff] %vm542_vm0, %v6139_v26  ;;  %v307_v46 = vld [vmem:[%s5702_s11 + $0xc0] sm:$0xff] }
  0x6c   : > { %8482 = vst [vmem:[#allocation21_spill] sm:$0xff] %v6078_v0  ;;  %613 = vst.msk [vmem:[#allocation2 + $0xc1] sm:$0xff] %vm542_vm0, %v6078_v0  ;;  %v462_v45 = vmin.f32 %v430_v29, 255.0  ;;  %v5283_v60 = vcvt.s32.f32 %v5282_v51  ;;  %v6124_v3 = vmul.f32 %v5712_v12, %v305_v5  ;;  %v463_v9 = vmin.f32 %v431_v52, 255.0  ;;  %v6167_v51 = vld [vmem:[#allocation2 + $0x98] sm:$0xff]  ;;  %v6547_v49 = vld [vmem:[#allocation2 + $0xaa] sm:$0xff] }
  0x6d   : > { %8485 = vst [vmem:[#allocation22_spill] sm:$0xff] %v6095_v40  ;;  %614 = vst.msk [vmem:[#allocation2 + $0xc9] sm:$0xff] %vm542_vm0, %v6095_v40  ;;  %v400_v10 = vadd.f32 %v5271_v59, %v5714_v13  ;;  %v5278_v11 = vor.u32 %v5277_v14, %v5276_v54  ;;  %v5288_v63 = vand.u32 2147483647, %v6117_v57  ;;  %789 = vrot.lane.b32.xlu1 %v710_v4, %s5404_s6  ;;  %vm6132_vm7 = vcmp.lt.f32.partialorder %v5280_v47, 8388608.0  ;;  %v6165_v47 = vld [vmem:[#allocation2 + $0x90] sm:$0xff] }
  0x6e   : > { %v494_v20 = vsub.f32 %v462_v45, %v5714_v13  ;;  %v5284_v34 = vand.u32 2147483647, %v5283_v60  ;;  %v5290_v23 = vcvt.f32.s32 %v6117_v57  ;;  %v495_v21 = vsub.f32 %v463_v9, %v5714_v13  ;;  %675 = vst.msk [vmem:[#allocation4 + $0x60] sm:$0xff] %vm542_vm0, %v6165_v47  ;;  %676 = vst.msk [vmem:[#allocation4 + $0x68] sm:$0xff] %vm542_vm0, %v6167_v51 }
  0x6f   : > { %v432_v27 = vmax.f32 %v400_v10, 0.0  ;;  %v5279_v28 = vsel %vm6098_vm6, %v5278_v11, %v6045_v55  ;;  %v5293_v29 = vand.u32 2147483648, %v6117_v57  ;;  %v5296_v41 = vand.u32 2147483647, %v6124_v3  ;;  %v306_v55 = vld [vmem:[%s5702_s11 + $0xb8] sm:$0xff]  ;;  %v308_v10 = vld [vmem:[%s5702_s11 + $0xc8] sm:$0xff] }
  0x70   : > { %v6130_v16 = vmul.f32 %v494_v20, %v5687_v1  ;;  %v401_v36 = vadd.f32 %v5279_v28, %v5714_v13  ;;  %v5286_v14 = vor.u32 %v5285_v56, %v5284_v34  ;;  %v5291_v39 = vcvt.s32.f32 %v5290_v23 }
  0x71   : > { %v6157_v19 = vmul.f32 %v495_v21, %v5687_v1  ;;  %v464_v42 = vmin.f32 %v432_v27, 255.0  ;;  %vm6159_vm8 = vcmp.lt.f32.partialorder %v5288_v63, 8388608.0  ;;  %v5298_v45 = vcvt.f32.s32 %v6124_v3 }
  0x72   : > { %8488 = vst [vmem:[#allocation23_spill] sm:$0xff] %v6130_v16  ;;  %615 = vst.msk [vmem:[#allocation2 + $0xd9] sm:$0xff] %vm542_vm0, %v6130_v16  ;;  %v433_v54 = vmax.f32 %v401_v36, 0.0  ;;  %v5287_v56 = vsel %vm6132_vm7, %v5286_v14, %v6057_v7  ;;  %v5292_v20 = vand.u32 2147483647, %v5291_v39  ;;  %v5301_v59 = vand.u32 2147483648, %v6124_v3 }
  0x73   : > { %v711_v35 = vld [vmem:[#allocation2 + $0xc1] sm:$0xff]  ;;  %8491 = vst [vmem:[#allocation24_spill] sm:$0xff] %v6157_v19  ;;  %616 = vst.msk [vmem:[#allocation2 + $0xe1] sm:$0xff] %vm542_vm0, %v6157_v19  ;;  %v496_v60 = vsub.f32 %v464_v42, %v5714_v13  ;;  %v402_v4 = vadd.f32 %v5287_v56, %v5714_v13  ;;  %v5299_v9 = vcvt.s32.f32 %v5298_v45  ;;  %v6183_v7 = vmul.f32 %v5712_v12, %v306_v55 }
  0x74   : > { %791 = vrot.lane.b32.xlu0 %v711_v35, %s5404_s6  ;;  %v712_v52 = vld [vmem:[#allocation2 + $0xc9] sm:$0xff]  ;;  %v465_v11 = vmin.f32 %v433_v54, 255.0  ;;  %v5294_v63 = vor.u32 %v5293_v29, %v5292_v20  ;;  %vm6186_vm9 = vcmp.lt.f32.partialorder %v5296_v41, 8388608.0  ;;  %v6191_v34 = vmul.f32 %v5712_v12, %v307_v46 }
  0x75   : > { %793 = vrot.lane.b32.xlu1 %v712_v52, %s5404_s6  ;;  %v6194_v23 = vmul.f32 %v496_v60, %v5687_v1  ;;  %v434_v21 = vmax.f32 %v402_v4, 0.0  ;;  %v5300_v27 = vand.u32 2147483647, %v5299_v9  ;;  %v5304_v28 = vand.u32 2147483647, %v6183_v7  ;;  %v6197_v35 = vld [vmem:[#allocation2 + $0xa8] sm:$0xff] }
  0x76   : > { %v497_v36 = vsub.f32 %v465_v11, %v5714_v13  ;;  %v5295_v29 = vsel %vm6159_vm8, %v5294_v63, %v6117_v57  ;;  %v5306_v14 = vcvt.f32.s32 %v6183_v7  ;;  %v6205_v39 = vmul.f32 %v5712_v12, %v308_v10  ;;  %677 = vst.msk [vmem:[#allocation4 + $0x70] sm:$0xff] %vm542_vm0, %v6197_v35  ;;  %v6209_v41 = vld [vmem:[#allocation2 + $0xb0] sm:$0xff]  ;;  %v6231_v9 = vld [vmem:[#allocation2 + $0xc0] sm:$0xff]  ;;  %v6233_v10 = vld [vmem:[#allocation2 + $0xc8] sm:$0xff] }
  0x77   : > { %8496 = vst [vmem:[#allocation25_spill] sm:$0xff] %v6194_v23  ;;  %617 = vst.msk [vmem:[#allocation2 + $0xf1] sm:$0xff] %vm542_vm0, %v6194_v23  ;;  %v466_v42 = vmin.f32 %v434_v21, 255.0  ;;  %v403_v45 = vadd.f32 %v5295_v29, %v5714_v13  ;;  %v5302_v46 = vor.u32 %v5301_v59, %v5300_v27  ;;  %v5309_v57 = vand.u32 2147483648, %v6183_v7  ;;  %v6563_v31 = vld [vmem:[#allocation2 + $0xca] sm:$0xff] }
  0x78   : > { %678 = vst.msk [vmem:[#allocation4 + $0x78] sm:$0xff] %vm542_vm0, %v6209_v41  ;;  %v6219_v5 = vmul.f32 %v497_v36, %v5687_v1  ;;  %v5307_v52 = vcvt.s32.f32 %v5306_v14  ;;  %v5312_v54 = vand.u32 2147483647, %v6191_v34  ;;  %v5314_v56 = vcvt.f32.s32 %v6191_v34  ;;  %679 = vst.msk [vmem:[#allocation4 + $0x80] sm:$0xff] %vm542_vm0, %v6231_v9 }
  0x79   : > { %v713_v55 = vld [vmem:[#allocation2 + $0xd9] sm:$0xff]  ;;  %v498_v20 = vsub.f32 %v466_v42, %v5714_v13  ;;  %v435_v60 = vmax.f32 %v403_v45, 0.0  ;;  %v5303_v59 = vsel %vm6186_vm9, %v5302_v46, %v6124_v3  ;;  %vm6227_vm10 = vcmp.lt.f32.partialorder %v5304_v28, 8388608.0  ;;  %v309_v3 = vld [vmem:[%s5702_s11 + $0xd0] sm:$0xff]  ;;  %680 = vst.msk [vmem:[#allocation4 + $0x88] sm:$0xff] %vm542_vm0, %v6233_v10 }
  0x7a   : > { %795 = vrot.lane.b32.xlu0 %v713_v55, %s5404_s6  ;;  %8497 = vst [vmem:[#allocation26_spill] sm:$0xff] %v6219_v5  ;;  %v714_v11 = vld [vmem:[#allocation2 + $0xe1] sm:$0xff]  ;;  %618 = vst.msk [vmem:[#allocation2 + $0xf9] sm:$0xff] %vm542_vm0, %v6219_v5  ;;  %v404_v63 = vadd.f32 %v5303_v59, %v5714_v13  ;;  %v5308_v21 = vand.u32 2147483647, %v5307_v52  ;;  %v5315_v27 = vcvt.s32.f32 %v5314_v56  ;;  %v5317_v22 = vand.u32 2147483648, %v6191_v34 }
  0x7b   : > { %797 = vrot.lane.b32.xlu1 %v714_v11, %s5404_s6  ;;  %v6246_v28 = vmul.f32 %v498_v20, %v5687_v1  ;;  %v467_v36 = vmin.f32 %v435_v60, 255.0  ;;  %vm6248_vm11 = vcmp.lt.f32.partialorder %v5312_v54, 8388608.0  ;;  %v5322_v14 = vcvt.f32.s32 %v6205_v39  ;;  %v310_v55 = vld [vmem:[%s5702_s11 + $0xd8] sm:$0xff]  ;;  %v6264_v11 = vld [vmem:[#allocation2 + $0xe0] sm:$0xff] }
  0x7c   : > { %v436_v42 = vmax.f32 %v404_v63, 0.0  ;;  %v5310_v45 = vor.u32 %v5309_v57, %v5308_v21  ;;  %v5316_v46 = vand.u32 2147483647, %v5315_v27  ;;  %v5320_v52 = vand.u32 2147483647, %v6205_v39  ;;  %v6262_v59 = vld [vmem:[#allocation2 + $0xd8] sm:$0xff] }
  0x7d   : > { %8500 = vst [vmem:[#allocation27_spill] sm:$0xff] %v6246_v28  ;;  %619 = vst.msk [vmem:[#allocation2 + $0x109] sm:$0xff] %vm542_vm0, %v6246_v28  ;;  %v499_v56 = vsub.f32 %v467_v36, %v5714_v13  ;;  %v5323_v20 = vcvt.s32.f32 %v5322_v14  ;;  %v5325_v60 = vand.u32 2147483648, %v6205_v39  ;;  %v6260_v54 = vmul.f32 %v5712_v12, %v309_v3  ;;  %v6572_v18 = vld [vmem:[#allocation2 + $0xe2] sm:$0xff] }
  0x7e   : > { %v715_v63 = vld [vmem:[#allocation2 + $0xf1] sm:$0xff]  ;;  %v468_v57 = vmin.f32 %v436_v42, 255.0  ;;  %v5311_v21 = vsel %vm6227_vm10, %v5310_v45, %v6183_v7  ;;  %v5318_v27 = vor.u32 %v5317_v22, %v5316_v46  ;;  %v6270_v28 = vmul.f32 %v5712_v12, %v310_v55  ;;  %681 = vst.msk [vmem:[#allocation4 + $0x90] sm:$0xff] %vm542_vm0, %v6262_v59  ;;  %682 = vst.msk [vmem:[#allocation4 + $0x98] sm:$0xff] %vm542_vm0, %v6264_v11 }
  0x7f   : > { %799 = vrot.lane.b32.xlu0 %v715_v63, %s5404_s6  ;;  %v6278_v3 = vmul.f32 %v499_v56, %v5687_v1  ;;  %v405_v36 = vadd.f32 %v5311_v21, %v5714_v13  ;;  %v5324_v14 = vand.u32 2147483647, %v5323_v20  ;;  %v5328_v7 = vand.u32 2147483647, %v6260_v54  ;;  %v311_v21 = vld [vmem:[%s5702_s11 + $0xe0] sm:$0xff] }
  0x80   : > { %v500_v4 = vsub.f32 %v468_v57, %v5714_v13  ;;  %v5319_v22 = vsel %vm6248_vm11, %v5318_v27, %v6191_v34  ;;  %vm6286_vm12 = vcmp.lt.f32.partialorder %v5320_v52, 8388608.0  ;;  %v5330_v42 = vcvt.f32.s32 %v6260_v54  ;;  %v6302_v27 = vld [vmem:[#allocation2 + $0xf0] sm:$0xff] }
  0x81   : > { %8503 = vst [vmem:[#allocation28_spill] sm:$0xff] %v6278_v3  ;;  %v716_v45 = vld [vmem:[#allocation2 + $0xf9] sm:$0xff]  ;;  %620 = vst.msk [vmem:[#allocation2 + $0x111] sm:$0xff] %vm542_vm0, %v6278_v3  ;;  %v437_v46 = vmax.f32 %v405_v36, 0.0  ;;  %v406_v56 = vadd.f32 %v5319_v22, %v5714_v13  ;;  %v5326_v20 = vor.u32 %v5325_v60, %v5324_v14  ;;  %v5333_v63 = vand.u32 2147483648, %v6260_v54 }
  0x82   : > { %801 = vrot.lane.b32.xlu1 %v716_v45, %s5404_s6  ;;  %v6297_v34 = vmul.f32 %v500_v4, %v5687_v1  ;;  %v5331_v29 = vcvt.s32.f32 %v5330_v42  ;;  %v5336_v52 = vand.u32 2147483647, %v6270_v28  ;;  %v5338_v57 = vcvt.f32.s32 %v6270_v28  ;;  %v6304_v36 = vld [vmem:[#allocation2 + $0xf8] sm:$0xff]  ;;  %v312_v4 = vld [vmem:[%s5702_s11 + $0xe8] sm:$0xff]  ;;  %683 = vst.msk [vmem:[#allocation4 + $0xa0] sm:$0xff] %vm542_vm0, %v6302_v27 }
  0x83   : > { %v469_v3 = vmin.f32 %v437_v46, 255.0  ;;  %v438_v22 = vmax.f32 %v406_v56, 0.0  ;;  %v5327_v60 = vsel %vm6286_vm12, %v5326_v20, %v6205_v39  ;;  %vm6309_vm13 = vcmp.lt.f32.partialorder %v5328_v7, 8388608.0  ;;  %684 = vst.msk [vmem:[#allocation4 + $0xa8] sm:$0xff] %vm542_vm0, %v6304_v36  ;;  %v6574_v62 = vld [vmem:[#allocation2 + $0xf2] sm:$0xff] }
  0x84   : > { %8506 = vst [vmem:[#allocation29_spill] sm:$0xff] %v6297_v34  ;;  %v717_v42 = vld [vmem:[#allocation2 + $0x109] sm:$0xff]  ;;  %621 = vst.msk [vmem:[#allocation2 + $0x121] sm:$0xff] %vm542_vm0, %v6297_v34  ;;  %v407_v45 = vadd.f32 %v5327_v60, %v5714_v13  ;;  %v5332_v46 = vand.u32 2147483647, %v5331_v29  ;;  %v5339_v55 = vcvt.s32.f32 %v5338_v57  ;;  %v5341_v39 = vand.u32 2147483648, %v6270_v28 }
  0x85   : > { %803 = vrot.lane.b32.xlu0 %v717_v42, %s5404_s6  ;;  %v501_v7 = vsub.f32 %v469_v3, %v5714_v13  ;;  %v470_v56 = vmin.f32 %v438_v22, 255.0  ;;  %vm6324_vm14 = vcmp.lt.f32.partialorder %v5336_v52, 8388608.0  ;;  %v345_v23 = vmul.f32 %v5712_v12, %v311_v21  ;;  %v6329_v5 = vld [vmem:[#allocation2 + $0x108] sm:$0xff] }
  0x86   : > { %v439_v34 = vmax.f32 %v407_v45, 0.0  ;;  %v5334_v16 = vor.u32 %v5333_v63, %v5332_v46  ;;  %v5340_v60 = vand.u32 2147483647, %v5339_v55  ;;  %v6332_v29 = vmul.f32 %v5712_v12, %v312_v4  ;;  %685 = vst.msk [vmem:[#allocation4 + $0xb0] sm:$0xff] %vm542_vm0, %v6329_v5 }
  0x87   : > { %v6337_v3 = vmul.f32 %v501_v7, %v5687_v1  ;;  %v502_v52 = vsub.f32 %v470_v56, %v5714_v13  ;;  %v5344_v57 = vand.u32 2147483647, %v345_v23  ;;  %v5346_v22 = vcvt.f32.s32 %v345_v23  ;;  %v313_v56 = vld [vmem:[%s5702_s11 + $0xf0] sm:$0xff] }
  0x88   : > { %v718_v21 = vld [vmem:[#allocation2 + $0x111] sm:$0xff]  ;;  %v471_v42 = vmin.f32 %v439_v34, 255.0  ;;  %v5335_v63 = vsel %vm6309_vm13, %v5334_v16, %v6260_v54  ;;  %v5342_v4 = vor.u32 %v5341_v39, %v5340_v60  ;;  %vm855_vm15 = vcmask 64544   ;;  %v760_v19 = vpop.permute.xlu0 %759 }
  0x89   : > { %8511 = vst [vmem:[#allocation30_spill] sm:$0xff] %v6337_v3  ;;  %805 = vrot.lane.b32.xlu1 %v718_v21, %s5404_s6  ;;  %622 = vst.msk [vmem:[#allocation2 + $0x129] sm:$0xff] %vm542_vm0, %v6337_v3  ;;  %v6347_v45 = vmul.f32 %v502_v52, %v5687_v1  ;;  %v408_v46 = vadd.f32 %v5335_v63, %v5714_v13  ;;  %v5347_v55 = vcvt.s32.f32 %v5346_v22  ;;  %v5349_v7 = vand.u32 2147483648, %v345_v23  ;;  %v6350_v34 = vld [vmem:[#allocation2 + $0x110] sm:$0xff]  ;;  %v314_v60 = vld [vmem:[%s5702_s11 + $0xf8] sm:$0xff] }
  0x8a   : > { %v503_v16 = vsub.f32 %v471_v42, %v5714_v13  ;;  %v5343_v54 = vsel %vm6324_vm14, %v5342_v4, %v6270_v28  ;;  %v5352_v14 = vand.u32 2147483647, %v6332_v29  ;;  %v5354_v39 = vcvt.f32.s32 %v6332_v29  ;;  %686 = vst.msk [vmem:[#allocation4 + $0xb8] sm:$0xff] %vm542_vm0, %v6350_v34  ;;  %v6583_v53 = vld [vmem:[#allocation2 + $0x10a] sm:$0xff] }
  0x8b   : > { %8512 = vst [vmem:[#allocation31_spill] sm:$0xff] %v6347_v45  ;;  %v719_v52 = vld [vmem:[#allocation2 + $0x121] sm:$0xff]  ;;  %623 = vst.msk [vmem:[#allocation2 + $0x139] sm:$0xff] %vm542_vm0, %v6347_v45  ;;  %v440_v22 = vmax.f32 %v408_v46, 0.0  ;;  %v409_v21 = vadd.f32 %v5343_v54, %v5714_v13  ;;  %vm6365_vm1 = vcmp.lt.f32.partialorder %v5344_v57, 8388608.0  ;;  %v5357_v3 = vand.u32 2147483648, %v6332_v29 }
  0x8c   : > { %v5348_v28 = vand.u32 2147483647, %v5347_v55  ;;  %v6369_v20 = vld [vmem:[#allocation2 + $0x120] sm:$0xff]  ;;  %807 = vrot.lane.b32.xlu0 %v719_v52, %s5404_s6  ;;  %v6373_v63 = vmul.f32 %v503_v16, %v5687_v1  ;;  %v5355_v4 = vcvt.s32.f32 %v5354_v39  ;;  %v347_v46 = vmul.f32 %v5712_v12, %v313_v56  ;;  %856 = vst.msk [vmem:[#allocation4] sm:$0xff] %vm855_vm15, %v760_v19  ;;  %8529 = vst [vmem:[#allocation42_spill] sm:$0xff] %v6583_v53 }
  0x8d   : > { %687 = vst.msk [vmem:[#allocation4 + $0xc0] sm:$0xff] %vm542_vm0, %v6369_v20  ;;  %v472_v57 = vmin.f32 %v440_v22, 255.0  ;;  %v441_v54 = vmax.f32 %v409_v21, 0.0  ;;  %v348_v55 = vmul.f32 %v5712_v12, %v314_v60  ;;  %vm6385_vm2 = vcmp.lt.f32.partialorder %v5352_v14, 8388608.0 }
  0x8e   : > { %8515 = vst [vmem:[#allocation32_spill] sm:$0xff] %v6373_v63  ;;  %v5350_v45 = vor.u32 %v5349_v7, %v5348_v28  ;;  %624 = vst.msk [vmem:[#allocation2 + $0x141] sm:$0xff] %vm542_vm0, %v6373_v63  ;;  %v5356_v52 = vand.u32 2147483647, %v5355_v4  ;;  %v5360_v16 = vand.u32 2147483647, %v347_v46  ;;  %v5362_v0 = vcvt.f32.s32 %v347_v46 }
  0x8f   : > { %v504_v39 = vsub.f32 %v472_v57, %v5714_v13  ;;  %v473_v40 = vmin.f32 %v441_v54, 255.0  ;;  %v5365_v21 = vand.u32 2147483648, %v347_v46  ;;  %v5368_v14 = vand.u32 2147483647, %v348_v55 }
  0x90   : > { %v5351_v33 = vsel %vm6365_vm1, %v5350_v45, %v345_v23  ;;  %v6390_v12 = vld [vmem:[#allocation2 + $0x129] sm:$0xff]  ;;  %v5358_v60 = vor.u32 %v5357_v3, %v5356_v52  ;;  %v5363_v22 = vcvt.s32.f32 %v5362_v0  ;;  %v5370_v42 = vcvt.f32.s32 %v348_v55 }
  0x91   : > { %v410_v7 = vadd.f32 %v5351_v33, %v5714_v13  ;;  %809 = vrot.lane.b32.xlu1 %v6390_v12, %s5404_s6  ;;  %v6396_v28 = vmul.f32 %v504_v39, %v5687_v1  ;;  %v505_v23 = vsub.f32 %v473_v40, %v5714_v13  ;;  %v6399_v45 = vld [vmem:[#allocation2 + $0x128] sm:$0xff]  ;;  %vm6410_vm3 = vcmp.lt.f32.partialorder %v5360_v16, 8388608.0 }
  0x92   : > { %v6401_v19 = vld [vmem:[#allocation2 + $0x139] sm:$0xff]  ;;  %v5359_v33 = vsel %vm6385_vm2, %v5358_v60, %v6332_v29  ;;  %688 = vst.msk [vmem:[#allocation4 + $0xc8] sm:$0xff] %vm542_vm0, %v6399_v45  ;;  %v5364_v40 = vand.u32 2147483647, %v5363_v22  ;;  %v5371_v52 = vcvt.s32.f32 %v5370_v42  ;;  %v5373_v16 = vand.u32 2147483648, %v348_v55  ;;  %v6593_v48 = vld [vmem:[#allocation2 + $0x122] sm:$0xff] }
  0x93   : > { %8518 = vst [vmem:[#allocation33_spill] sm:$0xff] %v6396_v28  ;;  %v442_v4 = vmax.f32 %v410_v7, 0.0  ;;  %v6408_v3 = vld [vmem:[#allocation2 + $0x138] sm:$0xff]  ;;  %811 = vrot.lane.b32.xlu0 %v6401_v19, %s5404_s6  ;;  %625 = vst.msk [vmem:[#allocation2 + $0x151] sm:$0xff] %vm542_vm0, %v6396_v28  ;;  %v6419_v54 = vmul.f32 %v505_v23, %v5687_v1  ;;  %v411_v29 = vadd.f32 %v5359_v33, %v5714_v13  ;;  %vm5369_vm4 = vcmp.lt.f32.partialorder %v5368_v14, 8388608.0 }
  0x94   : > { %689 = vst.msk [vmem:[#allocation4 + $0xd0] sm:$0xff] %vm542_vm0, %v6408_v3  ;;  %v5366_v56 = vor.u32 %v5365_v21, %v5364_v40  ;;  %v5372_v22 = vand.u32 2147483647, %v5371_v52  ;;  %8531 = vst [vmem:[#allocation44_spill] sm:$0xff] %v6593_v48  ;;  %vm1048_vm5 = vcmask 97344   ;;  %vm1241_vm6 = vcmask 130144  }
  0x95   : > { %8521 = vst [vmem:[#allocation34_spill] sm:$0xff] %v6419_v54  ;;  %v474_v39 = vmin.f32 %v442_v4, 255.0  ;;  %v6425_v7 = vld [vmem:[#allocation2 + $0x141] sm:$0xff]  ;;  %626 = vst.msk [vmem:[#allocation2 + $0x159] sm:$0xff] %vm542_vm0, %v6419_v54  ;;  %v443_v60 = vmax.f32 %v411_v29, 0.0  ;;  %v6537_v54 = vld [vmem:[#allocation2 + $0x92] sm:$0xff] }
  0x96   : > { %813 = vrot.lane.b32.xlu1 %v6425_v7, %s5404_s6  ;;  %v6432_v33 = vld [vmem:[#allocation2 + $0x140] sm:$0xff]  ;;  %v5367_v42 = vsel %vm6410_vm3, %v5366_v56, %v347_v46  ;;  %vm1434_vm7 = vcmask 162944   ;;  %vm1627_vm8 = vcmask 195744   ;;  %vm2381_vm9 = vcmask 1043456  }
  0x97   : > { %v506_v23 = vsub.f32 %v474_v39, %v5714_v13  ;;  %v475_v4 = vmin.f32 %v443_v60, 255.0  ;;  %690 = vst.msk [vmem:[#allocation4 + $0xd8] sm:$0xff] %vm542_vm0, %v6432_v33  ;;  %v412_v21 = vadd.f32 %v5367_v42, %v5714_v13  ;;  %v6602_v37 = vld [vmem:[#allocation2 + $0x13a] sm:$0xff]  ;;  %vm1821_vm10 = vcmask 228544  }
  0x98   : > { %8533 = vst [vmem:[#allocation46_spill] sm:$0xff] %v6602_v37  ;;  %vm2014_vm11 = vcmask 261344   ;;  %vm2207_vm12 = vcmask 294144   ;;  %vm2284_vm13 = vcmask 293888  }
  0x99   : > { %v6440_v40 = vmul.f32 %v506_v23, %v5687_v1  ;;  %v507_v29 = vsub.f32 %v475_v4, %v5714_v13  ;;  %v444_v52 = vmax.f32 %v412_v21, 0.0 }
  0x9a   : > { %v6443_v28 = vld [vmem:[#allocation2 + $0x151] sm:$0xff] }
  0x9b   : > { %8522 = vst [vmem:[#allocation35_spill] sm:$0xff] %v6440_v40  ;;  %627 = vst.msk [vmem:[#allocation2 + $0x169] sm:$0xff] %vm542_vm0, %v6440_v40  ;;  %v6447_v46 = vld [vmem:[#allocation2 + $0x150] sm:$0xff]  ;;  %815 = vrot.lane.b32.xlu0 %v6443_v28, %s5404_s6  ;;  %v6453_v57 = vmul.f32 %v507_v29, %v5687_v1 }
  0x9c   : > { %691 = vst.msk [vmem:[#allocation4 + $0xe0] sm:$0xff] %vm542_vm0, %v6447_v46  ;;  %v6463_v60 = vld [vmem:[#allocation2 + $0x158] sm:$0xff] }
  0x9d   : > { %8523 = vst [vmem:[#allocation36_spill] sm:$0xff] %v6453_v57  ;;  %628 = vst.msk [vmem:[#allocation2 + $0x171] sm:$0xff] %vm542_vm0, %v6453_v57  ;;  %v6534_v57 = vld [vmem:[#allocation2 + $0x82] sm:$0xff] }
  0x9e   : > { %8524 = vst [vmem:[#allocation37_spill] sm:$0xff] %v6463_v60  ;;  %692 = vst.msk [vmem:[#allocation4 + $0xe8] sm:$0xff] %vm542_vm0, %v6463_v60 }
  0xa2   : > { %v6472_v21 = vld [vmem:[#allocation2 + $0x169] sm:$0xff] }
  0xa3   : > { %819 = vrot.lane.b32.xlu0 %v6472_v21, %s5404_s6 }
  0xac   : > { %v762_v0 = vpop.permute.xlu0 %761 }
  0xad   : > { %857 = vst.msk [vmem:[#allocation4 + $0x8] sm:$0xff] %vm855_vm15, %v762_v0  ;;  %v5374_v0 = vor.u32 %v5373_v16, %v5372_v22  ;;  %v476_v16 = vmin.f32 %v444_v52, 255.0  ;;  %v888_v52 = vld [vmem:[#allocation2 + $0x2] sm:$0xff] }
  0xae   : > { %952 = vrot.lane.b32.xlu0 %v888_v52, %s5405_s12  ;;  %v6519_v52 = vld [vmem:[#allocation2 + $0x62] sm:$0xff] }
  0xaf   : > { %v5375_v39 = vsel %vm5369_vm4, %v5374_v0, %v348_v55  ;;  %v6457_v55 = vld [vmem:[#allocation2 + $0x159] sm:$0xff]  ;;  %v508_v22 = vsub.f32 %v476_v16, %v5714_v13  ;;  %v6474_v0 = vld [vmem:[#allocation2 + $0x168] sm:$0xff] }
  0xb0   : > { %v413_v14 = vadd.f32 %v5375_v39, %v5714_v13  ;;  %817 = vrot.lane.b32.xlu1 %v6457_v55, %s5404_s6  ;;  %8526 = vst [vmem:[#allocation39_spill] sm:$0xff] %v6474_v0  ;;  %693 = vst.msk [vmem:[#allocation4 + $0xf0] sm:$0xff] %vm542_vm0, %v6474_v0  ;;  %v6485_v39 = vld [vmem:[#allocation2 + $0x171] sm:$0xff]  ;;  %v6501_v16 = vld [vmem:[#allocation2 + $0x22] sm:$0xff] }
  0xb1   : > { %v6469_v42 = vmul.f32 %v508_v22, %v5687_v1  ;;  %v6509_v22 = vld [vmem:[#allocation2 + $0x3a] sm:$0xff] }
  0xb2   : > { %v445_v56 = vmax.f32 %v413_v14, 0.0  ;;  %v889_v14 = vld [vmem:[#allocation2 + $0xa] sm:$0xff] }
  0xb3   : > { %8525 = vst [vmem:[#allocation38_spill] sm:$0xff] %v6469_v42  ;;  %629 = vst.msk [vmem:[#allocation2 + $0x181] sm:$0xff] %vm542_vm0, %v6469_v42  ;;  %v6527_v42 = vld [vmem:[#allocation2 + $0x7a] sm:$0xff] }
  0xb4   : > { %v477_v23 = vmin.f32 %v445_v56, 255.0  ;;  %821 = vrot.lane.b32.xlu1 %v6485_v39, %s5404_s6  ;;  %v6503_v56 = vld [vmem:[#allocation2 + $0x32] sm:$0xff] }
  0xb6   : > { %v509_v4 = vsub.f32 %v477_v23, %v5714_v13  ;;  %v6491_v13 = vld [vmem:[#allocation2 + $0x170] sm:$0xff] }
  0xb7   : > { %8528 = vst [vmem:[#allocation41_spill] sm:$0xff] %v6491_v13  ;;  %694 = vst.msk [vmem:[#allocation4 + $0xf8] sm:$0xff] %vm542_vm0, %v6491_v13  ;;  %v6511_v23 = vld [vmem:[#allocation2 + $0x4a] sm:$0xff] }
  0xb8   : > { %v6483_v29 = vmul.f32 %v509_v4, %v5687_v1  ;;  %v6496_v1 = vld [vmem:[#allocation2 + $0x1a] sm:$0xff]  ;;  %954 = vrot.lane.b32.xlu1 %v889_v14, %s5405_s12  ;;  %v6517_v4 = vld [vmem:[#allocation2 + $0x52] sm:$0xff]  ;;  %v6525_v14 = vld [vmem:[#allocation2 + $0x6a] sm:$0xff] }
  0xb9   : > { %956 = vrot.lane.b32.xlu0 %v6496_v1, %s5405_s12 }
  0xba   : > { %8527 = vst [vmem:[#allocation40_spill] sm:$0xff] %v6483_v29  ;;  %630 = vst.msk [vmem:[#allocation2 + $0x189] sm:$0xff] %vm542_vm0, %v6483_v29 }
  0xbc   : > { %958 = vrot.lane.b32.xlu1 %v6501_v16, %s5405_s12 }
  0xbd   : > { %960 = vrot.lane.b32.xlu0 %v6503_v56, %s5405_s12 }
  0xbf   : > { %v768_v40 = vpop.permute.xlu0 %767 }
  0xc0   : > { %962 = vrot.lane.b32.xlu1 %v6509_v22, %s5405_s12  ;;  %860 = vst.msk [vmem:[#allocation4 + $0x20] sm:$0xff] %vm855_vm15, %v768_v40  ;;  %v6556_v40 = vld [vmem:[#allocation2 + $0xc2] sm:$0xff] }
  0xc1   : > { %964 = vrot.lane.b32.xlu0 %v6511_v23, %s5405_s12 }
  0xc3   : > { %v764_v29 = vpop.permute.xlu1 %763  ;;  %v772_v61 = vpop.permute.xlu0 %771 }
  0xc4   : > { %966 = vrot.lane.b32.xlu1 %v6517_v4, %s5405_s12  ;;  %858 = vst.msk [vmem:[#allocation4 + $0x10] sm:$0xff] %vm855_vm15, %v764_v29  ;;  %v6544_v29 = vld [vmem:[#allocation2 + $0x9a] sm:$0xff]  ;;  %862 = vst.msk [vmem:[#allocation4 + $0x30] sm:$0xff] %vm855_vm15, %v772_v61 }
  0xc5   : > { %968 = vrot.lane.b32.xlu0 %v6519_v52, %s5405_s12 }
  0xc7   : > { %v766_v63 = vpop.permute.xlu1 %765 }
  0xc8   : > { %970 = vrot.lane.b32.xlu1 %v6525_v14, %s5405_s12  ;;  %859 = vst.msk [vmem:[#allocation4 + $0x18] sm:$0xff] %vm855_vm15, %v766_v63  ;;  %v6554_v63 = vld [vmem:[#allocation2 + $0xb2] sm:$0xff]  ;;  %v776_v61 = vpop.permute.xlu0 %775 }
  0xc9   : > { %972 = vrot.lane.b32.xlu0 %v6527_v42, %s5405_s12  ;;  %864 = vst.msk [vmem:[#allocation4 + $0x40] sm:$0xff] %vm855_vm15, %v776_v61  ;;  %v6581_v61 = vld [vmem:[#allocation2 + $0xfa] sm:$0xff] }
  0xcb   : > { %v770_v2 = vpop.permute.xlu1 %769 }
  0xcc   : > { %974 = vrot.lane.b32.xlu1 %v6534_v57, %s5405_s12  ;;  %861 = vst.msk [vmem:[#allocation4 + $0x28] sm:$0xff] %vm855_vm15, %v770_v2  ;;  %v6566_v2 = vld [vmem:[#allocation2 + $0xda] sm:$0xff]  ;;  %v780_v6 = vpop.permute.xlu0 %779 }
  0xcd   : > { %976 = vrot.lane.b32.xlu0 %v6537_v54, %s5405_s12  ;;  %866 = vst.msk [vmem:[#allocation4 + $0x50] sm:$0xff] %vm855_vm15, %v780_v6  ;;  %v6600_v6 = vld [vmem:[#allocation2 + $0x12a] sm:$0xff] }
  0xce   : > { %8532 = vst [vmem:[#allocation45_spill] sm:$0xff] %v6600_v6 }
  0xcf   : > { %v774_v25 = vpop.permute.xlu1 %773 }
  0xd0   : > { %978 = vrot.lane.b32.xlu1 %v6544_v29, %s5405_s12  ;;  %863 = vst.msk [vmem:[#allocation4 + $0x38] sm:$0xff] %vm855_vm15, %v774_v25 }
  0xd1   : > { %980 = vrot.lane.b32.xlu0 %v6547_v49, %s5405_s12 }
  0xd3   : > { %v778_v25 = vpop.permute.xlu1 %777 }
  0xd4   : > { %982 = vrot.lane.b32.xlu1 %v6554_v63, %s5405_s12  ;;  %865 = vst.msk [vmem:[#allocation4 + $0x48] sm:$0xff] %vm855_vm15, %v778_v25  ;;  %v6590_v25 = vld [vmem:[#allocation2 + $0x112] sm:$0xff] }
  0xd5   : > { %984 = vrot.lane.b32.xlu0 %v6556_v40, %s5405_s12  ;;  %8530 = vst [vmem:[#allocation43_spill] sm:$0xff] %v6590_v25 }
  0xd7   : > { %v782_v38 = vpop.permute.xlu1 %781  ;;  %v784_v32 = vpop.permute.xlu0 %783 }
  0xd8   : > { %986 = vrot.lane.b32.xlu1 %v6563_v31, %s5405_s12  ;;  %867 = vst.msk [vmem:[#allocation4 + $0x58] sm:$0xff] %vm855_vm15, %v782_v38  ;;  %868 = vst.msk [vmem:[#allocation4 + $0x60] sm:$0xff] %vm855_vm15, %v784_v32  ;;  %v6609_v38 = vld [vmem:[#allocation2 + $0x142] sm:$0xff] }
  0xd9   : > { %988 = vrot.lane.b32.xlu0 %v6566_v2, %s5405_s12 }
  0xdb   : > { %v788_v32 = vpop.permute.xlu0 %787 }
  0xdc   : > { %990 = vrot.lane.b32.xlu1 %v6572_v18, %s5405_s12  ;;  %870 = vst.msk [vmem:[#allocation4 + $0x70] sm:$0xff] %vm855_vm15, %v788_v32  ;;  %v6627_v32 = vld [vmem:[#allocation2 + $0x172] sm:$0xff] }
  0xdd   : > { %992 = vrot.lane.b32.xlu0 %v6574_v62, %s5405_s12 }
  0xe0   : > { %994 = vrot.lane.b32.xlu1 %v6581_v61, %s5405_s12 }
  0xe1   : > { %996 = vrot.lane.b32.xlu0 %v6583_v53, %s5405_s12  ;;  %v786_v53 = vpop.permute.xlu1 %785 }
  0xe2   : > { %869 = vst.msk [vmem:[#allocation4 + $0x68] sm:$0xff] %vm855_vm15, %v786_v53  ;;  %v6618_v53 = vld [vmem:[#allocation2 + $0x15a] sm:$0xff] }
  0xe4   : > { %998 = vrot.lane.b32.xlu1 %v6590_v25, %s5405_s12  ;;  %v6611_v25 = vld [vmem:[#allocation2 + $0x152] sm:$0xff] }
  0xe5   : > { %1000 = vrot.lane.b32.xlu0 %v6593_v48, %s5405_s12  ;;  %8534 = vst [vmem:[#allocation47_spill] sm:$0xff] %v6611_v25  ;;  %v6620_v48 = vld [vmem:[#allocation2 + $0x16a] sm:$0xff] }
  0xe8   : > { %1002 = vrot.lane.b32.xlu1 %v6600_v6, %s5405_s12  ;;  %v790_v6 = vpop.permute.xlu1 %789 }
  0xe9   : > { %1004 = vrot.lane.b32.xlu0 %v6602_v37, %s5405_s12  ;;  %871 = vst.msk [vmem:[#allocation4 + $0x78] sm:$0xff] %vm855_vm15, %v790_v6  ;;  %v792_v37 = vpop.permute.xlu0 %791 }
  0xea   : > { %872 = vst.msk [vmem:[#allocation4 + $0x80] sm:$0xff] %vm855_vm15, %v792_v37 }
  0xec   : > { %1006 = vrot.lane.b32.xlu1 %v6609_v38, %s5405_s12 }
  0xed   : > { %1008 = vrot.lane.b32.xlu0 %v6611_v25, %s5405_s12  ;;  %v794_v25 = vpop.permute.xlu1 %793  ;;  %v796_v6 = vpop.permute.xlu0 %795 }
  0xee   : > { %873 = vst.msk [vmem:[#allocation4 + $0x88] sm:$0xff] %vm855_vm15, %v794_v25  ;;  %874 = vst.msk [vmem:[#allocation4 + $0x90] sm:$0xff] %vm855_vm15, %v796_v6 }
  0xf0   : > { %1010 = vrot.lane.b32.xlu1 %v6618_v53, %s5405_s12 }
  0xf1   : > { %1012 = vrot.lane.b32.xlu0 %v6620_v48, %s5405_s12  ;;  %v798_v37 = vpop.permute.xlu1 %797 }
  0xf2   : > { %875 = vst.msk [vmem:[#allocation4 + $0x98] sm:$0xff] %vm855_vm15, %v798_v37 }
  0xf4   : > { %1014 = vrot.lane.b32.xlu1 %v6627_v32, %s5405_s12 }
  0xf5   : > { %1145 = vrot.lane.b32.xlu0 %v5970_v58, %s5406_s13  ;;  %v800_v58 = vpop.permute.xlu0 %799 }
  0xf6   : > { %876 = vst.msk [vmem:[#allocation4 + $0xa0] sm:$0xff] %vm855_vm15, %v800_v58 }
  0xf8   : > { %1147 = vrot.lane.b32.xlu1 %v6002_v24, %s5406_s13  ;;  %v802_v24 = vpop.permute.xlu1 %801 }
  0xf9   : > { %1149 = vrot.lane.b32.xlu0 %v6037_v50, %s5406_s13  ;;  %877 = vst.msk [vmem:[#allocation4 + $0xa8] sm:$0xff] %vm855_vm15, %v802_v24  ;;  %v804_v25 = vpop.permute.xlu0 %803 }
  0xfa   : > { %878 = vst.msk [vmem:[#allocation4 + $0xb0] sm:$0xff] %vm855_vm15, %v804_v25 }
  0xfc   : > { %1151 = vrot.lane.b32.xlu1 %v6039_v30, %s5406_s13  ;;  %v806_v6 = vpop.permute.xlu1 %805 }
  0xfd   : > { %1153 = vrot.lane.b32.xlu0 %v6065_v15, %s5406_s13  ;;  %879 = vst.msk [vmem:[#allocation4 + $0xb8] sm:$0xff] %vm855_vm15, %v806_v6 }
  0xfe   : > { %v808_v37 = vpop.permute.xlu0 %807 }
  0xff   : > { %880 = vst.msk [vmem:[#allocation4 + $0xc0] sm:$0xff] %vm855_vm15, %v808_v37 }
 0x100   : > { %1155 = vrot.lane.b32.xlu1 %v6067_v8, %s5406_s13 }
 0x101   : > { %1157 = vrot.lane.b32.xlu0 %v6103_v43, %s5406_s13 }
 0x103   : > { %v810_v58 = vpop.permute.xlu1 %809 }
 0x104   : > { %1159 = vrot.lane.b32.xlu1 %v6105_v44, %s5406_s13  ;;  %881 = vst.msk [vmem:[#allocation4 + $0xc8] sm:$0xff] %vm855_vm15, %v810_v58 }
 0x105   : > { %1161 = vrot.lane.b32.xlu0 %v6137_v17, %s5406_s13  ;;  %v812_v24 = vpop.permute.xlu0 %811 }
 0x106   : > { %882 = vst.msk [vmem:[#allocation4 + $0xd0] sm:$0xff] %vm855_vm15, %v812_v24 }
 0x108   : > { %1163 = vrot.lane.b32.xlu1 %v6139_v26, %s5406_s13  ;;  %v814_v25 = vpop.permute.xlu1 %813 }
 0x109   : > { %1165 = vrot.lane.b32.xlu0 %v6165_v47, %s5406_s13  ;;  %883 = vst.msk [vmem:[#allocation4 + $0xd8] sm:$0xff] %vm855_vm15, %v814_v25 }
 0x10c   : > { %1167 = vrot.lane.b32.xlu1 %v6167_v51, %s5406_s13 }
 0x10d   : > { %1169 = vrot.lane.b32.xlu0 %v6197_v35, %s5406_s13  ;;  %v816_v6 = vpop.permute.xlu0 %815 }
 0x10e   : > { %884 = vst.msk [vmem:[#allocation4 + $0xe0] sm:$0xff] %vm855_vm15, %v816_v6 }
 0x110   : > { %1171 = vrot.lane.b32.xlu1 %v6209_v41, %s5406_s13 }
 0x111   : > { %1173 = vrot.lane.b32.xlu0 %v6231_v9, %s5406_s13 }
 0x114   : > { %1175 = vrot.lane.b32.xlu1 %v6233_v10, %s5406_s13 }
 0x115   : > { %1177 = vrot.lane.b32.xlu0 %v6262_v59, %s5406_s13  ;;  %v820_v58 = vpop.permute.xlu0 %819 }
 0x116   : > { %886 = vst.msk [vmem:[#allocation4 + $0xf0] sm:$0xff] %vm855_vm15, %v820_v58 }
 0x118   : > { %1179 = vrot.lane.b32.xlu1 %v6264_v11, %s5406_s13 }
 0x119   : > { %1181 = vrot.lane.b32.xlu0 %v6302_v27, %s5406_s13 }
 0x11c   : > { %1183 = vrot.lane.b32.xlu1 %v6304_v36, %s5406_s13 }
 0x11d   : > { %1185 = vrot.lane.b32.xlu0 %v6329_v5, %s5406_s13 }
 0x120   : > { %1187 = vrot.lane.b32.xlu1 %v6350_v34, %s5406_s13  ;;  %v953_v25 = vpop.permute.xlu0 %952 }
 0x121   : > { %1189 = vrot.lane.b32.xlu0 %v6369_v20, %s5406_s13  ;;  %1049 = vst.msk [vmem:[#allocation4] sm:$0xff] %vm1048_vm5, %v953_v25 }
 0x122   : > { %v818_v37 = vpop.permute.xlu1 %817 }
 0x123   : > { %885 = vst.msk [vmem:[#allocation4 + $0xe8] sm:$0xff] %vm855_vm15, %v818_v37 }
 0x124   : > { %1191 = vrot.lane.b32.xlu1 %v6399_v45, %s5406_s13 }
 0x125   : > { %1193 = vrot.lane.b32.xlu0 %v6408_v3, %s5406_s13 }
 0x126   : > { %v822_v24 = vpop.permute.xlu1 %821 }
 0x127   : > { %887 = vst.msk [vmem:[#allocation4 + $0xf8] sm:$0xff] %vm855_vm15, %v822_v24  ;;  %v6708_v24 = vld [vmem:[#allocation2 + $0x180] sm:$0xff] }
 0x128   : > { %1195 = vrot.lane.b32.xlu1 %v6432_v33, %s5406_s13  ;;  %8535 = vst [vmem:[#allocation48_spill] sm:$0xff] %v6708_v24 }
 0x129   : > { %1197 = vrot.lane.b32.xlu0 %v6447_v46, %s5406_s13 }
 0x12a   : > { %v955_v6 = vpop.permute.xlu1 %954 }
 0x12b   : > { %1050 = vst.msk [vmem:[#allocation4 + $0x8] sm:$0xff] %vm1048_vm5, %v955_v6  ;;  %v957_v37 = vpop.permute.xlu0 %956  ;;  %v6716_v6 = vld [vmem:[#allocation2 + $0x188] sm:$0xff] }
 0x12c   : > { %1199 = vrot.lane.b32.xlu1 %v6463_v60, %s5406_s13  ;;  %1051 = vst.msk [vmem:[#allocation4 + $0x10] sm:$0xff] %vm1048_vm5, %v957_v37  ;;  %8536 = vst [vmem:[#allocation49_spill] sm:$0xff] %v6716_v6  ;;  %v1274_v60 = vld [vmem:[#allocation2 + $0x19] sm:$0xff] }
 0x12d   : > { %1201 = vrot.lane.b32.xlu0 %v6474_v0, %s5406_s13 }
 0x12e   : > { %v959_v58 = vpop.permute.xlu1 %958 }
 0x12f   : > { %1052 = vst.msk [vmem:[#allocation4 + $0x18] sm:$0xff] %vm1048_vm5, %v959_v58  ;;  %v961_v25 = vpop.permute.xlu0 %960  ;;  %v1275_v58 = vld [vmem:[#allocation2 + $0x21] sm:$0xff] }
 0x130   : > { %1203 = vrot.lane.b32.xlu1 %v6491_v13, %s5406_s13  ;;  %1053 = vst.msk [vmem:[#allocation4 + $0x20] sm:$0xff] %vm1048_vm5, %v961_v25  ;;  %v6723_v13 = vld [vmem:[#allocation2 + $0x31] sm:$0xff] }
 0x131   : > { %1205 = vrot.lane.b32.xlu0 %v6708_v24, %s5406_s13  ;;  %8537 = vst [vmem:[#allocation50_spill] sm:$0xff] %v6723_v13 }
 0x132   : > { %v963_v37 = vpop.permute.xlu1 %962 }
 0x133   : > { %1054 = vst.msk [vmem:[#allocation4 + $0x28] sm:$0xff] %vm1048_vm5, %v963_v37  ;;  %v965_v0 = vpop.permute.xlu0 %964  ;;  %v6730_v37 = vld [vmem:[#allocation2 + $0x39] sm:$0xff] }
 0x134   : > { %1207 = vrot.lane.b32.xlu1 %v6716_v6, %s5406_s13  ;;  %1055 = vst.msk [vmem:[#allocation4 + $0x30] sm:$0xff] %vm1048_vm5, %v965_v0  ;;  %8538 = vst [vmem:[#allocation51_spill] sm:$0xff] %v6730_v37  ;;  %v6732_v6 = vld [vmem:[#allocation2 + $0x49] sm:$0xff] }
 0x135   : > { %1338 = vrot.lane.b32.xlu0 %v1274_v60, %s5407_s14  ;;  %8539 = vst [vmem:[#allocation52_spill] sm:$0xff] %v6732_v6 }
 0x136   : > { %v967_v25 = vpop.permute.xlu1 %966 }
 0x137   : > { %1056 = vst.msk [vmem:[#allocation4 + $0x38] sm:$0xff] %vm1048_vm5, %v967_v25  ;;  %v969_v24 = vpop.permute.xlu0 %968  ;;  %v6742_v25 = vld [vmem:[#allocation2 + $0x61] sm:$0xff] }
 0x138   : > { %1340 = vrot.lane.b32.xlu1 %v1275_v58, %s5407_s14  ;;  %1057 = vst.msk [vmem:[#allocation4 + $0x40] sm:$0xff] %vm1048_vm5, %v969_v24  ;;  %v6740_v24 = vld [vmem:[#allocation2 + $0x51] sm:$0xff]  ;;  %8541 = vst [vmem:[#allocation54_spill] sm:$0xff] %v6742_v25 }
 0x139   : > { %1342 = vrot.lane.b32.xlu0 %v6723_v13, %s5407_s14  ;;  %8540 = vst [vmem:[#allocation53_spill] sm:$0xff] %v6740_v24 }
 0x13a   : > { %v971_v0 = vpop.permute.xlu1 %970 }
 0x13b   : > { %1058 = vst.msk [vmem:[#allocation4 + $0x48] sm:$0xff] %vm1048_vm5, %v971_v0  ;;  %v973_v60 = vpop.permute.xlu0 %972  ;;  %v6750_v0 = vld [vmem:[#allocation2 + $0x69] sm:$0xff] }
 0x13c   : > { %1344 = vrot.lane.b32.xlu1 %v6730_v37, %s5407_s14  ;;  %1059 = vst.msk [vmem:[#allocation4 + $0x50] sm:$0xff] %vm1048_vm5, %v973_v60  ;;  %8542 = vst [vmem:[#allocation55_spill] sm:$0xff] %v6750_v0 }
 0x13d   : > { %1346 = vrot.lane.b32.xlu0 %v6732_v6, %s5407_s14  ;;  %v6752_v6 = vld [vmem:[#allocation2 + $0x79] sm:$0xff] }
 0x13e   : > { %v975_v58 = vpop.permute.xlu1 %974  ;;  %8543 = vst [vmem:[#allocation56_spill] sm:$0xff] %v6752_v6 }
 0x13f   : > { %1060 = vst.msk [vmem:[#allocation4 + $0x58] sm:$0xff] %vm1048_vm5, %v975_v58  ;;  %v977_v13 = vpop.permute.xlu0 %976 }
 0x140   : > { %1348 = vrot.lane.b32.xlu1 %v6740_v24, %s5407_s14  ;;  %1061 = vst.msk [vmem:[#allocation4 + $0x60] sm:$0xff] %vm1048_vm5, %v977_v13  ;;  %v6760_v13 = vld [vmem:[#allocation2 + $0x81] sm:$0xff] }
 0x141   : > { %1350 = vrot.lane.b32.xlu0 %v6742_v25, %s5407_s14  ;;  %8544 = vst [vmem:[#allocation57_spill] sm:$0xff] %v6760_v13  ;;  %v6762_v25 = vld [vmem:[#allocation2 + $0x91] sm:$0xff] }
 0x142   : > { %v979_v60 = vpop.permute.xlu1 %978  ;;  %8545 = vst [vmem:[#allocation58_spill] sm:$0xff] %v6762_v25 }
 0x143   : > { %1062 = vst.msk [vmem:[#allocation4 + $0x68] sm:$0xff] %vm1048_vm5, %v979_v60  ;;  %v981_v37 = vpop.permute.xlu0 %980 }
 0x144   : > { %1352 = vrot.lane.b32.xlu1 %v6750_v0, %s5407_s14  ;;  %1063 = vst.msk [vmem:[#allocation4 + $0x70] sm:$0xff] %vm1048_vm5, %v981_v37  ;;  %v6770_v37 = vld [vmem:[#allocation2 + $0x99] sm:$0xff] }
 0x145   : > { %1354 = vrot.lane.b32.xlu0 %v6752_v6, %s5407_s14  ;;  %8546 = vst [vmem:[#allocation59_spill] sm:$0xff] %v6770_v37  ;;  %v6772_v6 = vld [vmem:[#allocation2 + $0xa9] sm:$0xff] }
 0x146   : > { %v983_v58 = vpop.permute.xlu1 %982  ;;  %8547 = vst [vmem:[#allocation60_spill] sm:$0xff] %v6772_v6 }
 0x147   : > { %1064 = vst.msk [vmem:[#allocation4 + $0x78] sm:$0xff] %vm1048_vm5, %v983_v58  ;;  %v985_v24 = vpop.permute.xlu0 %984 }
 0x148   : > { %1356 = vrot.lane.b32.xlu1 %v6760_v13, %s5407_s14  ;;  %1065 = vst.msk [vmem:[#allocation4 + $0x80] sm:$0xff] %vm1048_vm5, %v985_v24  ;;  %v6780_v24 = vld [vmem:[#allocation2 + $0xb1] sm:$0xff] }
 0x149   : > { %1358 = vrot.lane.b32.xlu0 %v6762_v25, %s5407_s14  ;;  %8548 = vst [vmem:[#allocation61_spill] sm:$0xff] %v6780_v24  ;;  %v6782_v25 = vld [vmem:[#allocation2 + $0xc1] sm:$0xff] }
 0x14a   : > { %v987_v60 = vpop.permute.xlu1 %986  ;;  %8549 = vst [vmem:[#allocation62_spill] sm:$0xff] %v6782_v25 }
 0x14b   : > { %1066 = vst.msk [vmem:[#allocation4 + $0x88] sm:$0xff] %vm1048_vm5, %v987_v60  ;;  %v989_v0 = vpop.permute.xlu0 %988 }
 0x14c   : > { %1360 = vrot.lane.b32.xlu1 %v6770_v37, %s5407_s14  ;;  %1067 = vst.msk [vmem:[#allocation4 + $0x90] sm:$0xff] %vm1048_vm5, %v989_v0  ;;  %v6790_v0 = vld [vmem:[#allocation2 + $0xc9] sm:$0xff] }
 0x14d   : > { %1362 = vrot.lane.b32.xlu0 %v6772_v6, %s5407_s14  ;;  %8550 = vst [vmem:[#allocation63_spill] sm:$0xff] %v6790_v0  ;;  %v6792_v6 = vld [vmem:[#allocation2 + $0xd9] sm:$0xff] }
 0x14e   : > { %v991_v58 = vpop.permute.xlu1 %990  ;;  %8551 = vst [vmem:[#allocation64_spill] sm:$0xff] %v6792_v6 }
 0x14f   : > { %1068 = vst.msk [vmem:[#allocation4 + $0x98] sm:$0xff] %vm1048_vm5, %v991_v58  ;;  %v993_v13 = vpop.permute.xlu0 %992 }
 0x150   : > { %1364 = vrot.lane.b32.xlu1 %v6780_v24, %s5407_s14  ;;  %1069 = vst.msk [vmem:[#allocation4 + $0xa0] sm:$0xff] %vm1048_vm5, %v993_v13  ;;  %v6800_v13 = vld [vmem:[#allocation2 + $0xe1] sm:$0xff] }
 0x151   : > { %1366 = vrot.lane.b32.xlu0 %v6782_v25, %s5407_s14  ;;  %8552 = vst [vmem:[#allocation65_spill] sm:$0xff] %v6800_v13  ;;  %v6802_v25 = vld [vmem:[#allocation2 + $0xf1] sm:$0xff] }
 0x152   : > { %v995_v60 = vpop.permute.xlu1 %994  ;;  %8553 = vst [vmem:[#allocation66_spill] sm:$0xff] %v6802_v25 }
 0x153   : > { %1070 = vst.msk [vmem:[#allocation4 + $0xa8] sm:$0xff] %vm1048_vm5, %v995_v60  ;;  %v997_v37 = vpop.permute.xlu0 %996 }
 0x154   : > { %1368 = vrot.lane.b32.xlu1 %v6790_v0, %s5407_s14  ;;  %1071 = vst.msk [vmem:[#allocation4 + $0xb0] sm:$0xff] %vm1048_vm5, %v997_v37  ;;  %v6810_v37 = vld [vmem:[#allocation2 + $0xf9] sm:$0xff] }
 0x155   : > { %1370 = vrot.lane.b32.xlu0 %v6792_v6, %s5407_s14  ;;  %v6812_v6 = vld [vmem:[#allocation2 + $0x109] sm:$0xff] }
 0x156   : > { %v999_v58 = vpop.permute.xlu1 %998 }
 0x157   : > { %1072 = vst.msk [vmem:[#allocation4 + $0xb8] sm:$0xff] %vm1048_vm5, %v999_v58  ;;  %v1001_v24 = vpop.permute.xlu0 %1000 }
 0x158   : > { %1372 = vrot.lane.b32.xlu1 %v6800_v13, %s5407_s14  ;;  %1073 = vst.msk [vmem:[#allocation4 + $0xc0] sm:$0xff] %vm1048_vm5, %v1001_v24  ;;  %v6820_v24 = vld [vmem:[#allocation2 + $0x111] sm:$0xff] }
 0x159   : > { %1374 = vrot.lane.b32.xlu0 %v6802_v25, %s5407_s14  ;;  %v6822_v25 = vld [vmem:[#allocation2 + $0x121] sm:$0xff] }
 0x15a   : > { %v1003_v60 = vpop.permute.xlu1 %1002 }
 0x15b   : > { %1074 = vst.msk [vmem:[#allocation4 + $0xc8] sm:$0xff] %vm1048_vm5, %v1003_v60  ;;  %v1005_v0 = vpop.permute.xlu0 %1004 }
 0x15c   : > { %1376 = vrot.lane.b32.xlu1 %v6810_v37, %s5407_s14  ;;  %1075 = vst.msk [vmem:[#allocation4 + $0xd0] sm:$0xff] %vm1048_vm5, %v1005_v0 }
 0x15d   : > { %1378 = vrot.lane.b32.xlu0 %v6812_v6, %s5407_s14 }
 0x15e   : > { %v1007_v58 = vpop.permute.xlu1 %1006 }
 0x15f   : > { %1076 = vst.msk [vmem:[#allocation4 + $0xd8] sm:$0xff] %vm1048_vm5, %v1007_v58  ;;  %v1009_v13 = vpop.permute.xlu0 %1008 }
 0x160   : > { %1380 = vrot.lane.b32.xlu1 %v6820_v24, %s5407_s14  ;;  %1077 = vst.msk [vmem:[#allocation4 + $0xe0] sm:$0xff] %vm1048_vm5, %v1009_v13 }
 0x161   : > { %1382 = vrot.lane.b32.xlu0 %v6822_v25, %s5407_s14 }
 0x162   : > { %v1011_v0 = vpop.permute.xlu1 %1010 }
 0x163   : > { %1078 = vst.msk [vmem:[#allocation4 + $0xe8] sm:$0xff] %vm1048_vm5, %v1011_v0  ;;  %v1013_v60 = vpop.permute.xlu0 %1012 }
 0x164   : > { %1384 = vrot.lane.b32.xlu1 %v6390_v12, %s5407_s14  ;;  %1079 = vst.msk [vmem:[#allocation4 + $0xf0] sm:$0xff] %vm1048_vm5, %v1013_v60  ;;  %v6848_v60 = vld [vmem:[#allocation2 + $0x181] sm:$0xff] }
 0x165   : > { %1386 = vrot.lane.b32.xlu0 %v6401_v19, %s5407_s14 }
 0x166   : > { %v1015_v58 = vpop.permute.xlu1 %1014 }
 0x167   : > { %1080 = vst.msk [vmem:[#allocation4 + $0xf8] sm:$0xff] %vm1048_vm5, %v1015_v58  ;;  %v1146_v13 = vpop.permute.xlu0 %1145 }
 0x168   : > { %1388 = vrot.lane.b32.xlu1 %v6425_v7, %s5407_s14  ;;  %1242 = vst.msk [vmem:[#allocation4] sm:$0xff] %vm1241_vm6, %v1146_v13 }
 0x169   : > { %1390 = vrot.lane.b32.xlu0 %v6443_v28, %s5407_s14  ;;  %v6856_v28 = vld [vmem:[#allocation2 + $0x189] sm:$0xff] }
 0x16a   : > { %v1148_v0 = vpop.permute.xlu1 %1147 }
 0x16b   : > { %1243 = vst.msk [vmem:[#allocation4 + $0x8] sm:$0xff] %vm1241_vm6, %v1148_v0  ;;  %v1150_v12 = vpop.permute.xlu0 %1149 }
 0x16c   : > { %1392 = vrot.lane.b32.xlu1 %v6457_v55, %s5407_s14  ;;  %1244 = vst.msk [vmem:[#allocation4 + $0x10] sm:$0xff] %vm1241_vm6, %v1150_v12 }
 0x16d   : > { %1394 = vrot.lane.b32.xlu0 %v6472_v21, %s5407_s14 }
 0x16e   : > { %v1152_v19 = vpop.permute.xlu1 %1151 }
 0x16f   : > { %1245 = vst.msk [vmem:[#allocation4 + $0x18] sm:$0xff] %vm1241_vm6, %v1152_v19  ;;  %v1154_v7 = vpop.permute.xlu0 %1153  ;;  %v8555_v19 = vld [vmem:[#allocation43_spill] sm:$0xff] }
 0x170   : > { %1396 = vrot.lane.b32.xlu1 %v6485_v39, %s5407_s14  ;;  %1246 = vst.msk [vmem:[#allocation4 + $0x20] sm:$0xff] %vm1241_vm6, %v1154_v7 }
 0x171   : > { %1398 = vrot.lane.b32.xlu0 %v6848_v60, %s5407_s14 }
 0x172   : > { %v1156_v55 = vpop.permute.xlu1 %1155 }
 0x173   : > { %1247 = vst.msk [vmem:[#allocation4 + $0x28] sm:$0xff] %vm1241_vm6, %v1156_v55  ;;  %v1158_v21 = vpop.permute.xlu0 %1157  ;;  %v8557_v55 = vld [vmem:[#allocation45_spill] sm:$0xff] }
 0x174   : > { %1400 = vrot.lane.b32.xlu1 %v6856_v28, %s5407_s14  ;;  %1248 = vst.msk [vmem:[#allocation4 + $0x30] sm:$0xff] %vm1241_vm6, %v1158_v21  ;;  %v8558_v21 = vld [vmem:[#allocation46_spill] sm:$0xff] }
 0x175   : > { %1531 = vrot.lane.b32.xlu0 %v6496_v1, %s5408_s15 }
 0x176   : > { %v1160_v39 = vpop.permute.xlu1 %1159 }
 0x177   : > { %1249 = vst.msk [vmem:[#allocation4 + $0x38] sm:$0xff] %vm1241_vm6, %v1160_v39  ;;  %v1162_v58 = vpop.permute.xlu0 %1161 }
 0x178   : > { %1533 = vrot.lane.b32.xlu1 %v6501_v16, %s5408_s15  ;;  %1250 = vst.msk [vmem:[#allocation4 + $0x40] sm:$0xff] %vm1241_vm6, %v1162_v58 }
 0x179   : > { %1535 = vrot.lane.b32.xlu0 %v6503_v56, %s5408_s15 }
 0x17a   : > { %v1164_v13 = vpop.permute.xlu1 %1163 }
 0x17b   : > { %1251 = vst.msk [vmem:[#allocation4 + $0x48] sm:$0xff] %vm1241_vm6, %v1164_v13  ;;  %v1166_v0 = vpop.permute.xlu0 %1165  ;;  %v8559_v13 = vld [vmem:[#allocation47_spill] sm:$0xff] }
 0x17c   : > { %1537 = vrot.lane.b32.xlu1 %v6509_v22, %s5408_s15  ;;  %1252 = vst.msk [vmem:[#allocation4 + $0x50] sm:$0xff] %vm1241_vm6, %v1166_v0 }
 0x17d   : > { %1539 = vrot.lane.b32.xlu0 %v6511_v23, %s5408_s15 }
 0x17e   : > { %v1168_v1 = vpop.permute.xlu1 %1167 }
 0x17f   : > { %1253 = vst.msk [vmem:[#allocation4 + $0x58] sm:$0xff] %vm1241_vm6, %v1168_v1  ;;  %v1170_v16 = vpop.permute.xlu0 %1169 }
 0x180   : > { %1541 = vrot.lane.b32.xlu1 %v6517_v4, %s5408_s15  ;;  %1254 = vst.msk [vmem:[#allocation4 + $0x60] sm:$0xff] %vm1241_vm6, %v1170_v16 }
 0x181   : > { %1543 = vrot.lane.b32.xlu0 %v6519_v52, %s5408_s15 }
 0x182   : > { %v1172_v56 = vpop.permute.xlu1 %1171 }
 0x183   : > { %1255 = vst.msk [vmem:[#allocation4 + $0x68] sm:$0xff] %vm1241_vm6, %v1172_v56  ;;  %v1174_v22 = vpop.permute.xlu0 %1173  ;;  %v6948_v56 = vld [vmem:[#allocation2 + $0x182] sm:$0xff] }
 0x184   : > { %1545 = vrot.lane.b32.xlu1 %v6525_v14, %s5408_s15  ;;  %1256 = vst.msk [vmem:[#allocation4 + $0x70] sm:$0xff] %vm1241_vm6, %v1174_v22 }
 0x185   : > { %1547 = vrot.lane.b32.xlu0 %v6527_v42, %s5408_s15 }
 0x186   : > { %v1176_v23 = vpop.permute.xlu1 %1175 }
 0x187   : > { %1257 = vst.msk [vmem:[#allocation4 + $0x78] sm:$0xff] %vm1241_vm6, %v1176_v23  ;;  %v1178_v4 = vpop.permute.xlu0 %1177 }
 0x188   : > { %1549 = vrot.lane.b32.xlu1 %v6534_v57, %s5408_s15  ;;  %1258 = vst.msk [vmem:[#allocation4 + $0x80] sm:$0xff] %vm1241_vm6, %v1178_v4 }
 0x189   : > { %1551 = vrot.lane.b32.xlu0 %v6537_v54, %s5408_s15 }
 0x18a   : > { %v1180_v52 = vpop.permute.xlu1 %1179 }
 0x18b   : > { %1259 = vst.msk [vmem:[#allocation4 + $0x88] sm:$0xff] %vm1241_vm6, %v1180_v52  ;;  %v1182_v14 = vpop.permute.xlu0 %1181 }
 0x18c   : > { %1553 = vrot.lane.b32.xlu1 %v6544_v29, %s5408_s15  ;;  %1260 = vst.msk [vmem:[#allocation4 + $0x90] sm:$0xff] %vm1241_vm6, %v1182_v14  ;;  %v8560_v14 = vld [vmem:[#allocation37_spill] sm:$0xff] }
 0x18d   : > { %1555 = vrot.lane.b32.xlu0 %v6547_v49, %s5408_s15 }
 0x18e   : > { %v1184_v42 = vpop.permute.xlu1 %1183 }
 0x18f   : > { %1261 = vst.msk [vmem:[#allocation4 + $0x98] sm:$0xff] %vm1241_vm6, %v1184_v42  ;;  %v1186_v57 = vpop.permute.xlu0 %1185 }
 0x190   : > { %1557 = vrot.lane.b32.xlu1 %v6554_v63, %s5408_s15  ;;  %1262 = vst.msk [vmem:[#allocation4 + $0xa0] sm:$0xff] %vm1241_vm6, %v1186_v57  ;;  %v8562_v57 = vld [vmem:[#allocation41_spill] sm:$0xff] }
 0x191   : > { %1559 = vrot.lane.b32.xlu0 %v6556_v40, %s5408_s15 }
 0x192   : > { %v1188_v54 = vpop.permute.xlu1 %1187 }
 0x193   : > { %1263 = vst.msk [vmem:[#allocation4 + $0xa8] sm:$0xff] %vm1241_vm6, %v1188_v54  ;;  %v1190_v29 = vpop.permute.xlu0 %1189 }
 0x194   : > { %1561 = vrot.lane.b32.xlu1 %v6563_v31, %s5408_s15  ;;  %1264 = vst.msk [vmem:[#allocation4 + $0xb0] sm:$0xff] %vm1241_vm6, %v1190_v29  ;;  %v1691_v29 = vld [vmem:[#allocation2 + $0x198] sm:$0xff] }
 0x195   : > { %1563 = vrot.lane.b32.xlu0 %v6566_v2, %s5408_s15  ;;  %v8554_v2 = vld [vmem:[#allocation42_spill] sm:$0xff] }
 0x196   : > { %v1192_v49 = vpop.permute.xlu1 %1191 }
 0x197   : > { %1265 = vst.msk [vmem:[#allocation4 + $0xb8] sm:$0xff] %vm1241_vm6, %v1192_v49  ;;  %v1194_v63 = vpop.permute.xlu0 %1193 }
 0x198   : > { %1565 = vrot.lane.b32.xlu1 %v6572_v18, %s5408_s15  ;;  %1266 = vst.msk [vmem:[#allocation4 + $0xc0] sm:$0xff] %vm1241_vm6, %v1194_v63  ;;  %v8564_v63 = vld [vmem:[#allocation49_spill] sm:$0xff] }
 0x199   : > { %1567 = vrot.lane.b32.xlu0 %v6574_v62, %s5408_s15  ;;  %v8556_v62 = vld [vmem:[#allocation44_spill] sm:$0xff] }
 0x19a   : > { %v1196_v40 = vpop.permute.xlu1 %1195 }
 0x19b   : > { %1267 = vst.msk [vmem:[#allocation4 + $0xc8] sm:$0xff] %vm1241_vm6, %v1196_v40  ;;  %v1198_v31 = vpop.permute.xlu0 %1197  ;;  %v1692_v40 = vld [vmem:[#allocation2 + $0x1a0] sm:$0xff] }
 0x19c   : > { %1569 = vrot.lane.b32.xlu1 %v6581_v61, %s5408_s15  ;;  %1268 = vst.msk [vmem:[#allocation4 + $0xd0] sm:$0xff] %vm1241_vm6, %v1198_v31 }
 0x19d   : > { %1571 = vrot.lane.b32.xlu0 %v8554_v2, %s5408_s15 }
 0x19e   : > { %v1200_v12 = vpop.permute.xlu1 %1199 }
 0x19f   : > { %1269 = vst.msk [vmem:[#allocation4 + $0xd8] sm:$0xff] %vm1241_vm6, %v1200_v12  ;;  %v1202_v18 = vpop.permute.xlu0 %1201  ;;  %v8565_v12 = vld [vmem:[#allocation50_spill] sm:$0xff] }
 0x1a0   : > { %1573 = vrot.lane.b32.xlu1 %v8555_v19, %s5408_s15  ;;  %1270 = vst.msk [vmem:[#allocation4 + $0xe0] sm:$0xff] %vm1241_vm6, %v1202_v18 }
 0x1a1   : > { %1575 = vrot.lane.b32.xlu0 %v8556_v62, %s5408_s15  ;;  %v8566_v62 = vld [vmem:[#allocation51_spill] sm:$0xff] }
 0x1a2   : > { %v1204_v7 = vpop.permute.xlu1 %1203 }
 0x1a3   : > { %1271 = vst.msk [vmem:[#allocation4 + $0xe8] sm:$0xff] %vm1241_vm6, %v1204_v7  ;;  %v1206_v61 = vpop.permute.xlu0 %1205  ;;  %v8567_v7 = vld [vmem:[#allocation52_spill] sm:$0xff] }
 0x1a4   : > { %1577 = vrot.lane.b32.xlu1 %v8557_v55, %s5408_s15  ;;  %1272 = vst.msk [vmem:[#allocation4 + $0xf0] sm:$0xff] %vm1241_vm6, %v1206_v61 }
 0x1a5   : > { %1579 = vrot.lane.b32.xlu0 %v8558_v21, %s5408_s15  ;;  %v8568_v21 = vld [vmem:[#allocation53_spill] sm:$0xff] }
 0x1a6   : > { %v1208_v39 = vpop.permute.xlu1 %1207 }
 0x1a7   : > { %1273 = vst.msk [vmem:[#allocation4 + $0xf8] sm:$0xff] %vm1241_vm6, %v1208_v39  ;;  %v1339_v58 = vpop.permute.xlu0 %1338  ;;  %v8569_v39 = vld [vmem:[#allocation54_spill] sm:$0xff] }
 0x1a8   : > { %1581 = vrot.lane.b32.xlu1 %v6609_v38, %s5408_s15  ;;  %1435 = vst.msk [vmem:[#allocation4] sm:$0xff] %vm1434_vm7, %v1339_v58 }
 0x1a9   : > { %1583 = vrot.lane.b32.xlu0 %v8559_v13, %s5408_s15 }
 0x1aa   : > { %v1341_v0 = vpop.permute.xlu1 %1340 }
 0x1ab   : > { %1436 = vst.msk [vmem:[#allocation4 + $0x8] sm:$0xff] %vm1434_vm7, %v1341_v0  ;;  %v1343_v1 = vpop.permute.xlu0 %1342  ;;  %v8570_v0 = vld [vmem:[#allocation55_spill] sm:$0xff] }
 0x1ac   : > { %1585 = vrot.lane.b32.xlu1 %v6618_v53, %s5408_s15  ;;  %1437 = vst.msk [vmem:[#allocation4 + $0x10] sm:$0xff] %vm1434_vm7, %v1343_v1  ;;  %v6956_v53 = vld [vmem:[#allocation2 + $0x18a] sm:$0xff] }
 0x1ad   : > { %1587 = vrot.lane.b32.xlu0 %v6620_v48, %s5408_s15  ;;  %v8571_v1 = vld [vmem:[#allocation56_spill] sm:$0xff] }
 0x1ae   : > { %v1345_v16 = vpop.permute.xlu1 %1344 }
 0x1af   : > { %1438 = vst.msk [vmem:[#allocation4 + $0x18] sm:$0xff] %vm1434_vm7, %v1345_v16  ;;  %v1347_v38 = vpop.permute.xlu0 %1346 }
 0x1b0   : > { %1589 = vrot.lane.b32.xlu1 %v6627_v32, %s5408_s15  ;;  %1439 = vst.msk [vmem:[#allocation4 + $0x20] sm:$0xff] %vm1434_vm7, %v1347_v38 }
 0x1b1   : > { %1591 = vrot.lane.b32.xlu0 %v6948_v56, %s5408_s15 }
 0x1b2   : > { %v1349_v22 = vpop.permute.xlu1 %1348 }
 0x1b3   : > { %1440 = vst.msk [vmem:[#allocation4 + $0x28] sm:$0xff] %vm1434_vm7, %v1349_v22  ;;  %v1351_v48 = vpop.permute.xlu0 %1350  ;;  %v8572_v22 = vld [vmem:[#allocation57_spill] sm:$0xff] }
 0x1b4   : > { %1593 = vrot.lane.b32.xlu1 %v6956_v53, %s5408_s15  ;;  %1441 = vst.msk [vmem:[#allocation4 + $0x30] sm:$0xff] %vm1434_vm7, %v1351_v48  ;;  %v8573_v48 = vld [vmem:[#allocation58_spill] sm:$0xff] }
 0x1b5   : > { %1725 = vrot.lane.b32.xlu0 %v6037_v50, %s5409_s16 }
 0x1b6   : > { %v1353_v32 = vpop.permute.xlu1 %1352 }
 0x1b7   : > { %1442 = vst.msk [vmem:[#allocation4 + $0x38] sm:$0xff] %vm1434_vm7, %v1353_v32  ;;  %v1355_v23 = vpop.permute.xlu0 %1354 }
 0x1b8   : > { %1727 = vrot.lane.b32.xlu1 %v6039_v30, %s5409_s16  ;;  %1443 = vst.msk [vmem:[#allocation4 + $0x40] sm:$0xff] %vm1434_vm7, %v1355_v23 }
 0x1b9   : > { %1729 = vrot.lane.b32.xlu0 %v6065_v15, %s5409_s16 }
 0x1ba   : > { %v1357_v4 = vpop.permute.xlu1 %1356 }
 0x1bb   : > { %1444 = vst.msk [vmem:[#allocation4 + $0x48] sm:$0xff] %vm1434_vm7, %v1357_v4  ;;  %v1359_v52 = vpop.permute.xlu0 %1358  ;;  %v2276_v4 = vld [vmem:[%s8365_s1 + $0x20] sm:$0xf] }
 0x1bc   : > { %1731 = vrot.lane.b32.xlu1 %v6067_v8, %s5409_s16  ;;  %1445 = vst.msk [vmem:[#allocation4 + $0x50] sm:$0xff] %vm1434_vm7, %v1359_v52  ;;  %v8574_v52 = vld [vmem:[#allocation59_spill] sm:$0xff]  ;;  %5004 = vmatprep.subr.msk.mxu0 %vm2381_vm9, %v2276_v4 }
 0x1bd   : > { %1733 = vrot.lane.b32.xlu0 %v6103_v43, %s5409_s16  ;;  %5005 = vmatpush3.msk.msra.mxu0 %vm2381_vm9, %v2276_v4 }
 0x1be   : > { %v1361_v50 = vpop.permute.xlu1 %1360 }
 0x1bf   : > { %1446 = vst.msk [vmem:[#allocation4 + $0x58] sm:$0xff] %vm1434_vm7, %v1361_v50  ;;  %v1363_v30 = vpop.permute.xlu0 %1362  ;;  %v8575_v50 = vld [vmem:[#allocation60_spill] sm:$0xff] }
 0x1c0   : > { %1735 = vrot.lane.b32.xlu1 %v6105_v44, %s5409_s16  ;;  %1447 = vst.msk [vmem:[#allocation4 + $0x60] sm:$0xff] %vm1434_vm7, %v1363_v30 }
 0x1c1   : > { %1737 = vrot.lane.b32.xlu0 %v6137_v17, %s5409_s16 }
 0x1c2   : > { %v1365_v15 = vpop.permute.xlu1 %1364 }
 0x1c3   : > { %1448 = vst.msk [vmem:[#allocation4 + $0x68] sm:$0xff] %vm1434_vm7, %v1365_v15  ;;  %v1367_v8 = vpop.permute.xlu0 %1366  ;;  %v2275_v15 = vld [vmem:[%s8365_s1 + $0x18] sm:$0xff] }
 0x1c4   : > { %1739 = vrot.lane.b32.xlu1 %v6139_v26, %s5409_s16  ;;  %1449 = vst.msk [vmem:[#allocation4 + $0x70] sm:$0xff] %vm1434_vm7, %v1367_v8  ;;  %5006 = vmatprep.subr.mxu0 %v2275_v15 }
 0x1c5   : > { %1741 = vrot.lane.b32.xlu0 %v6165_v47, %s5409_s16  ;;  %5007 = vmatpush3.msra.mxu0 %v2275_v15 }
 0x1c6   : > { %v1369_v43 = vpop.permute.xlu1 %1368 }
 0x1c7   : > { %1450 = vst.msk [vmem:[#allocation4 + $0x78] sm:$0xff] %vm1434_vm7, %v1369_v43  ;;  %v1371_v44 = vpop.permute.xlu0 %1370  ;;  %v2274_v43 = vld [vmem:[%s8365_s1 + $0x10] sm:$0xff] }
 0x1c8   : > { %1743 = vrot.lane.b32.xlu1 %v6167_v51, %s5409_s16  ;;  %1451 = vst.msk [vmem:[#allocation4 + $0x80] sm:$0xff] %vm1434_vm7, %v1371_v44  ;;  %v8576_v44 = vld [vmem:[#allocation61_spill] sm:$0xff]  ;;  %5008 = vmatprep.subr.mxu0 %v2274_v43 }
 0x1c9   : > { %1745 = vrot.lane.b32.xlu0 %v6197_v35, %s5409_s16  ;;  %5009 = vmatpush3.msra.mxu0 %v2274_v43 }
 0x1ca   : > { %v1373_v17 = vpop.permute.xlu1 %1372 }
 0x1cb   : > { %1452 = vst.msk [vmem:[#allocation4 + $0x88] sm:$0xff] %vm1434_vm7, %v1373_v17  ;;  %v1375_v26 = vpop.permute.xlu0 %1374  ;;  %v8577_v17 = vld [vmem:[#allocation62_spill] sm:$0xff] }
 0x1cc   : > { %1747 = vrot.lane.b32.xlu1 %v6209_v41, %s5409_s16  ;;  %1453 = vst.msk [vmem:[#allocation4 + $0x90] sm:$0xff] %vm1434_vm7, %v1375_v26 }
 0x1cd   : > { %1749 = vrot.lane.b32.xlu0 %v6231_v9, %s5409_s16 }
 0x1ce   : > { %v1377_v47 = vpop.permute.xlu1 %1376 }
 0x1cf   : > { %1454 = vst.msk [vmem:[#allocation4 + $0x98] sm:$0xff] %vm1434_vm7, %v1377_v47  ;;  %v1379_v51 = vpop.permute.xlu0 %1378  ;;  %v2273_v47 = vld [vmem:[%s8365_s1 + $0x8] sm:$0xff] }
 0x1d0   : > { %1751 = vrot.lane.b32.xlu1 %v6233_v10, %s5409_s16  ;;  %1455 = vst.msk [vmem:[#allocation4 + $0xa0] sm:$0xff] %vm1434_vm7, %v1379_v51  ;;  %5010 = vmatprep.subr.mxu0 %v2273_v47 }
 0x1d1   : > { %1753 = vrot.lane.b32.xlu0 %v6262_v59, %s5409_s16  ;;  %5011 = vmatpush3.msra.mxu0 %v2273_v47  ;;  %v1876_v47 = vld [vmem:[#allocation2 + $0x139] sm:$0xff] }
 0x1d2   : > { %v1381_v35 = vpop.permute.xlu1 %1380 }
 0x1d3   : > { %1456 = vst.msk [vmem:[#allocation4 + $0xa8] sm:$0xff] %vm1434_vm7, %v1381_v35  ;;  %v1383_v41 = vpop.permute.xlu0 %1382  ;;  %v2272_v35 = vld [vmem:[%s8365_s1] sm:$0xff] }
 0x1d4   : > { %1755 = vrot.lane.b32.xlu1 %v6264_v11, %s5409_s16  ;;  %1457 = vst.msk [vmem:[#allocation4 + $0xb0] sm:$0xff] %vm1434_vm7, %v1383_v41  ;;  %v8578_v41 = vld [vmem:[#allocation63_spill] sm:$0xff]  ;;  %5012 = vmatprep.subr.mxu0 %v2272_v35 }
 0x1d5   : > { %1757 = vrot.lane.b32.xlu0 %v6302_v27, %s5409_s16  ;;  %5013 = vmatpush3.msra.mxu0 %v2272_v35 }
 0x1d6   : > { %v1385_v9 = vpop.permute.xlu1 %1384 }
 0x1d7   : > { %1458 = vst.msk [vmem:[#allocation4 + $0xb8] sm:$0xff] %vm1434_vm7, %v1385_v9  ;;  %v1387_v10 = vpop.permute.xlu0 %1386  ;;  %v8579_v9 = vld [vmem:[#allocation64_spill] sm:$0xff] }
 0x1d8   : > { %1759 = vrot.lane.b32.xlu1 %v6304_v36, %s5409_s16  ;;  %1459 = vst.msk [vmem:[#allocation4 + $0xc0] sm:$0xff] %vm1434_vm7, %v1387_v10 }
 0x1d9   : > { %1761 = vrot.lane.b32.xlu0 %v6329_v5, %s5409_s16 }
 0x1da   : > { %v1389_v59 = vpop.permute.xlu1 %1388 }
 0x1db   : > { %1460 = vst.msk [vmem:[#allocation4 + $0xc8] sm:$0xff] %vm1434_vm7, %v1389_v59  ;;  %v1391_v11 = vpop.permute.xlu0 %1390  ;;  %v2047_v59 = vld [vmem:[#allocation2 + $0x32] sm:$0xff] }
 0x1dc   : > { %1763 = vrot.lane.b32.xlu1 %v6350_v34, %s5409_s16  ;;  %1461 = vst.msk [vmem:[#allocation4 + $0xd0] sm:$0xff] %vm1434_vm7, %v1391_v11 }
 0x1dd   : > { %1765 = vrot.lane.b32.xlu0 %v6369_v20, %s5409_s16 }
 0x1de   : > { %v1393_v27 = vpop.permute.xlu1 %1392 }
 0x1df   : > { %1462 = vst.msk [vmem:[#allocation4 + $0xd8] sm:$0xff] %vm1434_vm7, %v1393_v27  ;;  %v1395_v36 = vpop.permute.xlu0 %1394  ;;  %v8580_v27 = vld [vmem:[#allocation65_spill] sm:$0xff] }
 0x1e0   : > { %1767 = vrot.lane.b32.xlu1 %v6399_v45, %s5409_s16  ;;  %1463 = vst.msk [vmem:[#allocation4 + $0xe0] sm:$0xff] %vm1434_vm7, %v1395_v36  ;;  %v2048_v36 = vld [vmem:[#allocation2 + $0x3a] sm:$0xff] }
 0x1e1   : > { %1769 = vrot.lane.b32.xlu0 %v6408_v3, %s5409_s16  ;;  %v8561_v3 = vld [vmem:[#allocation39_spill] sm:$0xff] }
 0x1e2   : > { %v1397_v5 = vpop.permute.xlu1 %1396 }
 0x1e3   : > { %1464 = vst.msk [vmem:[#allocation4 + $0xe8] sm:$0xff] %vm1434_vm7, %v1397_v5  ;;  %v1399_v34 = vpop.permute.xlu0 %1398 }
 0x1e4   : > { %1771 = vrot.lane.b32.xlu1 %v6432_v33, %s5409_s16  ;;  %1465 = vst.msk [vmem:[#allocation4 + $0xf0] sm:$0xff] %vm1434_vm7, %v1399_v34  ;;  %v2049_v34 = vld [vmem:[#allocation2 + $0x4a] sm:$0xff] }
 0x1e5   : > { %1773 = vrot.lane.b32.xlu0 %v6447_v46, %s5409_s16  ;;  %v8563_v46 = vld [vmem:[#allocation48_spill] sm:$0xff] }
 0x1e6   : > { %v1401_v20 = vpop.permute.xlu1 %1400 }
 0x1e7   : > { %1466 = vst.msk [vmem:[#allocation4 + $0xf8] sm:$0xff] %vm1434_vm7, %v1401_v20  ;;  %v1532_v45 = vpop.permute.xlu0 %1531 }
 0x1e8   : > { %1775 = vrot.lane.b32.xlu1 %v8560_v14, %s5409_s16  ;;  %1628 = vst.msk [vmem:[#allocation4] sm:$0xff] %vm1627_vm8, %v1532_v45  ;;  %v2050_v45 = vld [vmem:[#allocation2 + $0x52] sm:$0xff] }
 0x1e9   : > { %1777 = vrot.lane.b32.xlu0 %v8561_v3, %s5409_s16  ;;  %v2051_v3 = vld [vmem:[#allocation2 + $0x62] sm:$0xff] }
 0x1ea   : > { %v1534_v42 = vpop.permute.xlu1 %1533 }
 0x1eb   : > { %1629 = vst.msk [vmem:[#allocation4 + $0x8] sm:$0xff] %vm1627_vm8, %v1534_v42  ;;  %v1536_v33 = vpop.permute.xlu0 %1535 }
 0x1ec   : > { %1779 = vrot.lane.b32.xlu1 %v8562_v57, %s5409_s16  ;;  %1630 = vst.msk [vmem:[#allocation4 + $0x10] sm:$0xff] %vm1627_vm8, %v1536_v33  ;;  %v2052_v33 = vld [vmem:[#allocation2 + $0x6a] sm:$0xff] }
 0x1ed   : > { %1781 = vrot.lane.b32.xlu0 %v8563_v46, %s5409_s16  ;;  %v2053_v46 = vld [vmem:[#allocation2 + $0x7a] sm:$0xff] }
 0x1ee   : > { %v1538_v54 = vpop.permute.xlu1 %1537 }
 0x1ef   : > { %1631 = vst.msk [vmem:[#allocation4 + $0x18] sm:$0xff] %vm1627_vm8, %v1538_v54  ;;  %v1540_v49 = vpop.permute.xlu0 %1539 }
 0x1f0   : > { %1783 = vrot.lane.b32.xlu1 %v8564_v63, %s5409_s16  ;;  %1632 = vst.msk [vmem:[#allocation4 + $0x20] sm:$0xff] %vm1627_vm8, %v1540_v49  ;;  %v2055_v63 = vld [vmem:[#allocation2 + $0x92] sm:$0xff] }
 0x1f1   : > { %1785 = vrot.lane.b32.xlu0 %v1691_v29, %s5409_s16  ;;  %v2054_v29 = vld [vmem:[#allocation2 + $0x82] sm:$0xff] }
 0x1f2   : > { %v1542_v31 = vpop.permute.xlu1 %1541 }
 0x1f3   : > { %1633 = vst.msk [vmem:[#allocation4 + $0x28] sm:$0xff] %vm1627_vm8, %v1542_v31  ;;  %v1544_v2 = vpop.permute.xlu0 %1543  ;;  %v2056_v31 = vld [vmem:[#allocation2 + $0x9a] sm:$0xff] }
 0x1f4   : > { %1787 = vrot.lane.b32.xlu1 %v1692_v40, %s5409_s16  ;;  %1634 = vst.msk [vmem:[#allocation4 + $0x30] sm:$0xff] %vm1627_vm8, %v1544_v2 }
 0x1f5   : > { %1918 = vrot.lane.b32.xlu0 %v8565_v12, %s5410_s17  ;;  %v2057_v12 = vld [vmem:[#allocation2 + $0xaa] sm:$0xff] }
 0x1f6   : > { %v1546_v18 = vpop.permute.xlu1 %1545 }
 0x1f7   : > { %1635 = vst.msk [vmem:[#allocation4 + $0x38] sm:$0xff] %vm1627_vm8, %v1546_v18  ;;  %v1548_v19 = vpop.permute.xlu0 %1547 }
 0x1f8   : > { %1920 = vrot.lane.b32.xlu1 %v8566_v62, %s5410_s17  ;;  %1636 = vst.msk [vmem:[#allocation4 + $0x40] sm:$0xff] %vm1627_vm8, %v1548_v19  ;;  %v2058_v19 = vld [vmem:[#allocation2 + $0xb2] sm:$0xff] }
 0x1f9   : > { %1922 = vrot.lane.b32.xlu0 %v8567_v7, %s5410_s17  ;;  %v2059_v7 = vld [vmem:[#allocation2 + $0xc2] sm:$0xff] }
 0x1fa   : > { %v1550_v61 = vpop.permute.xlu1 %1549 }
 0x1fb   : > { %1637 = vst.msk [vmem:[#allocation4 + $0x48] sm:$0xff] %vm1627_vm8, %v1550_v61  ;;  %v1552_v55 = vpop.permute.xlu0 %1551 }
 0x1fc   : > { %1924 = vrot.lane.b32.xlu1 %v8568_v21, %s5410_s17  ;;  %1638 = vst.msk [vmem:[#allocation4 + $0x50] sm:$0xff] %vm1627_vm8, %v1552_v55  ;;  %v2060_v55 = vld [vmem:[#allocation2 + $0xca] sm:$0xff] }
 0x1fd   : > { %1926 = vrot.lane.b32.xlu0 %v8569_v39, %s5410_s17  ;;  %v2061_v39 = vld [vmem:[#allocation2 + $0xda] sm:$0xff] }
 0x1fe   : > { %v1554_v58 = vpop.permute.xlu1 %1553 }
 0x1ff   : > { %1639 = vst.msk [vmem:[#allocation4 + $0x58] sm:$0xff] %vm1627_vm8, %v1554_v58  ;;  %v1556_v13 = vpop.permute.xlu0 %1555 }
 0x200   : > { %1928 = vrot.lane.b32.xlu1 %v8570_v0, %s5410_s17  ;;  %1640 = vst.msk [vmem:[#allocation4 + $0x60] sm:$0xff] %vm1627_vm8, %v1556_v13  ;;  %v2062_v13 = vld [vmem:[#allocation2 + $0xe2] sm:$0xff] }
 0x201   : > { %1930 = vrot.lane.b32.xlu0 %v8571_v1, %s5410_s17 }
 0x202   : > { %v1558_v16 = vpop.permute.xlu1 %1557 }
 0x203   : > { %1641 = vst.msk [vmem:[#allocation4 + $0x68] sm:$0xff] %vm1627_vm8, %v1558_v16  ;;  %v1560_v38 = vpop.permute.xlu0 %1559  ;;  %v8581_v16 = vld [vmem:[#allocation66_spill] sm:$0xff] }
 0x204   : > { %1932 = vrot.lane.b32.xlu1 %v8572_v22, %s5410_s17  ;;  %1642 = vst.msk [vmem:[#allocation4 + $0x70] sm:$0xff] %vm1627_vm8, %v1560_v38  ;;  %v2063_v22 = vld [vmem:[#allocation2 + $0xf2] sm:$0xff] }
 0x205   : > { %1934 = vrot.lane.b32.xlu0 %v8573_v48, %s5410_s17 }
 0x206   : > { %v1562_v32 = vpop.permute.xlu1 %1561 }
 0x207   : > { %1643 = vst.msk [vmem:[#allocation4 + $0x78] sm:$0xff] %vm1627_vm8, %v1562_v32  ;;  %v1564_v23 = vpop.permute.xlu0 %1563  ;;  %v2064_v32 = vld [vmem:[#allocation2 + $0xfa] sm:$0xff] }
 0x208   : > { %1936 = vrot.lane.b32.xlu1 %v8574_v52, %s5410_s17  ;;  %1644 = vst.msk [vmem:[#allocation4 + $0x80] sm:$0xff] %vm1627_vm8, %v1564_v23 }
 0x209   : > { %1938 = vrot.lane.b32.xlu0 %v8575_v50, %s5410_s17  ;;  %v2065_v50 = vld [vmem:[#allocation2 + $0x10a] sm:$0xff] }
 0x20a   : > { %v1566_v30 = vpop.permute.xlu1 %1565 }
 0x20b   : > { %1645 = vst.msk [vmem:[#allocation4 + $0x88] sm:$0xff] %vm1627_vm8, %v1566_v30  ;;  %v1568_v8 = vpop.permute.xlu0 %1567  ;;  %v2066_v30 = vld [vmem:[#allocation2 + $0x112] sm:$0xff] }
 0x20c   : > { %1940 = vrot.lane.b32.xlu1 %v8576_v44, %s5410_s17  ;;  %1646 = vst.msk [vmem:[#allocation4 + $0x90] sm:$0xff] %vm1627_vm8, %v1568_v8  ;;  %v2067_v44 = vld [vmem:[#allocation2 + $0x122] sm:$0xff] }
 0x20d   : > { %1942 = vrot.lane.b32.xlu0 %v8577_v17, %s5410_s17  ;;  %v2068_v17 = vld [vmem:[#allocation2 + $0x12a] sm:$0xff] }
 0x20e   : > { %v1570_v26 = vpop.permute.xlu1 %1569 }
 0x20f   : > { %1647 = vst.msk [vmem:[#allocation4 + $0x98] sm:$0xff] %vm1627_vm8, %v1570_v26  ;;  %v1572_v51 = vpop.permute.xlu0 %1571 }
 0x210   : > { %1944 = vrot.lane.b32.xlu1 %v8578_v41, %s5410_s17  ;;  %1648 = vst.msk [vmem:[#allocation4 + $0xa0] sm:$0xff] %vm1627_vm8, %v1572_v51  ;;  %v2069_v41 = vld [vmem:[#allocation2 + $0x13a] sm:$0xff] }
 0x211   : > { %1946 = vrot.lane.b32.xlu0 %v8579_v9, %s5410_s17 }
 0x212   : > { %v1574_v10 = vpop.permute.xlu1 %1573 }
 0x213   : > { %1649 = vst.msk [vmem:[#allocation4 + $0xa8] sm:$0xff] %vm1627_vm8, %v1574_v10  ;;  %v1576_v11 = vpop.permute.xlu0 %1575  ;;  %v2070_v10 = vld [vmem:[#allocation2 + $0x142] sm:$0xff] }
 0x214   : > { %1948 = vrot.lane.b32.xlu1 %v8580_v27, %s5410_s17  ;;  %1650 = vst.msk [vmem:[#allocation4 + $0xb0] sm:$0xff] %vm1627_vm8, %v1576_v11  ;;  %v1878_v11 = vld [vmem:[#allocation2 + $0x151] sm:$0xff] }
 0x215   : > { %2111 = vrot.lane.b32.xlu0 %v2047_v59, %s5411_s5 }
 0x216   : > { %v1578_v5 = vpop.permute.xlu1 %1577 }
 0x217   : > { %1651 = vst.msk [vmem:[#allocation4 + $0xb8] sm:$0xff] %vm1627_vm8, %v1578_v5  ;;  %v1580_v20 = vpop.permute.xlu0 %1579 }
 0x218   : > { %2113 = vrot.lane.b32.xlu1 %v2048_v36, %s5411_s5  ;;  %1652 = vst.msk [vmem:[#allocation4 + $0xc0] sm:$0xff] %vm1627_vm8, %v1580_v20  ;;  %v1879_v36 = vld [vmem:[#allocation2 + $0x159] sm:$0xff] }
 0x219   : > { %2115 = vrot.lane.b32.xlu0 %v2049_v34, %s5411_s5  ;;  %v2071_v34 = vld [vmem:[#allocation2 + $0x152] sm:$0xff] }
 0x21a   : > { %v1582_v14 = vpop.permute.xlu1 %1581 }
 0x21b   : > { %1653 = vst.msk [vmem:[#allocation4 + $0xc8] sm:$0xff] %vm1627_vm8, %v1582_v14  ;;  %v1584_v42 = vpop.permute.xlu0 %1583 }
 0x21c   : > { %2117 = vrot.lane.b32.xlu1 %v2050_v45, %s5411_s5  ;;  %1654 = vst.msk [vmem:[#allocation4 + $0xd0] sm:$0xff] %vm1627_vm8, %v1584_v42  ;;  %v2072_v45 = vld [vmem:[#allocation2 + $0x15a] sm:$0xff] }
 0x21d   : > { %2119 = vrot.lane.b32.xlu0 %v2051_v3, %s5411_s5  ;;  %v1880_v3 = vld [vmem:[#allocation2 + $0x169] sm:$0xff] }
 0x21e   : > { %v1586_v57 = vpop.permute.xlu1 %1585 }
 0x21f   : > { %1655 = vst.msk [vmem:[#allocation4 + $0xd8] sm:$0xff] %vm1627_vm8, %v1586_v57  ;;  %v1588_v54 = vpop.permute.xlu0 %1587 }
 0x220   : > { %2121 = vrot.lane.b32.xlu1 %v2052_v33, %s5411_s5  ;;  %1656 = vst.msk [vmem:[#allocation4 + $0xe0] sm:$0xff] %vm1627_vm8, %v1588_v54  ;;  %v1881_v33 = vld [vmem:[#allocation2 + $0x171] sm:$0xff] }
 0x221   : > { %2123 = vrot.lane.b32.xlu0 %v2053_v46, %s5411_s5  ;;  %v2073_v46 = vld [vmem:[#allocation2 + $0x16a] sm:$0xff] }
 0x222   : > { %v1590_v49 = vpop.permute.xlu1 %1589 }
 0x223   : > { %1657 = vst.msk [vmem:[#allocation4 + $0xe8] sm:$0xff] %vm1627_vm8, %v1590_v49  ;;  %v1592_v40 = vpop.permute.xlu0 %1591 }
 0x224   : > { %2125 = vrot.lane.b32.xlu1 %v2054_v29, %s5411_s5  ;;  %1658 = vst.msk [vmem:[#allocation4 + $0xf0] sm:$0xff] %vm1627_vm8, %v1592_v40  ;;  %v2074_v29 = vld [vmem:[#allocation2 + $0x172] sm:$0xff] }
 0x225   : > { %2127 = vrot.lane.b32.xlu0 %v2055_v63, %s5411_s5 }
 0x226   : > { %v1594_v2 = vpop.permute.xlu1 %1593 }
 0x227   : > { %1659 = vst.msk [vmem:[#allocation4 + $0xf8] sm:$0xff] %vm1627_vm8, %v1594_v2  ;;  %v1726_v18 = vpop.permute.xlu0 %1725 }
 0x228   : > { %2129 = vrot.lane.b32.xlu1 %v2056_v31, %s5411_s5  ;;  %1822 = vst.msk [vmem:[#allocation4] sm:$0xff] %vm1821_vm10, %v1726_v18 }
 0x229   : > { %2131 = vrot.lane.b32.xlu0 %v2057_v12, %s5411_s5  ;;  %v1884_v12 = vld [vmem:[#allocation2 + $0x199] sm:$0xff] }
 0x22a   : > { %v1728_v62 = vpop.permute.xlu1 %1727 }
 0x22b   : > { %1823 = vst.msk [vmem:[#allocation4 + $0x8] sm:$0xff] %vm1821_vm10, %v1728_v62  ;;  %v1730_v61 = vpop.permute.xlu0 %1729 }
 0x22c   : > { %2133 = vrot.lane.b32.xlu1 %v2058_v19, %s5411_s5  ;;  %1824 = vst.msk [vmem:[#allocation4 + $0x10] sm:$0xff] %vm1821_vm10, %v1730_v61 }
 0x22d   : > { %2135 = vrot.lane.b32.xlu0 %v2059_v7, %s5411_s5 }
 0x22e   : > { %v1732_v21 = vpop.permute.xlu1 %1731 }
 0x22f   : > { %1825 = vst.msk [vmem:[#allocation4 + $0x18] sm:$0xff] %vm1821_vm10, %v1732_v21  ;;  %v1734_v58 = vpop.permute.xlu0 %1733 }
 0x230   : > { %2137 = vrot.lane.b32.xlu1 %v2060_v55, %s5411_s5  ;;  %1826 = vst.msk [vmem:[#allocation4 + $0x20] sm:$0xff] %vm1821_vm10, %v1734_v58 }
 0x231   : > { %2139 = vrot.lane.b32.xlu0 %v2061_v39, %s5411_s5 }
 0x232   : > { %v1736_v0 = vpop.permute.xlu1 %1735 }
 0x233   : > { %1827 = vst.msk [vmem:[#allocation4 + $0x28] sm:$0xff] %vm1821_vm10, %v1736_v0  ;;  %v1738_v1 = vpop.permute.xlu0 %1737 }
 0x234   : > { %2141 = vrot.lane.b32.xlu1 %v2062_v13, %s5411_s5  ;;  %1828 = vst.msk [vmem:[#allocation4 + $0x30] sm:$0xff] %vm1821_vm10, %v1738_v1 }
 0x235   : > { %1950 = vrot.lane.b32.xlu0 %v8581_v16, %s5410_s17 }
 0x236   : > { %v1740_v38 = vpop.permute.xlu1 %1739 }
 0x237   : > { %1829 = vst.msk [vmem:[#allocation4 + $0x38] sm:$0xff] %vm1821_vm10, %v1740_v38  ;;  %v1742_v48 = vpop.permute.xlu0 %1741 }
 0x238   : > { %1952 = vrot.lane.b32.xlu1 %v6810_v37, %s5410_s17  ;;  %1830 = vst.msk [vmem:[#allocation4 + $0x40] sm:$0xff] %vm1821_vm10, %v1742_v48 }
 0x239   : > { %2143 = vrot.lane.b32.xlu0 %v2063_v22, %s5411_s5 }
 0x23a   : > { %v1744_v23 = vpop.permute.xlu1 %1743 }
 0x23b   : > { %1831 = vst.msk [vmem:[#allocation4 + $0x48] sm:$0xff] %vm1821_vm10, %v1744_v23  ;;  %v1746_v4 = vpop.permute.xlu0 %1745 }
 0x23c   : > { %2145 = vrot.lane.b32.xlu1 %v2064_v32, %s5411_s5  ;;  %1832 = vst.msk [vmem:[#allocation4 + $0x50] sm:$0xff] %vm1821_vm10, %v1746_v4 }
 0x23d   : > { %1954 = vrot.lane.b32.xlu0 %v6812_v6, %s5410_s17  ;;  %v1875_v6 = vld [vmem:[#allocation2 + $0x129] sm:$0xff] }
 0x23e   : > { %v1748_v52 = vpop.permute.xlu1 %1747 }
 0x23f   : > { %1833 = vst.msk [vmem:[#allocation4 + $0x58] sm:$0xff] %vm1821_vm10, %v1748_v52  ;;  %v1750_v37 = vpop.permute.xlu0 %1749 }
 0x240   : > { %1956 = vrot.lane.b32.xlu1 %v6820_v24, %s5410_s17  ;;  %1834 = vst.msk [vmem:[#allocation4 + $0x60] sm:$0xff] %vm1821_vm10, %v1750_v37 }
 0x241   : > { %2147 = vrot.lane.b32.xlu0 %v2065_v50, %s5411_s5 }
 0x242   : > { %v1752_v15 = vpop.permute.xlu1 %1751 }
 0x243   : > { %1835 = vst.msk [vmem:[#allocation4 + $0x68] sm:$0xff] %vm1821_vm10, %v1752_v15  ;;  %v1754_v8 = vpop.permute.xlu0 %1753 }
 0x244   : > { %2149 = vrot.lane.b32.xlu1 %v2066_v30, %s5411_s5  ;;  %1836 = vst.msk [vmem:[#allocation4 + $0x70] sm:$0xff] %vm1821_vm10, %v1754_v8 }
 0x245   : > { %1958 = vrot.lane.b32.xlu0 %v6822_v25, %s5410_s17  ;;  %v1877_v25 = vld [vmem:[#allocation2 + $0x141] sm:$0xff] }
 0x246   : > { %v1756_v43 = vpop.permute.xlu1 %1755 }
 0x247   : > { %1837 = vst.msk [vmem:[#allocation4 + $0x78] sm:$0xff] %vm1821_vm10, %v1756_v43  ;;  %v1758_v24 = vpop.permute.xlu0 %1757 }
 0x248   : > { %1960 = vrot.lane.b32.xlu1 %v1875_v6, %s5410_s17  ;;  %1838 = vst.msk [vmem:[#allocation4 + $0x80] sm:$0xff] %vm1821_vm10, %v1758_v24 }
 0x249   : > { %2151 = vrot.lane.b32.xlu0 %v2067_v44, %s5411_s5 }
 0x24a   : > { %v1760_v26 = vpop.permute.xlu1 %1759 }
 0x24b   : > { %1839 = vst.msk [vmem:[#allocation4 + $0x88] sm:$0xff] %vm1821_vm10, %v1760_v26  ;;  %v1762_v51 = vpop.permute.xlu0 %1761 }
 0x24c   : > { %2153 = vrot.lane.b32.xlu1 %v2068_v17, %s5411_s5  ;;  %1840 = vst.msk [vmem:[#allocation4 + $0x90] sm:$0xff] %vm1821_vm10, %v1762_v51 }
 0x24d   : > { %1962 = vrot.lane.b32.xlu0 %v1876_v47, %s5410_s17 }
 0x24e   : > { %v1764_v35 = vpop.permute.xlu1 %1763 }
 0x24f   : > { %1841 = vst.msk [vmem:[#allocation4 + $0x98] sm:$0xff] %vm1821_vm10, %v1764_v35  ;;  %v1766_v9 = vpop.permute.xlu0 %1765 }
 0x250   : > { %1964 = vrot.lane.b32.xlu1 %v1877_v25, %s5410_s17  ;;  %1842 = vst.msk [vmem:[#allocation4 + $0xa0] sm:$0xff] %vm1821_vm10, %v1766_v9 }
 0x251   : > { %2155 = vrot.lane.b32.xlu0 %v2069_v41, %s5411_s5 }
 0x252   : > { %v1768_v59 = vpop.permute.xlu1 %1767 }
 0x253   : > { %1843 = vst.msk [vmem:[#allocation4 + $0xa8] sm:$0xff] %vm1821_vm10, %v1768_v59  ;;  %v1770_v27 = vpop.permute.xlu0 %1769 }
 0x254   : > { %2157 = vrot.lane.b32.xlu1 %v2070_v10, %s5411_s5  ;;  %1844 = vst.msk [vmem:[#allocation4 + $0xb0] sm:$0xff] %vm1821_vm10, %v1770_v27 }
 0x255   : > { %1966 = vrot.lane.b32.xlu0 %v1878_v11, %s5410_s17 }
 0x256   : > { %v1772_v5 = vpop.permute.xlu1 %1771 }
 0x257   : > { %1845 = vst.msk [vmem:[#allocation4 + $0xb8] sm:$0xff] %vm1821_vm10, %v1772_v5  ;;  %v1774_v20 = vpop.permute.xlu0 %1773 }
 0x258   : > { %1968 = vrot.lane.b32.xlu1 %v1879_v36, %s5410_s17  ;;  %1846 = vst.msk [vmem:[#allocation4 + $0xc0] sm:$0xff] %vm1821_vm10, %v1774_v20 }
 0x259   : > { %2159 = vrot.lane.b32.xlu0 %v2071_v34, %s5411_s5 }
 0x25a   : > { %v1776_v14 = vpop.permute.xlu1 %1775 }
 0x25b   : > { %1847 = vst.msk [vmem:[#allocation4 + $0xc8] sm:$0xff] %vm1821_vm10, %v1776_v14  ;;  %v1778_v42 = vpop.permute.xlu0 %1777 }
 0x25c   : > { %2161 = vrot.lane.b32.xlu1 %v2072_v45, %s5411_s5  ;;  %1848 = vst.msk [vmem:[#allocation4 + $0xd0] sm:$0xff] %vm1821_vm10, %v1778_v42 }
 0x25d   : > { %1970 = vrot.lane.b32.xlu0 %v1880_v3, %s5410_s17 }
 0x25e   : > { %v1780_v57 = vpop.permute.xlu1 %1779 }
 0x25f   : > { %1849 = vst.msk [vmem:[#allocation4 + $0xd8] sm:$0xff] %vm1821_vm10, %v1780_v57  ;;  %v1782_v54 = vpop.permute.xlu0 %1781 }
 0x260   : > { %1972 = vrot.lane.b32.xlu1 %v1881_v33, %s5410_s17  ;;  %1850 = vst.msk [vmem:[#allocation4 + $0xe0] sm:$0xff] %vm1821_vm10, %v1782_v54 }
 0x261   : > { %2163 = vrot.lane.b32.xlu0 %v2073_v46, %s5411_s5 }
 0x262   : > { %v1784_v49 = vpop.permute.xlu1 %1783 }
 0x263   : > { %1851 = vst.msk [vmem:[#allocation4 + $0xe8] sm:$0xff] %vm1821_vm10, %v1784_v49  ;;  %v1786_v63 = vpop.permute.xlu0 %1785 }
 0x264   : > { %2165 = vrot.lane.b32.xlu1 %v2074_v29, %s5411_s5  ;;  %1852 = vst.msk [vmem:[#allocation4 + $0xf0] sm:$0xff] %vm1821_vm10, %v1786_v63 }
 0x265   : > { %1974 = vrot.lane.b32.xlu0 %v6848_v60, %s5410_s17  ;;  %v1885_v60 = vld [vmem:[#allocation2 + $0x1a1] sm:$0xff] }
 0x266   : > { %v1788_v40 = vpop.permute.xlu1 %1787 }
 0x267   : > { %1853 = vst.msk [vmem:[#allocation4 + $0xf8] sm:$0xff] %vm1821_vm10, %v1788_v40  ;;  %v1919_v31 = vpop.permute.xlu0 %1918 }
 0x268   : > { %1976 = vrot.lane.b32.xlu1 %v6856_v28, %s5410_s17  ;;  %2015 = vst.msk [vmem:[#allocation4] sm:$0xff] %vm2014_vm11, %v1919_v31  ;;  %v2077_v28 = vld [vmem:[#allocation2 + $0x19a] sm:$0xff] }
 0x269   : > { %2167 = vrot.lane.b32.xlu0 %v6948_v56, %s5411_s5  ;;  %v2078_v56 = vld [vmem:[#allocation2 + $0x1a2] sm:$0xff] }
 0x26a   : > { %v1921_v2 = vpop.permute.xlu1 %1920 }
 0x26b   : > { %2016 = vst.msk [vmem:[#allocation4 + $0x8] sm:$0xff] %vm2014_vm11, %v1921_v2  ;;  %v1923_v18 = vpop.permute.xlu0 %1922 }
 0x26c   : > { %2169 = vrot.lane.b32.xlu1 %v6956_v53, %s5411_s5  ;;  %2017 = vst.msk [vmem:[#allocation4 + $0x10] sm:$0xff] %vm2014_vm11, %v1923_v18 }
 0x26d   : > { %1978 = vrot.lane.b32.xlu0 %v1884_v12, %s5410_s17 }
 0x26e   : > { %v1925_v19 = vpop.permute.xlu1 %1924 }
 0x26f   : > { %2018 = vst.msk [vmem:[#allocation4 + $0x18] sm:$0xff] %vm2014_vm11, %v1925_v19  ;;  %v1927_v62 = vpop.permute.xlu0 %1926 }
 0x270   : > { %2019 = vst.msk [vmem:[#allocation4 + $0x20] sm:$0xff] %vm2014_vm11, %v1927_v62  ;;  %1980 = vrot.lane.b32.xlu1 %v1885_v60, %s5410_s17 }
 0x271   : > { %2171 = vrot.lane.b32.xlu0 %v2077_v28, %s5411_s5 }
 0x272   : > { %v1929_v7 = vpop.permute.xlu1 %1928 }
 0x273   : > { %2020 = vst.msk [vmem:[#allocation4 + $0x28] sm:$0xff] %vm2014_vm11, %v1929_v7  ;;  %v1931_v53 = vpop.permute.xlu0 %1930 }
 0x274   : > { %2021 = vst.msk [vmem:[#allocation4 + $0x30] sm:$0xff] %vm2014_vm11, %v1931_v53  ;;  %2173 = vrot.lane.b32.xlu1 %v2078_v56, %s5411_s5 }
 0x276   : > { %v1933_v61 = vpop.permute.xlu1 %1932 }
 0x277   : > { %2022 = vst.msk [vmem:[#allocation4 + $0x38] sm:$0xff] %vm2014_vm11, %v1933_v61  ;;  %v1935_v55 = vpop.permute.xlu0 %1934 }
 0x278   : > { %2023 = vst.msk [vmem:[#allocation4 + $0x40] sm:$0xff] %vm2014_vm11, %v1935_v55 }
 0x27a   : > { %v1937_v21 = vpop.permute.xlu1 %1936 }
 0x27b   : > { %2024 = vst.msk [vmem:[#allocation4 + $0x48] sm:$0xff] %vm2014_vm11, %v1937_v21  ;;  %v1939_v39 = vpop.permute.xlu0 %1938 }
 0x27c   : > { %2025 = vst.msk [vmem:[#allocation4 + $0x50] sm:$0xff] %vm2014_vm11, %v1939_v39 }
 0x27e   : > { %v1941_v58 = vpop.permute.xlu1 %1940 }
 0x27f   : > { %2026 = vst.msk [vmem:[#allocation4 + $0x58] sm:$0xff] %vm2014_vm11, %v1941_v58  ;;  %v1943_v13 = vpop.permute.xlu0 %1942 }
 0x280   : > { %2027 = vst.msk [vmem:[#allocation4 + $0x60] sm:$0xff] %vm2014_vm11, %v1943_v13 }
 0x282   : > { %v1945_v0 = vpop.permute.xlu1 %1944 }
 0x283   : > { %2028 = vst.msk [vmem:[#allocation4 + $0x68] sm:$0xff] %vm2014_vm11, %v1945_v0  ;;  %v1947_v1 = vpop.permute.xlu0 %1946 }
 0x284   : > { %2029 = vst.msk [vmem:[#allocation4 + $0x70] sm:$0xff] %vm2014_vm11, %v1947_v1 }
 0x286   : > { %v1949_v16 = vpop.permute.xlu1 %1948 }
 0x287   : > { %2030 = vst.msk [vmem:[#allocation4 + $0x78] sm:$0xff] %vm2014_vm11, %v1949_v16  ;;  %v2112_v38 = vpop.permute.xlu0 %2111 }
 0x288   : > { %2208 = vst.msk [vmem:[#allocation4] sm:$0xff] %vm2207_vm12, %v2112_v38 }
 0x28a   : > { %v2114_v22 = vpop.permute.xlu1 %2113 }
 0x28b   : > { %2209 = vst.msk [vmem:[#allocation4 + $0x8] sm:$0xff] %vm2207_vm12, %v2114_v22  ;;  %v2116_v48 = vpop.permute.xlu0 %2115 }
 0x28c   : > { %2210 = vst.msk [vmem:[#allocation4 + $0x10] sm:$0xff] %vm2207_vm12, %v2116_v48 }
 0x28e   : > { %v2118_v32 = vpop.permute.xlu1 %2117 }
 0x28f   : > { %2211 = vst.msk [vmem:[#allocation4 + $0x18] sm:$0xff] %vm2207_vm12, %v2118_v32  ;;  %v2120_v23 = vpop.permute.xlu0 %2119  ;;  %v2240_v4 = vld [vmem:[#allocation4] sm:$0xff] }
 0x290   : > { %2212 = vst.msk [vmem:[#allocation4 + $0x20] sm:$0xff] %vm2207_vm12, %v2120_v23  ;;  %5014 = vmatprep.mubr.msk.f32.mxu0 %vm2284_vm13, %v2240_v4 }
 0x292   : > { %v2122_v52 = vpop.permute.xlu1 %2121  ;;  %v2241_v50 = vld [vmem:[#allocation4 + $0x8] sm:$0xff] }
 0x293   : > { %2213 = vst.msk [vmem:[#allocation4 + $0x28] sm:$0xff] %vm2207_vm12, %v2122_v52  ;;  %5015 = vmatmul.mubr.msk.f32.vlgmr.msra.gmra.mxu0 %vm2284_vm13, %v2241_v50  ;;  %v2124_v37 = vpop.permute.xlu0 %2123  ;;  %v2242_v30 = vld [vmem:[#allocation4 + $0x10] sm:$0xff]  ;;  %v2794_v52 = vld [vmem:[#allocation3 + $0x9] sm:$0xff] }
 0x294   : > { %2214 = vst.msk [vmem:[#allocation4 + $0x30] sm:$0xff] %vm2207_vm12, %v2124_v37  ;;  %5017 = vmatprep.mubr.msk.f32.mxu0 %vm2284_vm13, %v2242_v30  ;;  %2859 = vrot.lane.b32.xlu1 %v2794_v52, %s5404_s6  ;;  %v2793_v50 = vld [vmem:[#allocation3 + $0x1] sm:$0xff] }
 0x295   : > { %2857 = vrot.lane.b32.xlu0 %v2793_v50, %s5404_s6 }
 0x296   : > { %v2126_v15 = vpop.permute.xlu1 %2125  ;;  %v2243_v8 = vld [vmem:[#allocation4 + $0x18] sm:$0xff] }
 0x297   : > { %2215 = vst.msk [vmem:[#allocation4 + $0x38] sm:$0xff] %vm2207_vm12, %v2126_v15  ;;  %5018 = vmatmul.mubr.msk.f32.gmra.mxu0 %vm2284_vm13, %v2243_v8  ;;  %v2128_v6 = vpop.permute.xlu0 %2127  ;;  %v2244_v43 = vld [vmem:[#allocation4 + $0x20] sm:$0xff] }
 0x298   : > { %2216 = vst.msk [vmem:[#allocation4 + $0x40] sm:$0xff] %vm2207_vm12, %v2128_v6  ;;  %5020 = vmatprep.mubr.msk.f32.mxu0 %vm2284_vm13, %v2244_v43 }
 0x29a   : > { %v2130_v44 = vpop.permute.xlu1 %2129  ;;  %v2245_v24 = vld [vmem:[#allocation4 + $0x28] sm:$0xff] }
 0x29b   : > { %2217 = vst.msk [vmem:[#allocation4 + $0x48] sm:$0xff] %vm2207_vm12, %v2130_v44  ;;  %5021 = vmatmul.mubr.msk.f32.gmra.mxu0 %vm2284_vm13, %v2245_v24  ;;  %v2132_v17 = vpop.permute.xlu0 %2131  ;;  %v2246_v26 = vld [vmem:[#allocation4 + $0x30] sm:$0xff] }
 0x29c   : > { %2218 = vst.msk [vmem:[#allocation4 + $0x50] sm:$0xff] %vm2207_vm12, %v2132_v17  ;;  %5023 = vmatprep.mubr.msk.f32.mxu0 %vm2284_vm13, %v2246_v26 }
 0x29e   : > { %v2134_v47 = vpop.permute.xlu1 %2133  ;;  %v2247_v51 = vld [vmem:[#allocation4 + $0x38] sm:$0xff] }
 0x29f   : > { %2219 = vst.msk [vmem:[#allocation4 + $0x58] sm:$0xff] %vm2207_vm12, %v2134_v47  ;;  %5024 = vmatmul.mubr.msk.f32.gmra.mxu0 %vm2284_vm13, %v2247_v51  ;;  %v2136_v25 = vpop.permute.xlu0 %2135  ;;  %v2248_v35 = vld [vmem:[#allocation4 + $0x40] sm:$0xff]  ;;  %v2730_v47 = vld [vmem:[#allocation3 + $0x8] sm:$0xff] }
 0x2a0   : > { %2220 = vst.msk [vmem:[#allocation4 + $0x60] sm:$0xff] %vm2207_vm12, %v2136_v25  ;;  %5026 = vmatprep.mubr.msk.f32.mxu0 %vm2284_vm13, %v2248_v35  ;;  %v2729_v25 = vld [vmem:[#allocation3] sm:$0xff] }
 0x2a1   : > { %2762 = vst.msk [vmem:[#allocation4 + $0x8] sm:$0xff] %vm542_vm0, %v2730_v47  ;;  %2761 = vst.msk [vmem:[#allocation4] sm:$0xff] %vm542_vm0, %v2729_v25 }
 0x2a2   : > { %v2138_v41 = vpop.permute.xlu1 %2137  ;;  %v2249_v9 = vld [vmem:[#allocation4 + $0x48] sm:$0xff] }
 0x2a3   : > { %2221 = vst.msk [vmem:[#allocation4 + $0x68] sm:$0xff] %vm2207_vm12, %v2138_v41  ;;  %5027 = vmatmul.mubr.msk.f32.gmra.mxu0 %vm2284_vm13, %v2249_v9  ;;  %v2140_v10 = vpop.permute.xlu0 %2139  ;;  %v2250_v59 = vld [vmem:[#allocation4 + $0x50] sm:$0xff]  ;;  %v7323_v41 = vld [vmem:[%s8366_s2] ss:$0 sm:$0xff] }
 0x2a4   : > { %2222 = vst.msk [vmem:[#allocation4 + $0x70] sm:$0xff] %vm2207_vm12, %v2140_v10  ;;  %5029 = vmatprep.mubr.msk.f32.mxu0 %vm2284_vm13, %v2250_v59 }
 0x2a6   : > { %v2142_v11 = vpop.permute.xlu1 %2141  ;;  %v2251_v27 = vld [vmem:[#allocation4 + $0x58] sm:$0xff] }
 0x2a7   : > { %2223 = vst.msk [vmem:[#allocation4 + $0x78] sm:$0xff] %vm2207_vm12, %v2142_v11  ;;  %5030 = vmatmul.mubr.msk.f32.gmra.mxu0 %vm2284_vm13, %v2251_v27  ;;  %v1951_v36 = vpop.permute.xlu0 %1950  ;;  %v2252_v5 = vld [vmem:[#allocation4 + $0x60] sm:$0xff] }
 0x2a8   : > { %2031 = vst.msk [vmem:[#allocation4 + $0x80] sm:$0xff] %vm2014_vm11, %v1951_v36  ;;  %5032 = vmatprep.mubr.msk.f32.mxu0 %vm2284_vm13, %v2252_v5 }
 0x2aa   : > { %v1953_v34 = vpop.permute.xlu1 %1952  ;;  %v2253_v20 = vld [vmem:[#allocation4 + $0x68] sm:$0xff] }
 0x2ab   : > { %2032 = vst.msk [vmem:[#allocation4 + $0x88] sm:$0xff] %vm2014_vm11, %v1953_v34  ;;  %5033 = vmatmul.mubr.msk.f32.gmra.mxu0 %vm2284_vm13, %v2253_v20  ;;  %v2144_v45 = vpop.permute.xlu0 %2143  ;;  %v2254_v14 = vld [vmem:[#allocation4 + $0x70] sm:$0xff] }
 0x2ac   : > { %2224 = vst.msk [vmem:[#allocation4 + $0x80] sm:$0xff] %vm2207_vm12, %v2144_v45  ;;  %5035 = vmatprep.mubr.msk.f32.mxu0 %vm2284_vm13, %v2254_v14 }
 0x2ae   : > { %v2146_v3 = vpop.permute.xlu1 %2145  ;;  %v2255_v42 = vld [vmem:[#allocation4 + $0x78] sm:$0xff] }
 0x2af   : > { %2225 = vst.msk [vmem:[#allocation4 + $0x88] sm:$0xff] %vm2207_vm12, %v2146_v3  ;;  %5036 = vmatmul.mubr.msk.f32.gmra.mxu0 %vm2284_vm13, %v2255_v42  ;;  %v1955_v33 = vpop.permute.xlu0 %1954 }
 0x2b0   : > { %2033 = vst.msk [vmem:[#allocation4 + $0x90] sm:$0xff] %vm2014_vm11, %v1955_v33 }
 0x2b2   : > { %v1957_v57 = vpop.permute.xlu1 %1956 }
 0x2b3   : > { %2034 = vst.msk [vmem:[#allocation4 + $0x98] sm:$0xff] %vm2014_vm11, %v1957_v57  ;;  %v2148_v46 = vpop.permute.xlu0 %2147  ;;  %v2256_v54 = vld [vmem:[#allocation4 + $0x80] sm:$0xff] }
 0x2b4   : > { %2226 = vst.msk [vmem:[#allocation4 + $0x90] sm:$0xff] %vm2207_vm12, %v2148_v46  ;;  %5038 = vmatprep.mubr.msk.f32.mxu0 %vm2284_vm13, %v2256_v54 }
 0x2b6   : > { %v2150_v29 = vpop.permute.xlu1 %2149  ;;  %v2257_v49 = vld [vmem:[#allocation4 + $0x88] sm:$0xff] }
 0x2b7   : > { %2227 = vst.msk [vmem:[#allocation4 + $0x98] sm:$0xff] %vm2207_vm12, %v2150_v29  ;;  %5039 = vmatmul.mubr.msk.f32.gmra.mxu0 %vm2284_vm13, %v2257_v49  ;;  %v1959_v63 = vpop.permute.xlu0 %1958 }
 0x2b8   : > { %2035 = vst.msk [vmem:[#allocation4 + $0xa0] sm:$0xff] %vm2014_vm11, %v1959_v63 }
 0x2ba   : > { %v1961_v40 = vpop.permute.xlu1 %1960 }
 0x2bb   : > { %2036 = vst.msk [vmem:[#allocation4 + $0xa8] sm:$0xff] %vm2014_vm11, %v1961_v40  ;;  %v2152_v31 = vpop.permute.xlu0 %2151  ;;  %v2258_v2 = vld [vmem:[#allocation4 + $0x90] sm:$0xff] }
 0x2bc   : > { %2228 = vst.msk [vmem:[#allocation4 + $0xa0] sm:$0xff] %vm2207_vm12, %v2152_v31  ;;  %5041 = vmatprep.mubr.msk.f32.mxu0 %vm2284_vm13, %v2258_v2 }
 0x2be   : > { %v2154_v12 = vpop.permute.xlu1 %2153  ;;  %v2259_v18 = vld [vmem:[#allocation4 + $0x98] sm:$0xff] }
 0x2bf   : > { %2229 = vst.msk [vmem:[#allocation4 + $0xa8] sm:$0xff] %vm2207_vm12, %v2154_v12  ;;  %5042 = vmatmul.mubr.msk.f32.gmra.mxu0 %vm2284_vm13, %v2259_v18  ;;  %v1963_v60 = vpop.permute.xlu0 %1962 }
 0x2c0   : > { %2037 = vst.msk [vmem:[#allocation4 + $0xb0] sm:$0xff] %vm2014_vm11, %v1963_v60 }
 0x2c2   : > { %v1965_v19 = vpop.permute.xlu1 %1964 }
 0x2c3   : > { %2038 = vst.msk [vmem:[#allocation4 + $0xb8] sm:$0xff] %vm2014_vm11, %v1965_v19  ;;  %v2156_v28 = vpop.permute.xlu0 %2155  ;;  %v2260_v62 = vld [vmem:[#allocation4 + $0xa0] sm:$0xff] }
 0x2c4   : > { %2230 = vst.msk [vmem:[#allocation4 + $0xb0] sm:$0xff] %vm2207_vm12, %v2156_v28  ;;  %5044 = vmatprep.mubr.msk.f32.mxu0 %vm2284_vm13, %v2260_v62 }
 0x2c6   : > { %v2158_v56 = vpop.permute.xlu1 %2157  ;;  %v2261_v7 = vld [vmem:[#allocation4 + $0xa8] sm:$0xff] }
 0x2c7   : > { %2231 = vst.msk [vmem:[#allocation4 + $0xb8] sm:$0xff] %vm2207_vm12, %v2158_v56  ;;  %5045 = vmatmul.mubr.msk.f32.gmra.mxu0 %vm2284_vm13, %v2261_v7  ;;  %v1967_v53 = vpop.permute.xlu0 %1966 }
 0x2c8   : > { %2039 = vst.msk [vmem:[#allocation4 + $0xc0] sm:$0xff] %vm2014_vm11, %v1967_v53 }
 0x2ca   : > { %v1969_v61 = vpop.permute.xlu1 %1968 }
 0x2cb   : > { %2040 = vst.msk [vmem:[#allocation4 + $0xc8] sm:$0xff] %vm2014_vm11, %v1969_v61  ;;  %v2160_v55 = vpop.permute.xlu0 %2159  ;;  %v2262_v21 = vld [vmem:[#allocation4 + $0xb0] sm:$0xff] }
 0x2cc   : > { %2232 = vst.msk [vmem:[#allocation4 + $0xc0] sm:$0xff] %vm2207_vm12, %v2160_v55  ;;  %5047 = vmatprep.mubr.msk.f32.mxu0 %vm2284_vm13, %v2262_v21 }
 0x2ce   : > { %v2162_v39 = vpop.permute.xlu1 %2161  ;;  %v2263_v58 = vld [vmem:[#allocation4 + $0xb8] sm:$0xff] }
 0x2cf   : > { %2233 = vst.msk [vmem:[#allocation4 + $0xc8] sm:$0xff] %vm2207_vm12, %v2162_v39  ;;  %5048 = vmatmul.mubr.msk.f32.gmra.mxu0 %vm2284_vm13, %v2263_v58  ;;  %v1971_v13 = vpop.permute.xlu0 %1970 }
 0x2d0   : > { %2041 = vst.msk [vmem:[#allocation4 + $0xd0] sm:$0xff] %vm2014_vm11, %v1971_v13 }
 0x2d2   : > { %v1973_v0 = vpop.permute.xlu1 %1972 }
 0x2d3   : > { %2042 = vst.msk [vmem:[#allocation4 + $0xd8] sm:$0xff] %vm2014_vm11, %v1973_v0  ;;  %v2164_v1 = vpop.permute.xlu0 %2163  ;;  %v2264_v16 = vld [vmem:[#allocation4 + $0xc0] sm:$0xff] }
 0x2d4   : > { %2234 = vst.msk [vmem:[#allocation4 + $0xd0] sm:$0xff] %vm2207_vm12, %v2164_v1  ;;  %5050 = vmatprep.mubr.msk.f32.mxu0 %vm2284_vm13, %v2264_v16 }
 0x2d6   : > { %v2166_v38 = vpop.permute.xlu1 %2165  ;;  %v2265_v22 = vld [vmem:[#allocation4 + $0xc8] sm:$0xff] }
 0x2d7   : > { %2235 = vst.msk [vmem:[#allocation4 + $0xd8] sm:$0xff] %vm2207_vm12, %v2166_v38  ;;  %5051 = vmatmul.mubr.msk.f32.gmra.mxu0 %vm2284_vm13, %v2265_v22  ;;  %v1975_v48 = vpop.permute.xlu0 %1974 }
 0x2d8   : > { %2043 = vst.msk [vmem:[#allocation4 + $0xe0] sm:$0xff] %vm2014_vm11, %v1975_v48 }
 0x2da   : > { %v1977_v32 = vpop.permute.xlu1 %1976 }
 0x2db   : > { %2044 = vst.msk [vmem:[#allocation4 + $0xe8] sm:$0xff] %vm2014_vm11, %v1977_v32  ;;  %v2168_v23 = vpop.permute.xlu0 %2167  ;;  %v2266_v4 = vld [vmem:[#allocation4 + $0xd0] sm:$0xff] }
 0x2dc   : > { %2236 = vst.msk [vmem:[#allocation4 + $0xe0] sm:$0xff] %vm2207_vm12, %v2168_v23  ;;  %5053 = vmatprep.mubr.msk.f32.mxu0 %vm2284_vm13, %v2266_v4 }
 0x2de   : > { %v2170_v37 = vpop.permute.xlu1 %2169  ;;  %v2267_v30 = vld [vmem:[#allocation4 + $0xd8] sm:$0xff] }
 0x2df   : > { %2237 = vst.msk [vmem:[#allocation4 + $0xe8] sm:$0xff] %vm2207_vm12, %v2170_v37  ;;  %5054 = vmatmul.mubr.msk.f32.gmra.mxu0 %vm2284_vm13, %v2267_v30  ;;  %v1979_v6 = vpop.permute.xlu0 %1978 }
 0x2e0   : > { %2045 = vst.msk [vmem:[#allocation4 + $0xf0] sm:$0xff] %vm2014_vm11, %v1979_v6 }
 0x2e2   : > { %v1981_v43 = vpop.permute.xlu1 %1980 }
 0x2e3   : > { %v2268_v15 = vld [vmem:[#allocation4 + $0xe0] sm:$0xff]  ;;  %2046 = vst.msk [vmem:[#allocation4 + $0xf8] sm:$0xff] %vm2014_vm11, %v1981_v43  ;;  %v2172_v44 = vpop.permute.xlu0 %2171 }
 0x2e4   : > { %5056 = vmatprep.mubr.msk.f32.mxu0 %vm2284_vm13, %v2268_v15  ;;  %2238 = vst.msk [vmem:[#allocation4 + $0xf0] sm:$0xff] %vm2207_vm12, %v2172_v44 }
 0x2e6   : > { %v2269_v8 = vld [vmem:[#allocation4 + $0xe8] sm:$0xff]  ;;  %v2174_v24 = vpop.permute.xlu1 %2173 }
 0x2e7   : > { %5057 = vmatmul.mubr.msk.f32.gmra.mxu0 %vm2284_vm13, %v2269_v8  ;;  %2239 = vst.msk [vmem:[#allocation4 + $0xf8] sm:$0xff] %vm2207_vm12, %v2174_v24 }
 0x2eb   : > { %v2270_v17 = vld [vmem:[#allocation4 + $0xf0] sm:$0xff] }
 0x2ec   : > { %5059 = vmatprep.mubr.msk.f32.mxu0 %vm2284_vm13, %v2270_v17 }
 0x2ee   : > { %v2271_v26 = vld [vmem:[#allocation4 + $0xf8] sm:$0xff] }
 0x2ef   : > { %5060 = vmatmul.mubr.msk.f32.gmra.mxu0 %vm2284_vm13, %v2271_v26 }
 0x306   : > { %v2860_v51 = vpop.permute.xlu1 %2859 }
 0x307   : > { %2954 = vst.msk [vmem:[#allocation4 + $0x8] sm:$0xff] %vm855_vm15, %v2860_v51  ;;  %v2858_v35 = vpop.permute.xlu0 %2857 }
 0x308   : > { %2953 = vst.msk [vmem:[#allocation4] sm:$0xff] %vm855_vm15, %v2858_v35 }
 0x353   : > { %v5016_v9 = vpop.f32.mrf.mxu0 }
 0x354   : > { %v2457_v10 = vadd.f32 %v5016_v9, %v7323_v41 }
 0x355   : > { %v2451_v59 = vpop.f32.mrf.mxu0 }
 0x356   : > { %v2611_v11 = vmax.f32 %v2457_v10, 0.0  ;;  %v2452_v27 = vadd.f32 %v7323_v41, %v2451_v59 }
 0x357   : > { %v5019_v36 = vpop.f32.mrf.mxu0 }
 0x358   : > { %2698 = vst.msk [vmem:[#allocation3 + $0x21] sm:$0xff] %vm542_vm0, %v2611_v11  ;;  %v2610_v5 = vmax.f32 %v2452_v27, 0.0  ;;  %v2467_v34 = vadd.f32 %v5019_v36, %v7323_v41 }
 0x359   : > { %v2461_v20 = vpop.f32.mrf.mxu0 }
 0x35a   : > { %2697 = vst.msk [vmem:[#allocation3 + $0x19] sm:$0xff] %vm542_vm0, %v2610_v5  ;;  %v2613_v45 = vmax.f32 %v2467_v34, 0.0  ;;  %v2462_v14 = vadd.f32 %v7323_v41, %v2461_v20 }
 0x35b   : > { %v5022_v3 = vpop.f32.mrf.mxu0 }
 0x35c   : > { %2700 = vst.msk [vmem:[#allocation3 + $0x39] sm:$0xff] %vm542_vm0, %v2613_v45  ;;  %v2612_v42 = vmax.f32 %v2462_v14, 0.0  ;;  %v2477_v33 = vadd.f32 %v5022_v3, %v7323_v41 }
 0x35d   : > { %v2471_v57 = vpop.f32.mrf.mxu0 }
 0x35e   : > { %2699 = vst.msk [vmem:[#allocation3 + $0x31] sm:$0xff] %vm542_vm0, %v2612_v42  ;;  %v2615_v46 = vmax.f32 %v2477_v33, 0.0  ;;  %v2472_v54 = vadd.f32 %v7323_v41, %v2471_v57 }
 0x35f   : > { %v5025_v29 = vpop.f32.mrf.mxu0  ;;  %v7336_v49 = vld [vmem:[#allocation3 + $0x21] sm:$0xff] }
 0x360   : > { %2702 = vst.msk [vmem:[#allocation3 + $0x51] sm:$0xff] %vm542_vm0, %v2615_v46  ;;  %v2614_v63 = vmax.f32 %v2472_v54, 0.0  ;;  %v2487_v40 = vadd.f32 %v5025_v29, %v7323_v41  ;;  %2863 = vrot.lane.b32.xlu1 %v7336_v49, %s5404_s6 }
 0x361   : > { %v2481_v31 = vpop.f32.mrf.mxu0  ;;  %v7342_v2 = vld [vmem:[#allocation3 + $0x19] sm:$0xff] }
 0x362   : > { %v7344_v12 = vld [vmem:[#allocation3 + $0x20] sm:$0xff]  ;;  %2701 = vst.msk [vmem:[#allocation3 + $0x49] sm:$0xff] %vm542_vm0, %v2614_v63  ;;  %v2617_v18 = vmax.f32 %v2487_v40, 0.0  ;;  %v2482_v60 = vadd.f32 %v7323_v41, %v2481_v31  ;;  %2861 = vrot.lane.b32.xlu0 %v7342_v2, %s5404_s6  ;;  %v7352_v19 = vld [vmem:[#allocation3 + $0x18] sm:$0xff] }
 0x363   : > { %2764 = vst.msk [vmem:[#allocation4 + $0x18] sm:$0xff] %vm542_vm0, %v7344_v12  ;;  %v5028_v28 = vpop.f32.mrf.mxu0  ;;  %v7354_v62 = vld [vmem:[#allocation3 + $0x39] sm:$0xff]  ;;  %2763 = vst.msk [vmem:[#allocation4 + $0x10] sm:$0xff] %vm542_vm0, %v7352_v19 }
 0x364   : > { %2704 = vst.msk [vmem:[#allocation3 + $0x69] sm:$0xff] %vm542_vm0, %v2617_v18  ;;  %v2616_v56 = vmax.f32 %v2482_v60, 0.0  ;;  %v2497_v7 = vadd.f32 %v5028_v28, %v7323_v41  ;;  %2867 = vrot.lane.b32.xlu1 %v7354_v62, %s5404_s6 }
 0x365   : > { %v2491_v53 = vpop.f32.mrf.mxu0  ;;  %v7362_v61 = vld [vmem:[#allocation3 + $0x31] sm:$0xff] }
 0x366   : > { %v7364_v55 = vld [vmem:[#allocation3 + $0x38] sm:$0xff]  ;;  %2703 = vst.msk [vmem:[#allocation3 + $0x61] sm:$0xff] %vm542_vm0, %v2616_v56  ;;  %v2619_v21 = vmax.f32 %v2497_v7, 0.0  ;;  %v2492_v39 = vadd.f32 %v7323_v41, %v2491_v53  ;;  %2865 = vrot.lane.b32.xlu0 %v7362_v61, %s5404_s6  ;;  %v7372_v58 = vld [vmem:[#allocation3 + $0x30] sm:$0xff] }
 0x367   : > { %2766 = vst.msk [vmem:[#allocation4 + $0x28] sm:$0xff] %vm542_vm0, %v7364_v55  ;;  %v5031_v13 = vpop.f32.mrf.mxu0  ;;  %v7374_v0 = vld [vmem:[#allocation3 + $0x51] sm:$0xff]  ;;  %2765 = vst.msk [vmem:[#allocation4 + $0x20] sm:$0xff] %vm542_vm0, %v7372_v58 }
 0x368   : > { %2706 = vst.msk [vmem:[#allocation3 + $0x81] sm:$0xff] %vm542_vm0, %v2619_v21  ;;  %v2618_v1 = vmax.f32 %v2492_v39, 0.0  ;;  %v2507_v16 = vadd.f32 %v5031_v13, %v7323_v41  ;;  %2871 = vrot.lane.b32.xlu1 %v7374_v0, %s5404_s6 }
 0x369   : > { %v2501_v38 = vpop.f32.mrf.mxu0  ;;  %v7382_v22 = vld [vmem:[#allocation3 + $0x49] sm:$0xff] }
 0x36a   : > { %v7384_v48 = vld [vmem:[#allocation3 + $0x50] sm:$0xff]  ;;  %2705 = vst.msk [vmem:[#allocation3 + $0x79] sm:$0xff] %vm542_vm0, %v2618_v1  ;;  %v2621_v32 = vmax.f32 %v2507_v16, 0.0  ;;  %v2502_v23 = vadd.f32 %v7323_v41, %v2501_v38  ;;  %2869 = vrot.lane.b32.xlu0 %v7382_v22, %s5404_s6  ;;  %v7392_v4 = vld [vmem:[#allocation3 + $0x48] sm:$0xff] }
 0x36b   : > { %2768 = vst.msk [vmem:[#allocation4 + $0x38] sm:$0xff] %vm542_vm0, %v7384_v48  ;;  %v5034_v52 = vpop.f32.mrf.mxu0  ;;  %v7394_v50 = vld [vmem:[#allocation3 + $0x69] sm:$0xff]  ;;  %2767 = vst.msk [vmem:[#allocation4 + $0x30] sm:$0xff] %vm542_vm0, %v7392_v4 }
 0x36c   : > { %2708 = vst.msk [vmem:[#allocation3 + $0x99] sm:$0xff] %vm542_vm0, %v2621_v32  ;;  %v2620_v37 = vmax.f32 %v2502_v23, 0.0  ;;  %v2517_v30 = vadd.f32 %v5034_v52, %v7323_v41  ;;  %2875 = vrot.lane.b32.xlu1 %v7394_v50, %s5404_s6 }
 0x36d   : > { %v2511_v15 = vpop.f32.mrf.mxu0  ;;  %v7402_v8 = vld [vmem:[#allocation3 + $0x61] sm:$0xff] }
 0x36e   : > { %v7404_v6 = vld [vmem:[#allocation3 + $0x68] sm:$0xff]  ;;  %2707 = vst.msk [vmem:[#allocation3 + $0x91] sm:$0xff] %vm542_vm0, %v2620_v37  ;;  %v2623_v43 = vmax.f32 %v2517_v30, 0.0  ;;  %v2512_v44 = vadd.f32 %v7323_v41, %v2511_v15  ;;  %2873 = vrot.lane.b32.xlu0 %v7402_v8, %s5404_s6  ;;  %v7412_v24 = vld [vmem:[#allocation3 + $0x60] sm:$0xff] }
 0x36f   : > { %2770 = vst.msk [vmem:[#allocation4 + $0x48] sm:$0xff] %vm542_vm0, %v7404_v6  ;;  %v5037_v17 = vpop.f32.mrf.mxu0  ;;  %v2804_v26 = vld [vmem:[#allocation3 + $0x81] sm:$0xff]  ;;  %2769 = vst.msk [vmem:[#allocation4 + $0x40] sm:$0xff] %vm542_vm0, %v7412_v24 }
 0x370   : > { %2710 = vst.msk [vmem:[#allocation3 + $0xb1] sm:$0xff] %vm542_vm0, %v2623_v43  ;;  %v2622_v47 = vmax.f32 %v2512_v44, 0.0  ;;  %v2527_v51 = vadd.f32 %v5037_v17, %v7323_v41  ;;  %2879 = vrot.lane.b32.xlu1 %v2804_v26, %s5404_s6 }
 0x371   : > { %v2521_v25 = vpop.f32.mrf.mxu0  ;;  %v7419_v35 = vld [vmem:[#allocation3 + $0x79] sm:$0xff] }
 0x372   : > { %v7421_v9 = vld [vmem:[#allocation3 + $0x80] sm:$0xff]  ;;  %2709 = vst.msk [vmem:[#allocation3 + $0xa9] sm:$0xff] %vm542_vm0, %v2622_v47  ;;  %v2625_v10 = vmax.f32 %v2527_v51, 0.0  ;;  %v2522_v59 = vadd.f32 %v7323_v41, %v2521_v25  ;;  %2877 = vrot.lane.b32.xlu0 %v7419_v35, %s5404_s6  ;;  %v7429_v11 = vld [vmem:[#allocation3 + $0x78] sm:$0xff] }
 0x373   : > { %2772 = vst.msk [vmem:[#allocation4 + $0x58] sm:$0xff] %vm542_vm0, %v7421_v9  ;;  %v2806_v27 = vld [vmem:[#allocation3 + $0x99] sm:$0xff]  ;;  %2771 = vst.msk [vmem:[#allocation4 + $0x50] sm:$0xff] %vm542_vm0, %v7429_v11 }
 0x374   : > { %2712 = vst.msk [vmem:[#allocation3 + $0xc9] sm:$0xff] %vm542_vm0, %v2625_v10  ;;  %v2624_v36 = vmax.f32 %v2522_v59, 0.0  ;;  %2883 = vrot.lane.b32.xlu1 %v2806_v27, %s5404_s6 }
 0x375   : > { %v2805_v5 = vld [vmem:[#allocation3 + $0x91] sm:$0xff] }
 0x376   : > { %v7435_v34 = vld [vmem:[#allocation3 + $0x98] sm:$0xff]  ;;  %2711 = vst.msk [vmem:[#allocation3 + $0xc1] sm:$0xff] %vm542_vm0, %v2624_v36  ;;  %2881 = vrot.lane.b32.xlu0 %v2805_v5, %s5404_s6  ;;  %v7441_v20 = vld [vmem:[#allocation3 + $0x90] sm:$0xff] }
 0x377   : > { %2774 = vst.msk [vmem:[#allocation4 + $0x68] sm:$0xff] %vm542_vm0, %v7435_v34  ;;  %v5040_v45 = vpop.f32.mrf.mxu0  ;;  %v2808_v14 = vld [vmem:[#allocation3 + $0xb1] sm:$0xff]  ;;  %2773 = vst.msk [vmem:[#allocation4 + $0x60] sm:$0xff] %vm542_vm0, %v7441_v20 }
 0x378   : > { %v2537_v3 = vadd.f32 %v5040_v45, %v7323_v41  ;;  %2887 = vrot.lane.b32.xlu1 %v2808_v14, %s5404_s6 }
 0x379   : > { %v2531_v42 = vpop.f32.mrf.mxu0  ;;  %v2807_v33 = vld [vmem:[#allocation3 + $0xa9] sm:$0xff] }
 0x37a   : > { %v7447_v57 = vld [vmem:[#allocation3 + $0xb0] sm:$0xff]  ;;  %v2627_v46 = vmax.f32 %v2537_v3, 0.0  ;;  %v2532_v54 = vadd.f32 %v7323_v41, %v2531_v42  ;;  %2885 = vrot.lane.b32.xlu0 %v2807_v33, %s5404_s6  ;;  %v7453_v29 = vld [vmem:[#allocation3 + $0xa8] sm:$0xff] }
 0x37b   : > { %2776 = vst.msk [vmem:[#allocation4 + $0x78] sm:$0xff] %vm542_vm0, %v7447_v57  ;;  %v2810_v63 = vld [vmem:[#allocation3 + $0xc9] sm:$0xff]  ;;  %2775 = vst.msk [vmem:[#allocation4 + $0x70] sm:$0xff] %vm542_vm0, %v7453_v29 }
 0x37c   : > { %2714 = vst.msk [vmem:[#allocation3 + $0xe1] sm:$0xff] %vm542_vm0, %v2627_v46  ;;  %v2626_v40 = vmax.f32 %v2532_v54, 0.0  ;;  %2891 = vrot.lane.b32.xlu1 %v2810_v63, %s5404_s6 }
 0x37d   : > { %v2809_v31 = vld [vmem:[#allocation3 + $0xc1] sm:$0xff] }
 0x37e   : > { %v7459_v18 = vld [vmem:[#allocation3 + $0xc8] sm:$0xff]  ;;  %2713 = vst.msk [vmem:[#allocation3 + $0xd9] sm:$0xff] %vm542_vm0, %v2626_v40  ;;  %2889 = vrot.lane.b32.xlu0 %v2809_v31, %s5404_s6  ;;  %v7465_v60 = vld [vmem:[#allocation3 + $0xc0] sm:$0xff] }
 0x37f   : > { %2778 = vst.msk [vmem:[#allocation4 + $0x88] sm:$0xff] %vm542_vm0, %v7459_v18  ;;  %v5043_v28 = vpop.f32.mrf.mxu0  ;;  %2777 = vst.msk [vmem:[#allocation4 + $0x80] sm:$0xff] %vm542_vm0, %v7465_v60 }
 0x380   : > { %v2547_v56 = vadd.f32 %v5043_v28, %v7323_v41 }
 0x381   : > { %v2541_v7 = vpop.f32.mrf.mxu0 }
 0x382   : > { %v2629_v53 = vmax.f32 %v2547_v56, 0.0  ;;  %v2542_v21 = vadd.f32 %v7323_v41, %v2541_v7 }
 0x383   : > { %v2812_v39 = vld [vmem:[#allocation3 + $0xe1] sm:$0xff] }
 0x384   : > { %2716 = vst.msk [vmem:[#allocation3 + $0xf9] sm:$0xff] %vm542_vm0, %v2629_v53  ;;  %v2628_v13 = vmax.f32 %v2542_v21, 0.0  ;;  %2895 = vrot.lane.b32.xlu1 %v2812_v39, %s5404_s6 }
 0x385   : > { %v2811_v1 = vld [vmem:[#allocation3 + $0xd9] sm:$0xff] }
 0x386   : > { %v7473_v16 = vld [vmem:[#allocation3 + $0xe0] sm:$0xff]  ;;  %2715 = vst.msk [vmem:[#allocation3 + $0xf1] sm:$0xff] %vm542_vm0, %v2628_v13  ;;  %2893 = vrot.lane.b32.xlu0 %v2811_v1, %s5404_s6  ;;  %v7479_v38 = vld [vmem:[#allocation3 + $0xd8] sm:$0xff] }
 0x387   : > { %2780 = vst.msk [vmem:[#allocation4 + $0x98] sm:$0xff] %vm542_vm0, %v7473_v16  ;;  %v5046_v32 = vpop.f32.mrf.mxu0  ;;  %2779 = vst.msk [vmem:[#allocation4 + $0x90] sm:$0xff] %vm542_vm0, %v7479_v38 }
 0x388   : > { %v2557_v23 = vadd.f32 %v5046_v32, %v7323_v41 }
 0x389   : > { %v2551_v52 = vpop.f32.mrf.mxu0 }
 0x38a   : > { %v2631_v37 = vmax.f32 %v2557_v23, 0.0  ;;  %v2552_v30 = vadd.f32 %v7323_v41, %v2551_v52 }
 0x38b   : > { %v2814_v15 = vld [vmem:[#allocation3 + $0xf9] sm:$0xff] }
 0x38c   : > { %2718 = vst.msk [vmem:[#allocation3 + $0x111] sm:$0xff] %vm542_vm0, %v2631_v37  ;;  %v2630_v43 = vmax.f32 %v2552_v30, 0.0  ;;  %2899 = vrot.lane.b32.xlu1 %v2814_v15, %s5404_s6 }
 0x38d   : > { %v2813_v44 = vld [vmem:[#allocation3 + $0xf1] sm:$0xff] }
 0x38e   : > { %v7487_v17 = vld [vmem:[#allocation3 + $0xf8] sm:$0xff]  ;;  %2717 = vst.msk [vmem:[#allocation3 + $0x109] sm:$0xff] %vm542_vm0, %v2630_v43  ;;  %2897 = vrot.lane.b32.xlu0 %v2813_v44, %s5404_s6  ;;  %v7493_v26 = vld [vmem:[#allocation3 + $0xf0] sm:$0xff] }
 0x38f   : > { %2782 = vst.msk [vmem:[#allocation4 + $0xa8] sm:$0xff] %vm542_vm0, %v7487_v17  ;;  %v5049_v47 = vpop.f32.mrf.mxu0  ;;  %2781 = vst.msk [vmem:[#allocation4 + $0xa0] sm:$0xff] %vm542_vm0, %v7493_v26 }
 0x390   : > { %v2567_v51 = vadd.f32 %v5049_v47, %v7323_v41 }
 0x391   : > { %v2561_v25 = vpop.f32.mrf.mxu0 }
 0x392   : > { %v2633_v10 = vmax.f32 %v2567_v51, 0.0  ;;  %v2562_v59 = vadd.f32 %v7323_v41, %v2561_v25 }
 0x393   : > { %v2816_v27 = vld [vmem:[#allocation3 + $0x111] sm:$0xff] }
 0x394   : > { %2720 = vst.msk [vmem:[#allocation3 + $0x129] sm:$0xff] %vm542_vm0, %v2633_v10  ;;  %v2632_v36 = vmax.f32 %v2562_v59, 0.0  ;;  %2903 = vrot.lane.b32.xlu1 %v2816_v27, %s5404_s6 }
 0x395   : > { %v2815_v5 = vld [vmem:[#allocation3 + $0x109] sm:$0xff] }
 0x396   : > { %v7501_v45 = vld [vmem:[#allocation3 + $0x110] sm:$0xff]  ;;  %2719 = vst.msk [vmem:[#allocation3 + $0x121] sm:$0xff] %vm542_vm0, %v2632_v36  ;;  %2901 = vrot.lane.b32.xlu0 %v2815_v5, %s5404_s6  ;;  %v7507_v14 = vld [vmem:[#allocation3 + $0x108] sm:$0xff] }
 0x397   : > { %2784 = vst.msk [vmem:[#allocation4 + $0xb8] sm:$0xff] %vm542_vm0, %v7501_v45  ;;  %v5052_v3 = vpop.f32.mrf.mxu0  ;;  %2783 = vst.msk [vmem:[#allocation4 + $0xb0] sm:$0xff] %vm542_vm0, %v7507_v14 }
 0x398   : > { %v2577_v42 = vadd.f32 %v5052_v3, %v7323_v41  ;;  %v2986_v3 = vld [vmem:[#allocation3 + $0xa] sm:$0xff] }
 0x399   : > { %v2571_v33 = vpop.f32.mrf.mxu0 }
 0x39a   : > { %v2635_v46 = vmax.f32 %v2577_v42, 0.0  ;;  %v2572_v54 = vadd.f32 %v7323_v41, %v2571_v33 }
 0x39b   : > { %v2818_v63 = vld [vmem:[#allocation3 + $0x129] sm:$0xff] }
 0x39c   : > { %2722 = vst.msk [vmem:[#allocation3 + $0x141] sm:$0xff] %vm542_vm0, %v2635_v46  ;;  %v2634_v40 = vmax.f32 %v2572_v54, 0.0  ;;  %2907 = vrot.lane.b32.xlu1 %v2818_v63, %s5404_s6  ;;  %v2985_v46 = vld [vmem:[#allocation3 + $0x2] sm:$0xff]  ;;  %v7557_v63 = vld [vmem:[#allocation3 + $0x1a] sm:$0xff] }
 0x39d   : > { %v2817_v31 = vld [vmem:[#allocation3 + $0x121] sm:$0xff] }
 0x39e   : > { %v7515_v28 = vld [vmem:[#allocation3 + $0x128] sm:$0xff]  ;;  %2721 = vst.msk [vmem:[#allocation3 + $0x139] sm:$0xff] %vm542_vm0, %v2634_v40  ;;  %2905 = vrot.lane.b32.xlu0 %v2817_v31, %s5404_s6  ;;  %v7521_v56 = vld [vmem:[#allocation3 + $0x120] sm:$0xff]  ;;  %v7565_v31 = vld [vmem:[#allocation3 + $0x32] sm:$0xff] }
 0x39f   : > { %2786 = vst.msk [vmem:[#allocation4 + $0xc8] sm:$0xff] %vm542_vm0, %v7515_v28  ;;  %v5055_v7 = vpop.f32.mrf.mxu0  ;;  %2785 = vst.msk [vmem:[#allocation4 + $0xc0] sm:$0xff] %vm542_vm0, %v7521_v56  ;;  %v7553_v54 = vld [vmem:[#allocation3 + $0x22] sm:$0xff]  ;;  %v7561_v40 = vld [vmem:[#allocation3 + $0x3a] sm:$0xff] }
 0x3a0   : > { %v2587_v53 = vadd.f32 %v5055_v7, %v7323_v41  ;;  %v7569_v7 = vld [vmem:[#allocation3 + $0x52] sm:$0xff] }
 0x3a1   : > { %v2581_v21 = vpop.f32.mrf.mxu0 }
 0x3a2   : > { %v2637_v39 = vmax.f32 %v2587_v53, 0.0  ;;  %v2582_v13 = vadd.f32 %v7323_v41, %v2581_v21  ;;  %v7573_v53 = vld [vmem:[#allocation3 + $0x4a] sm:$0xff] }
 0x3a3   : > { %v2820_v1 = vld [vmem:[#allocation3 + $0x141] sm:$0xff]  ;;  %v7577_v21 = vld [vmem:[#allocation3 + $0x6a] sm:$0xff] }
 0x3a4   : > { %2724 = vst.msk [vmem:[#allocation3 + $0x159] sm:$0xff] %vm542_vm0, %v2637_v39  ;;  %v2636_v32 = vmax.f32 %v2582_v13, 0.0  ;;  %2911 = vrot.lane.b32.xlu1 %v2820_v1, %s5404_s6  ;;  %v7581_v39 = vld [vmem:[#allocation3 + $0x62] sm:$0xff]  ;;  %v7589_v1 = vld [vmem:[#allocation3 + $0x7a] sm:$0xff] }
 0x3a5   : > { %v2819_v23 = vld [vmem:[#allocation3 + $0x139] sm:$0xff]  ;;  %v7585_v13 = vld [vmem:[#allocation3 + $0x82] sm:$0xff] }
 0x3a6   : > { %v7529_v52 = vld [vmem:[#allocation3 + $0x140] sm:$0xff]  ;;  %2723 = vst.msk [vmem:[#allocation3 + $0x151] sm:$0xff] %vm542_vm0, %v2636_v32  ;;  %2909 = vrot.lane.b32.xlu0 %v2819_v23, %s5404_s6  ;;  %v7535_v37 = vld [vmem:[#allocation3 + $0x138] sm:$0xff] }
 0x3a7   : > { %2788 = vst.msk [vmem:[#allocation4 + $0xd8] sm:$0xff] %vm542_vm0, %v7529_v52  ;;  %v5058_v30 = vpop.f32.mrf.mxu0  ;;  %2787 = vst.msk [vmem:[#allocation4 + $0xd0] sm:$0xff] %vm542_vm0, %v7535_v37  ;;  %v7593_v32 = vld [vmem:[#allocation3 + $0x9a] sm:$0xff]  ;;  %v7597_v23 = vld [vmem:[#allocation3 + $0x92] sm:$0xff] }
 0x3a8   : > { %v2597_v15 = vadd.f32 %v5058_v30, %v7323_v41 }
 0x3a9   : > { %v2591_v43 = vpop.f32.mrf.mxu0 }
 0x3aa   : > { %v2639_v44 = vmax.f32 %v2597_v15, 0.0  ;;  %v2592_v47 = vadd.f32 %v7323_v41, %v2591_v43  ;;  %v7602_v15 = vld [vmem:[#allocation3 + $0xb2] sm:$0xff] }
 0x3ab   : > { %v2822_v51 = vld [vmem:[#allocation3 + $0x159] sm:$0xff] }
 0x3ac   : > { %2726 = vst.msk [vmem:[#allocation3 + $0x171] sm:$0xff] %vm542_vm0, %v2639_v44  ;;  %v2638_v25 = vmax.f32 %v2592_v47, 0.0  ;;  %2915 = vrot.lane.b32.xlu1 %v2822_v51, %s5404_s6  ;;  %v7607_v44 = vld [vmem:[#allocation3 + $0xaa] sm:$0xff] }
 0x3ad   : > { %v2821_v10 = vld [vmem:[#allocation3 + $0x151] sm:$0xff] }
 0x3ae   : > { %v2758_v59 = vld [vmem:[#allocation3 + $0x158] sm:$0xff]  ;;  %2725 = vst.msk [vmem:[#allocation3 + $0x169] sm:$0xff] %vm542_vm0, %v2638_v25  ;;  %2913 = vrot.lane.b32.xlu0 %v2821_v10, %s5404_s6  ;;  %v2757_v27 = vld [vmem:[#allocation3 + $0x150] sm:$0xff]  ;;  %v7617_v10 = vld [vmem:[#allocation3 + $0xc2] sm:$0xff] }
 0x3af   : > { %2790 = vst.msk [vmem:[#allocation4 + $0xe8] sm:$0xff] %vm542_vm0, %v2758_v59  ;;  %2789 = vst.msk [vmem:[#allocation4 + $0xe0] sm:$0xff] %vm542_vm0, %v2757_v27  ;;  %v7612_v51 = vld [vmem:[#allocation3 + $0xca] sm:$0xff]  ;;  %v3004_v27 = vld [vmem:[#allocation3 + $0xe2] sm:$0xff] }
 0x3b3   : > { %v2824_v36 = vld [vmem:[#allocation3 + $0x171] sm:$0xff] }
 0x3b4   : > { %2919 = vrot.lane.b32.xlu1 %v2824_v36, %s5404_s6 }
 0x3b5   : > { %v2823_v5 = vld [vmem:[#allocation3 + $0x169] sm:$0xff] }
 0x3b6   : > { %v2760_v42 = vld [vmem:[#allocation3 + $0x170] sm:$0xff]  ;;  %2917 = vrot.lane.b32.xlu0 %v2823_v5, %s5404_s6  ;;  %v2759_v33 = vld [vmem:[#allocation3 + $0x168] sm:$0xff]  ;;  %v3003_v5 = vld [vmem:[#allocation3 + $0xda] sm:$0xff] }
 0x3b7   : > { %2792 = vst.msk [vmem:[#allocation4 + $0xf8] sm:$0xff] %vm542_vm0, %v2760_v42  ;;  %2791 = vst.msk [vmem:[#allocation4 + $0xf0] sm:$0xff] %vm542_vm0, %v2759_v33  ;;  %v3006_v42 = vld [vmem:[#allocation3 + $0xfa] sm:$0xff] }
 0x3b8   : > { %3051 = vrot.lane.b32.xlu1 %v2986_v3, %s5405_s12 }
 0x3ba   : > { %3049 = vrot.lane.b32.xlu0 %v2985_v46, %s5405_s12  ;;  %v3005_v46 = vld [vmem:[#allocation3 + $0xf2] sm:$0xff] }
 0x3bc   : > { %3055 = vrot.lane.b32.xlu1 %v7553_v54, %s5405_s12 }
 0x3be   : > { %3053 = vrot.lane.b32.xlu0 %v7557_v63, %s5405_s12 }
 0x3c0   : > { %3059 = vrot.lane.b32.xlu1 %v7561_v40, %s5405_s12 }
 0x3c2   : > { %3057 = vrot.lane.b32.xlu0 %v7565_v31, %s5405_s12 }
 0x3c4   : > { %3063 = vrot.lane.b32.xlu1 %v7569_v7, %s5405_s12 }
 0x3c6   : > { %3061 = vrot.lane.b32.xlu0 %v7573_v53, %s5405_s12 }
 0x3c8   : > { %3067 = vrot.lane.b32.xlu1 %v7577_v21, %s5405_s12 }
 0x3ca   : > { %3065 = vrot.lane.b32.xlu0 %v7581_v39, %s5405_s12 }
 0x3cc   : > { %3071 = vrot.lane.b32.xlu1 %v7585_v13, %s5405_s12 }
 0x3ce   : > { %3069 = vrot.lane.b32.xlu0 %v7589_v1, %s5405_s12 }
 0x3d0   : > { %3075 = vrot.lane.b32.xlu1 %v7593_v32, %s5405_s12 }
 0x3d2   : > { %v2864_v30 = vpop.permute.xlu1 %2863  ;;  %3073 = vrot.lane.b32.xlu0 %v7597_v23, %s5405_s12 }
 0x3d3   : > { %2956 = vst.msk [vmem:[#allocation4 + $0x18] sm:$0xff] %vm855_vm15, %v2864_v30 }
 0x3d4   : > { %v2862_v43 = vpop.permute.xlu0 %2861  ;;  %3079 = vrot.lane.b32.xlu1 %v7602_v15, %s5405_s12 }
 0x3d5   : > { %2955 = vst.msk [vmem:[#allocation4 + $0x10] sm:$0xff] %vm855_vm15, %v2862_v43  ;;  %v3008_v43 = vld [vmem:[#allocation3 + $0x112] sm:$0xff] }
 0x3d6   : > { %v2868_v47 = vpop.permute.xlu1 %2867  ;;  %3077 = vrot.lane.b32.xlu0 %v7607_v44, %s5405_s12 }
 0x3d7   : > { %2958 = vst.msk [vmem:[#allocation4 + $0x28] sm:$0xff] %vm855_vm15, %v2868_v47 }
 0x3d8   : > { %3083 = vrot.lane.b32.xlu1 %v7612_v51, %s5405_s12  ;;  %v2866_v25 = vpop.permute.xlu0 %2865 }
 0x3d9   : > { %2957 = vst.msk [vmem:[#allocation4 + $0x20] sm:$0xff] %vm855_vm15, %v2866_v25  ;;  %v3007_v25 = vld [vmem:[#allocation3 + $0x10a] sm:$0xff] }
 0x3da   : > { %v2872_v59 = vpop.permute.xlu1 %2871  ;;  %3081 = vrot.lane.b32.xlu0 %v7617_v10, %s5405_s12 }
 0x3db   : > { %2960 = vst.msk [vmem:[#allocation4 + $0x38] sm:$0xff] %vm855_vm15, %v2872_v59 }
 0x3dc   : > { %3087 = vrot.lane.b32.xlu1 %v3004_v27, %s5405_s12  ;;  %v2870_v36 = vpop.permute.xlu0 %2869  ;;  %v3010_v27 = vld [vmem:[#allocation3 + $0x12a] sm:$0xff] }
 0x3dd   : > { %2959 = vst.msk [vmem:[#allocation4 + $0x30] sm:$0xff] %vm855_vm15, %v2870_v36 }
 0x3de   : > { %v2876_v3 = vpop.permute.xlu1 %2875  ;;  %3085 = vrot.lane.b32.xlu0 %v3003_v5, %s5405_s12  ;;  %v3009_v5 = vld [vmem:[#allocation3 + $0x122] sm:$0xff] }
 0x3df   : > { %2962 = vst.msk [vmem:[#allocation4 + $0x48] sm:$0xff] %vm855_vm15, %v2876_v3 }
 0x3e0   : > { %3091 = vrot.lane.b32.xlu1 %v3006_v42, %s5405_s12  ;;  %v2874_v33 = vpop.permute.xlu0 %2873  ;;  %v3012_v42 = vld [vmem:[#allocation3 + $0x142] sm:$0xff] }
 0x3e1   : > { %2961 = vst.msk [vmem:[#allocation4 + $0x40] sm:$0xff] %vm855_vm15, %v2874_v33 }
 0x3e2   : > { %v2880_v30 = vpop.permute.xlu1 %2879  ;;  %3089 = vrot.lane.b32.xlu0 %v3005_v46, %s5405_s12  ;;  %v3011_v46 = vld [vmem:[#allocation3 + $0x13a] sm:$0xff] }
 0x3e3   : > { %2964 = vst.msk [vmem:[#allocation4 + $0x58] sm:$0xff] %vm855_vm15, %v2880_v30 }
 0x3e4   : > { %3095 = vrot.lane.b32.xlu1 %v3008_v43, %s5405_s12  ;;  %v2878_v47 = vpop.permute.xlu0 %2877  ;;  %v3014_v43 = vld [vmem:[#allocation3 + $0x15a] sm:$0xff] }
 0x3e5   : > { %2963 = vst.msk [vmem:[#allocation4 + $0x50] sm:$0xff] %vm855_vm15, %v2878_v47 }
 0x3e6   : > { %v2884_v59 = vpop.permute.xlu1 %2883  ;;  %3093 = vrot.lane.b32.xlu0 %v3007_v25, %s5405_s12  ;;  %v3013_v25 = vld [vmem:[#allocation3 + $0x152] sm:$0xff] }
 0x3e7   : > { %2966 = vst.msk [vmem:[#allocation4 + $0x68] sm:$0xff] %vm855_vm15, %v2884_v59  ;;  %v3016_v59 = vld [vmem:[#allocation3 + $0x172] sm:$0xff] }
 0x3e8   : > { %3099 = vrot.lane.b32.xlu1 %v3010_v27, %s5405_s12  ;;  %v2882_v36 = vpop.permute.xlu0 %2881  ;;  %v3015_v27 = vld [vmem:[#allocation3 + $0x16a] sm:$0xff] }
 0x3e9   : > { %2965 = vst.msk [vmem:[#allocation4 + $0x60] sm:$0xff] %vm855_vm15, %v2882_v36 }
 0x3ea   : > { %v2888_v3 = vpop.permute.xlu1 %2887  ;;  %3097 = vrot.lane.b32.xlu0 %v3009_v5, %s5405_s12 }
 0x3eb   : > { %2968 = vst.msk [vmem:[#allocation4 + $0x78] sm:$0xff] %vm855_vm15, %v2888_v3 }
 0x3ec   : > { %3103 = vrot.lane.b32.xlu1 %v3012_v42, %s5405_s12  ;;  %v2886_v33 = vpop.permute.xlu0 %2885 }
 0x3ed   : > { %2967 = vst.msk [vmem:[#allocation4 + $0x70] sm:$0xff] %vm855_vm15, %v2886_v33 }
 0x3ee   : > { %v2892_v30 = vpop.permute.xlu1 %2891  ;;  %3101 = vrot.lane.b32.xlu0 %v3011_v46, %s5405_s12 }
 0x3ef   : > { %2970 = vst.msk [vmem:[#allocation4 + $0x88] sm:$0xff] %vm855_vm15, %v2892_v30 }
 0x3f0   : > { %3107 = vrot.lane.b32.xlu1 %v3014_v43, %s5405_s12  ;;  %v2890_v47 = vpop.permute.xlu0 %2889 }
 0x3f1   : > { %2969 = vst.msk [vmem:[#allocation4 + $0x80] sm:$0xff] %vm855_vm15, %v2890_v47 }
 0x3f2   : > { %3105 = vrot.lane.b32.xlu0 %v3013_v25, %s5405_s12 }
 0x3f4   : > { %3111 = vrot.lane.b32.xlu1 %v3016_v59, %s5405_s12 }
 0x3f6   : > { %v2896_v36 = vpop.permute.xlu1 %2895  ;;  %3109 = vrot.lane.b32.xlu0 %v3015_v27, %s5405_s12 }
 0x3f7   : > { %2972 = vst.msk [vmem:[#allocation4 + $0x98] sm:$0xff] %vm855_vm15, %v2896_v36 }
 0x3f8   : > { %3243 = vrot.lane.b32.xlu1 %v7344_v12, %s5406_s13  ;;  %v2894_v5 = vpop.permute.xlu0 %2893 }
 0x3f9   : > { %2971 = vst.msk [vmem:[#allocation4 + $0x90] sm:$0xff] %vm855_vm15, %v2894_v5 }
 0x3fa   : > { %3241 = vrot.lane.b32.xlu0 %v7352_v19, %s5406_s13 }
 0x3fc   : > { %3247 = vrot.lane.b32.xlu1 %v7364_v55, %s5406_s13 }
 0x3fe   : > { %v2900_v3 = vpop.permute.xlu1 %2899  ;;  %3245 = vrot.lane.b32.xlu0 %v7372_v58, %s5406_s13 }
 0x3ff   : > { %2974 = vst.msk [vmem:[#allocation4 + $0xa8] sm:$0xff] %vm855_vm15, %v2900_v3 }
 0x400   : > { %3251 = vrot.lane.b32.xlu1 %v7384_v48, %s5406_s13  ;;  %v2898_v42 = vpop.permute.xlu0 %2897 }
 0x401   : > { %2973 = vst.msk [vmem:[#allocation4 + $0xa0] sm:$0xff] %vm855_vm15, %v2898_v42 }
 0x402   : > { %3249 = vrot.lane.b32.xlu0 %v7392_v4, %s5406_s13 }
 0x404   : > { %3255 = vrot.lane.b32.xlu1 %v7404_v6, %s5406_s13 }
 0x406   : > { %v2904_v12 = vpop.permute.xlu1 %2903  ;;  %3253 = vrot.lane.b32.xlu0 %v7412_v24, %s5406_s13 }
 0x407   : > { %2976 = vst.msk [vmem:[#allocation4 + $0xb8] sm:$0xff] %vm855_vm15, %v2904_v12 }
 0x408   : > { %3259 = vrot.lane.b32.xlu1 %v7421_v9, %s5406_s13  ;;  %v2902_v19 = vpop.permute.xlu0 %2901 }
 0x409   : > { %2975 = vst.msk [vmem:[#allocation4 + $0xb0] sm:$0xff] %vm855_vm15, %v2902_v19 }
 0x40a   : > { %3257 = vrot.lane.b32.xlu0 %v7429_v11, %s5406_s13 }
 0x40c   : > { %3263 = vrot.lane.b32.xlu1 %v7435_v34, %s5406_s13 }
 0x40e   : > { %v2908_v33 = vpop.permute.xlu1 %2907  ;;  %3261 = vrot.lane.b32.xlu0 %v7441_v20, %s5406_s13 }
 0x40f   : > { %2978 = vst.msk [vmem:[#allocation4 + $0xc8] sm:$0xff] %vm855_vm15, %v2908_v33  ;;  %v4364_v33 = vld [vmem:[%s8367_s3 + $0x10] sm:$0xff] }
 0x410   : > { %3267 = vrot.lane.b32.xlu1 %v7447_v57, %s5406_s13  ;;  %v2906_v46 = vpop.permute.xlu0 %2905 }
 0x411   : > { %2977 = vst.msk [vmem:[#allocation4 + $0xc0] sm:$0xff] %vm855_vm15, %v2906_v46 }
 0x412   : > { %3265 = vrot.lane.b32.xlu0 %v7453_v29, %s5406_s13 }
 0x414   : > { %3271 = vrot.lane.b32.xlu1 %v7459_v18, %s5406_s13 }
 0x416   : > { %v2912_v30 = vpop.permute.xlu1 %2911  ;;  %3269 = vrot.lane.b32.xlu0 %v7465_v60, %s5406_s13 }
 0x417   : > { %2980 = vst.msk [vmem:[#allocation4 + $0xd8] sm:$0xff] %vm855_vm15, %v2912_v30 }
 0x418   : > { %3275 = vrot.lane.b32.xlu1 %v7473_v16, %s5406_s13  ;;  %v2910_v43 = vpop.permute.xlu0 %2909 }
 0x419   : > { %2979 = vst.msk [vmem:[#allocation4 + $0xd0] sm:$0xff] %vm855_vm15, %v2910_v43  ;;  %v4362_v43 = vld [vmem:[%s8367_s3] sm:$0xff] }
 0x41a   : > { %3273 = vrot.lane.b32.xlu0 %v7479_v38, %s5406_s13 }
 0x41c   : > { %3279 = vrot.lane.b32.xlu1 %v7487_v17, %s5406_s13 }
 0x41e   : > { %v2916_v47 = vpop.permute.xlu1 %2915  ;;  %3277 = vrot.lane.b32.xlu0 %v7493_v26, %s5406_s13 }
 0x41f   : > { %2982 = vst.msk [vmem:[#allocation4 + $0xe8] sm:$0xff] %vm855_vm15, %v2916_v47 }
 0x420   : > { %3283 = vrot.lane.b32.xlu1 %v7501_v45, %s5406_s13  ;;  %v2914_v25 = vpop.permute.xlu0 %2913 }
 0x421   : > { %2981 = vst.msk [vmem:[#allocation4 + $0xe0] sm:$0xff] %vm855_vm15, %v2914_v25 }
 0x422   : > { %3281 = vrot.lane.b32.xlu0 %v7507_v14, %s5406_s13 }
 0x424   : > { %3287 = vrot.lane.b32.xlu1 %v7515_v28, %s5406_s13 }
 0x426   : > { %v2920_v59 = vpop.permute.xlu1 %2919  ;;  %3285 = vrot.lane.b32.xlu0 %v7521_v56, %s5406_s13 }
 0x427   : > { %2984 = vst.msk [vmem:[#allocation4 + $0xf8] sm:$0xff] %vm855_vm15, %v2920_v59 }
 0x428   : > { %3291 = vrot.lane.b32.xlu1 %v7529_v52, %s5406_s13  ;;  %v2918_v27 = vpop.permute.xlu0 %2917  ;;  %v5061_v52 = vpop.f32.mrf.mxu0 }
 0x429   : > { %2983 = vst.msk [vmem:[#allocation4 + $0xf0] sm:$0xff] %vm855_vm15, %v2918_v27 }
 0x42a   : > { %v3052_v36 = vpop.permute.xlu1 %3051  ;;  %3289 = vrot.lane.b32.xlu0 %v7535_v37, %s5406_s13  ;;  %v2607_v37 = vadd.f32 %v5061_v52, %v7323_v41  ;;  %v2601_v3 = vpop.f32.mrf.mxu0 }
 0x42b   : > { %3146 = vst.msk [vmem:[#allocation4 + $0x8] sm:$0xff] %vm1048_vm5, %v3052_v36  ;;  %v2602_v12 = vadd.f32 %v7323_v41, %v2601_v3  ;;  %v4366_v41 = vld [vmem:[%s8367_s3 + $0x20] sm:$0xf] }
 0x42c   : > { %3435 = vrot.lane.b32.xlu1 %v7336_v49, %s5407_s14  ;;  %v3050_v28 = vpop.permute.xlu0 %3049  ;;  %v2641_v42 = vmax.f32 %v2607_v37, 0.0  ;;  %5062 = vmatprep.subr.msk.mxu1 %vm2381_vm9, %v4366_v41 }
 0x42d   : > { %3145 = vst.msk [vmem:[#allocation4] sm:$0xff] %vm1048_vm5, %v3050_v28  ;;  %5063 = vmatpush3.msk.msra.mxu1 %vm2381_vm9, %v4366_v41 }
 0x42e   : > { %v3056_v56 = vpop.permute.xlu1 %3055  ;;  %3433 = vrot.lane.b32.xlu0 %v7342_v2, %s5407_s14  ;;  %2728 = vst.msk [vmem:[#allocation3 + $0x189] sm:$0xff] %vm542_vm0, %v2641_v42 }
 0x42f   : > { %3148 = vst.msk [vmem:[#allocation4 + $0x18] sm:$0xff] %vm1048_vm5, %v3056_v56 }
 0x430   : > { %3627 = vrot.lane.b32.xlu1 %v7553_v54, %s5408_s15  ;;  %v3054_v5 = vpop.permute.xlu0 %3053  ;;  %v2640_v54 = vmax.f32 %v2602_v12, 0.0 }
 0x431   : > { %3147 = vst.msk [vmem:[#allocation4 + $0x10] sm:$0xff] %vm1048_vm5, %v3054_v5 }
 0x432   : > { %v3060_v49 = vpop.permute.xlu1 %3059  ;;  %3625 = vrot.lane.b32.xlu0 %v7557_v63, %s5408_s15  ;;  %2727 = vst.msk [vmem:[#allocation3 + $0x181] sm:$0xff] %vm542_vm0, %v2640_v54 }
 0x433   : > { %3150 = vst.msk [vmem:[#allocation4 + $0x28] sm:$0xff] %vm1048_vm5, %v3060_v49 }
 0x434   : > { %3820 = vrot.lane.b32.xlu1 %v7364_v55, %s5409_s16  ;;  %v3058_v2 = vpop.permute.xlu0 %3057 }
 0x435   : > { %3149 = vst.msk [vmem:[#allocation4 + $0x20] sm:$0xff] %vm1048_vm5, %v3058_v2 }
 0x436   : > { %v3064_v19 = vpop.permute.xlu1 %3063  ;;  %3818 = vrot.lane.b32.xlu0 %v7372_v58, %s5409_s16  ;;  %v4365_v58 = vld [vmem:[%s8367_s3 + $0x18] sm:$0xff] }
 0x437   : > { %3152 = vst.msk [vmem:[#allocation4 + $0x38] sm:$0xff] %vm1048_vm5, %v3064_v19  ;;  %5064 = vmatprep.subr.mxu1 %v4365_v58 }
 0x438   : > { %3437 = vrot.lane.b32.xlu1 %v7362_v61, %s5407_s14  ;;  %v3062_v55 = vpop.permute.xlu0 %3061  ;;  %5065 = vmatpush3.msra.mxu1 %v4365_v58 }
 0x439   : > { %3151 = vst.msk [vmem:[#allocation4 + $0x30] sm:$0xff] %vm1048_vm5, %v3062_v55  ;;  %5066 = vmatprep.subr.mxu1 %v4364_v33  ;;  %v3379_v55 = vld [vmem:[#allocation3 + $0x91] sm:$0xff] }
 0x43a   : > { %v3068_v63 = vpop.permute.xlu1 %3067  ;;  %4010 = vrot.lane.b32.xlu0 %v7362_v61, %s5410_s17  ;;  %5067 = vmatpush3.msra.mxu1 %v4364_v33  ;;  %v4363_v61 = vld [vmem:[%s8367_s3 + $0x8] sm:$0xff] }
 0x43b   : > { %3154 = vst.msk [vmem:[#allocation4 + $0x48] sm:$0xff] %vm1048_vm5, %v3068_v63  ;;  %5068 = vmatprep.subr.mxu1 %v4363_v61 }
 0x43c   : > { %4202 = vrot.lane.b32.xlu1 %v7565_v31, %s5411_s5  ;;  %v3066_v46 = vpop.permute.xlu0 %3065  ;;  %5069 = vmatpush3.msra.mxu1 %v4363_v61 }
 0x43d   : > { %3153 = vst.msk [vmem:[#allocation4 + $0x40] sm:$0xff] %vm1048_vm5, %v3066_v46  ;;  %5070 = vmatprep.subr.mxu1 %v4362_v43 }
 0x43e   : > { %v3072_v30 = vpop.permute.xlu1 %3071  ;;  %4012 = vrot.lane.b32.xlu0 %v7354_v62, %s5410_s17  ;;  %5071 = vmatpush3.msra.mxu1 %v4362_v43 }
 0x43f   : > { %3156 = vst.msk [vmem:[#allocation4 + $0x58] sm:$0xff] %vm1048_vm5, %v3072_v30 }
 0x440   : > { %3629 = vrot.lane.b32.xlu1 %v7565_v31, %s5408_s15  ;;  %v3070_v47 = vpop.permute.xlu0 %3069 }
 0x441   : > { %3155 = vst.msk [vmem:[#allocation4 + $0x50] sm:$0xff] %vm1048_vm5, %v3070_v47  ;;  %v3381_v47 = vld [vmem:[#allocation3 + $0xa9] sm:$0xff] }
 0x442   : > { %v3076_v25 = vpop.permute.xlu1 %3075  ;;  %3439 = vrot.lane.b32.xlu0 %v7354_v62, %s5407_s14 }
 0x443   : > { %3158 = vst.msk [vmem:[#allocation4 + $0x68] sm:$0xff] %vm1048_vm5, %v3076_v25 }
 0x444   : > { %3631 = vrot.lane.b32.xlu1 %v7561_v40, %s5408_s15  ;;  %v3074_v59 = vpop.permute.xlu0 %3073 }
 0x445   : > { %3157 = vst.msk [vmem:[#allocation4 + $0x60] sm:$0xff] %vm1048_vm5, %v3074_v59 }
 0x446   : > { %v3080_v27 = vpop.permute.xlu1 %3079  ;;  %4204 = vrot.lane.b32.xlu0 %v7561_v40, %s5411_s5 }
 0x447   : > { %3160 = vst.msk [vmem:[#allocation4 + $0x78] sm:$0xff] %vm1048_vm5, %v3080_v27 }
 0x448   : > { %3824 = vrot.lane.b32.xlu1 %v7384_v48, %s5409_s16  ;;  %v3078_v31 = vpop.permute.xlu0 %3077 }
 0x449   : > { %3159 = vst.msk [vmem:[#allocation4 + $0x70] sm:$0xff] %vm1048_vm5, %v3078_v31 }
 0x44a   : > { %v3084_v62 = vpop.permute.xlu1 %3083  ;;  %3822 = vrot.lane.b32.xlu0 %v7392_v4, %s5409_s16 }
 0x44b   : > { %3162 = vst.msk [vmem:[#allocation4 + $0x88] sm:$0xff] %vm1048_vm5, %v3084_v62 }
 0x44c   : > { %3441 = vrot.lane.b32.xlu1 %v7382_v22, %s5407_s14  ;;  %v3082_v36 = vpop.permute.xlu0 %3081 }
 0x44d   : > { %3161 = vst.msk [vmem:[#allocation4 + $0x80] sm:$0xff] %vm1048_vm5, %v3082_v36 }
 0x44e   : > { %v3088_v40 = vpop.permute.xlu1 %3087  ;;  %4014 = vrot.lane.b32.xlu0 %v7382_v22, %s5410_s17 }
 0x44f   : > { %3164 = vst.msk [vmem:[#allocation4 + $0x98] sm:$0xff] %vm1048_vm5, %v3088_v40 }
 0x450   : > { %4206 = vrot.lane.b32.xlu1 %v7573_v53, %s5411_s5  ;;  %v3086_v48 = vpop.permute.xlu0 %3085 }
 0x451   : > { %3163 = vst.msk [vmem:[#allocation4 + $0x90] sm:$0xff] %vm1048_vm5, %v3086_v48  ;;  %v3383_v48 = vld [vmem:[#allocation3 + $0xc1] sm:$0xff] }
 0x452   : > { %v3092_v4 = vpop.permute.xlu1 %3091  ;;  %4016 = vrot.lane.b32.xlu0 %v7374_v0, %s5410_s17 }
 0x453   : > { %3166 = vst.msk [vmem:[#allocation4 + $0xa8] sm:$0xff] %vm1048_vm5, %v3092_v4 }
 0x454   : > { %3633 = vrot.lane.b32.xlu1 %v7573_v53, %s5408_s15  ;;  %v3090_v28 = vpop.permute.xlu0 %3089 }
 0x455   : > { %3165 = vst.msk [vmem:[#allocation4 + $0xa0] sm:$0xff] %vm1048_vm5, %v3090_v28 }
 0x456   : > { %v3096_v22 = vpop.permute.xlu1 %3095  ;;  %3443 = vrot.lane.b32.xlu0 %v7374_v0, %s5407_s14 }
 0x457   : > { %3168 = vst.msk [vmem:[#allocation4 + $0xb8] sm:$0xff] %vm1048_vm5, %v3096_v22 }
 0x458   : > { %3635 = vrot.lane.b32.xlu1 %v7569_v7, %s5408_s15  ;;  %v3094_v56 = vpop.permute.xlu0 %3093 }
 0x459   : > { %3167 = vst.msk [vmem:[#allocation4 + $0xb0] sm:$0xff] %vm1048_vm5, %v3094_v56 }
 0x45a   : > { %v3100_v52 = vpop.permute.xlu1 %3099  ;;  %4208 = vrot.lane.b32.xlu0 %v7569_v7, %s5411_s5 }
 0x45b   : > { %3170 = vst.msk [vmem:[#allocation4 + $0xc8] sm:$0xff] %vm1048_vm5, %v3100_v52 }
 0x45c   : > { %3828 = vrot.lane.b32.xlu1 %v7404_v6, %s5409_s16  ;;  %v3098_v53 = vpop.permute.xlu0 %3097 }
 0x45d   : > { %3169 = vst.msk [vmem:[#allocation4 + $0xc0] sm:$0xff] %vm1048_vm5, %v3098_v53 }
 0x45e   : > { %v3104_v0 = vpop.permute.xlu1 %3103  ;;  %3826 = vrot.lane.b32.xlu0 %v7412_v24, %s5409_s16 }
 0x45f   : > { %3172 = vst.msk [vmem:[#allocation4 + $0xd8] sm:$0xff] %vm1048_vm5, %v3104_v0  ;;  %v4151_v0 = vld [vmem:[#allocation3 + $0xca] sm:$0xff] }
 0x460   : > { %3445 = vrot.lane.b32.xlu1 %v7402_v8, %s5407_s14  ;;  %v3102_v5 = vpop.permute.xlu0 %3101 }
 0x461   : > { %3171 = vst.msk [vmem:[#allocation4 + $0xd0] sm:$0xff] %vm1048_vm5, %v3102_v5 }
 0x462   : > { %v3108_v7 = vpop.permute.xlu1 %3107  ;;  %4018 = vrot.lane.b32.xlu0 %v7402_v8, %s5410_s17 }
 0x463   : > { %3174 = vst.msk [vmem:[#allocation4 + $0xe8] sm:$0xff] %vm1048_vm5, %v3108_v7 }
 0x464   : > { %4210 = vrot.lane.b32.xlu1 %v7581_v39, %s5411_s5  ;;  %v3106_v6 = vpop.permute.xlu0 %3105 }
 0x465   : > { %3173 = vst.msk [vmem:[#allocation4 + $0xe0] sm:$0xff] %vm1048_vm5, %v3106_v6 }
 0x466   : > { %v3112_v24 = vpop.permute.xlu1 %3111  ;;  %4020 = vrot.lane.b32.xlu0 %v7394_v50, %s5410_s17 }
 0x467   : > { %3176 = vst.msk [vmem:[#allocation4 + $0xf8] sm:$0xff] %vm1048_vm5, %v3112_v24 }
 0x468   : > { %3637 = vrot.lane.b32.xlu1 %v7581_v39, %s5408_s15  ;;  %v3110_v37 = vpop.permute.xlu0 %3109 }
 0x469   : > { %3175 = vst.msk [vmem:[#allocation4 + $0xf0] sm:$0xff] %vm1048_vm5, %v3110_v37 }
 0x46a   : > { %v3244_v8 = vpop.permute.xlu1 %3243  ;;  %3447 = vrot.lane.b32.xlu0 %v7394_v50, %s5407_s14 }
 0x46b   : > { %3338 = vst.msk [vmem:[#allocation4 + $0x8] sm:$0xff] %vm1241_vm6, %v3244_v8 }
 0x46c   : > { %3639 = vrot.lane.b32.xlu1 %v7577_v21, %s5408_s15  ;;  %v3242_v3 = vpop.permute.xlu0 %3241 }
 0x46d   : > { %3337 = vst.msk [vmem:[#allocation4] sm:$0xff] %vm1241_vm6, %v3242_v3 }
 0x46e   : > { %v3248_v49 = vpop.permute.xlu1 %3247  ;;  %4212 = vrot.lane.b32.xlu0 %v7577_v21, %s5411_s5 }
 0x46f   : > { %3340 = vst.msk [vmem:[#allocation4 + $0x18] sm:$0xff] %vm1241_vm6, %v3248_v49 }
 0x470   : > { %3832 = vrot.lane.b32.xlu1 %v7421_v9, %s5409_s16  ;;  %v3246_v39 = vpop.permute.xlu0 %3245 }
 0x471   : > { %3339 = vst.msk [vmem:[#allocation4 + $0x10] sm:$0xff] %vm1241_vm6, %v3246_v39 }
 0x472   : > { %v3252_v50 = vpop.permute.xlu1 %3251  ;;  %3830 = vrot.lane.b32.xlu0 %v7429_v11, %s5409_s16  ;;  %v3953_v11 = vld [vmem:[#allocation3 + $0x81] sm:$0xff] }
 0x473   : > { %3342 = vst.msk [vmem:[#allocation4 + $0x28] sm:$0xff] %vm1241_vm6, %v3252_v50 }
 0x474   : > { %3449 = vrot.lane.b32.xlu1 %v7419_v35, %s5407_s14  ;;  %v3250_v42 = vpop.permute.xlu0 %3249 }
 0x475   : > { %3341 = vst.msk [vmem:[#allocation4 + $0x20] sm:$0xff] %vm1241_vm6, %v3250_v42  ;;  %v3578_v42 = vld [vmem:[#allocation3 + $0xe2] sm:$0xff] }
 0x476   : > { %v3256_v21 = vpop.permute.xlu1 %3255  ;;  %4022 = vrot.lane.b32.xlu0 %v7419_v35, %s5410_s17 }
 0x477   : > { %3344 = vst.msk [vmem:[#allocation4 + $0x38] sm:$0xff] %vm1241_vm6, %v3256_v21 }
 0x478   : > { %4214 = vrot.lane.b32.xlu1 %v7589_v1, %s5411_s5  ;;  %v3254_v9 = vpop.permute.xlu0 %3253 }
 0x479   : > { %3343 = vst.msk [vmem:[#allocation4 + $0x30] sm:$0xff] %vm1241_vm6, %v3254_v9 }
 0x47a   : > { %v3260_v12 = vpop.permute.xlu1 %3259  ;;  %4024 = vrot.lane.b32.xlu0 %v3953_v11, %s5410_s17 }
 0x47b   : > { %3346 = vst.msk [vmem:[#allocation4 + $0x48] sm:$0xff] %vm1241_vm6, %v3260_v12 }
 0x47c   : > { %3641 = vrot.lane.b32.xlu1 %v7589_v1, %s5408_s15  ;;  %v3258_v2 = vpop.permute.xlu0 %3257 }
 0x47d   : > { %3345 = vst.msk [vmem:[#allocation4 + $0x40] sm:$0xff] %vm1241_vm6, %v3258_v2 }
 0x47e   : > { %v3264_v35 = vpop.permute.xlu1 %3263  ;;  %3451 = vrot.lane.b32.xlu0 %v3953_v11, %s5407_s14 }
 0x47f   : > { %3348 = vst.msk [vmem:[#allocation4 + $0x58] sm:$0xff] %vm1241_vm6, %v3264_v35  ;;  %v3387_v35 = vld [vmem:[#allocation3 + $0xf1] sm:$0xff] }
 0x480   : > { %3643 = vrot.lane.b32.xlu1 %v7585_v13, %s5408_s15  ;;  %v3262_v54 = vpop.permute.xlu0 %3261 }
 0x481   : > { %3347 = vst.msk [vmem:[#allocation4 + $0x50] sm:$0xff] %vm1241_vm6, %v3262_v54 }
 0x482   : > { %v3268_v19 = vpop.permute.xlu1 %3267  ;;  %4216 = vrot.lane.b32.xlu0 %v7585_v13, %s5411_s5 }
 0x483   : > { %3350 = vst.msk [vmem:[#allocation4 + $0x68] sm:$0xff] %vm1241_vm6, %v3268_v19 }
 0x484   : > { %3836 = vrot.lane.b32.xlu1 %v7435_v34, %s5409_s16  ;;  %v3266_v1 = vpop.permute.xlu0 %3265 }
 0x485   : > { %3349 = vst.msk [vmem:[#allocation4 + $0x60] sm:$0xff] %vm1241_vm6, %v3266_v1 }
 0x486   : > { %v3272_v41 = vpop.permute.xlu1 %3271  ;;  %3834 = vrot.lane.b32.xlu0 %v7441_v20, %s5409_s16  ;;  %v3955_v20 = vld [vmem:[#allocation3 + $0x99] sm:$0xff] }
 0x487   : > { %3352 = vst.msk [vmem:[#allocation4 + $0x78] sm:$0xff] %vm1241_vm6, %v3272_v41 }
 0x488   : > { %3453 = vrot.lane.b32.xlu1 %v3379_v55, %s5407_s14  ;;  %v3270_v58 = vpop.permute.xlu0 %3269 }
 0x489   : > { %3351 = vst.msk [vmem:[#allocation4 + $0x70] sm:$0xff] %vm1241_vm6, %v3270_v58 }
 0x48a   : > { %v3276_v13 = vpop.permute.xlu1 %3275  ;;  %4026 = vrot.lane.b32.xlu0 %v3379_v55, %s5410_s17 }
 0x48b   : > { %3354 = vst.msk [vmem:[#allocation4 + $0x88] sm:$0xff] %vm1241_vm6, %v3276_v13 }
 0x48c   : > { %4218 = vrot.lane.b32.xlu1 %v7597_v23, %s5411_s5  ;;  %v3274_v34 = vpop.permute.xlu0 %3273 }
 0x48d   : > { %3353 = vst.msk [vmem:[#allocation4 + $0x80] sm:$0xff] %vm1241_vm6, %v3274_v34  ;;  %v3580_v34 = vld [vmem:[#allocation3 + $0xfa] sm:$0xff] }
 0x48e   : > { %v3280_v63 = vpop.permute.xlu1 %3279  ;;  %4028 = vrot.lane.b32.xlu0 %v3955_v20, %s5410_s17 }
 0x48f   : > { %3356 = vst.msk [vmem:[#allocation4 + $0x98] sm:$0xff] %vm1241_vm6, %v3280_v63 }
 0x490   : > { %3645 = vrot.lane.b32.xlu1 %v7597_v23, %s5408_s15  ;;  %v3278_v33 = vpop.permute.xlu0 %3277 }
 0x491   : > { %3355 = vst.msk [vmem:[#allocation4 + $0x90] sm:$0xff] %vm1241_vm6, %v3278_v33 }
 0x492   : > { %v3284_v46 = vpop.permute.xlu1 %3283  ;;  %3455 = vrot.lane.b32.xlu0 %v3955_v20, %s5407_s14 }
 0x493   : > { %3358 = vst.msk [vmem:[#allocation4 + $0xa8] sm:$0xff] %vm1241_vm6, %v3284_v46 }
 0x494   : > { %3647 = vrot.lane.b32.xlu1 %v7593_v32, %s5408_s15  ;;  %v3282_v61 = vpop.permute.xlu0 %3281 }
 0x495   : > { %3357 = vst.msk [vmem:[#allocation4 + $0xa0] sm:$0xff] %vm1241_vm6, %v3282_v61 }
 0x496   : > { %v3288_v30 = vpop.permute.xlu1 %3287  ;;  %4220 = vrot.lane.b32.xlu0 %v7593_v32, %s5411_s5 }
 0x497   : > { %3360 = vst.msk [vmem:[#allocation4 + $0xb8] sm:$0xff] %vm1241_vm6, %v3288_v30  ;;  %v3389_v30 = vld [vmem:[#allocation3 + $0x109] sm:$0xff] }
 0x498   : > { %3840 = vrot.lane.b32.xlu1 %v7447_v57, %s5409_s16  ;;  %v3286_v23 = vpop.permute.xlu0 %3285 }
 0x499   : > { %3359 = vst.msk [vmem:[#allocation4 + $0xb0] sm:$0xff] %vm1241_vm6, %v3286_v23 }
 0x49a   : > { %v3292_v43 = vpop.permute.xlu1 %3291  ;;  %3838 = vrot.lane.b32.xlu0 %v7453_v29, %s5409_s16  ;;  %v3957_v29 = vld [vmem:[#allocation3 + $0xb1] sm:$0xff] }
 0x49b   : > { %3362 = vst.msk [vmem:[#allocation4 + $0xc8] sm:$0xff] %vm1241_vm6, %v3292_v43 }
 0x49c   : > { %3457 = vrot.lane.b32.xlu1 %v3381_v47, %s5407_s14  ;;  %v3290_v25 = vpop.permute.xlu0 %3289 }
 0x49d   : > { %3361 = vst.msk [vmem:[#allocation4 + $0xc0] sm:$0xff] %vm1241_vm6, %v3290_v25 }
 0x49e   : > { %v3436_v32 = vpop.permute.xlu1 %3435  ;;  %4030 = vrot.lane.b32.xlu0 %v3381_v47, %s5410_s17 }
 0x49f   : > { %3530 = vst.msk [vmem:[#allocation4 + $0x8] sm:$0xff] %vm1434_vm7, %v3436_v32 }
 0x4a0   : > { %4222 = vrot.lane.b32.xlu1 %v7607_v44, %s5411_s5  ;;  %v3434_v57 = vpop.permute.xlu0 %3433 }
 0x4a1   : > { %3529 = vst.msk [vmem:[#allocation4] sm:$0xff] %vm1434_vm7, %v3434_v57 }
 0x4a2   : > { %v3628_v59 = vpop.permute.xlu1 %3627  ;;  %4032 = vrot.lane.b32.xlu0 %v3957_v29, %s5410_s17 }
 0x4a3   : > { %3722 = vst.msk [vmem:[#allocation4 + $0x8] sm:$0xff] %vm1627_vm8, %v3628_v59  ;;  %v3582_v59 = vld [vmem:[#allocation3 + $0x112] sm:$0xff] }
 0x4a4   : > { %3649 = vrot.lane.b32.xlu1 %v7607_v44, %s5408_s15  ;;  %v3626_v27 = vpop.permute.xlu0 %3625 }
 0x4a5   : > { %3721 = vst.msk [vmem:[#allocation4] sm:$0xff] %vm1627_vm8, %v3626_v27 }
 0x4a6   : > { %v3821_v31 = vpop.permute.xlu1 %3820  ;;  %3459 = vrot.lane.b32.xlu0 %v3957_v29, %s5407_s14 }
 0x4a7   : > { %3915 = vst.msk [vmem:[#allocation4 + $0x8] sm:$0xff] %vm1821_vm10, %v3821_v31 }
 0x4a8   : > { %3651 = vrot.lane.b32.xlu1 %v7602_v15, %s5408_s15  ;;  %v3819_v62 = vpop.permute.xlu0 %3818 }
 0x4a9   : > { %3914 = vst.msk [vmem:[#allocation4] sm:$0xff] %vm1821_vm10, %v3819_v62  ;;  %v3775_v62 = vld [vmem:[#allocation3 + $0x128] sm:$0xff] }
 0x4aa   : > { %v3438_v36 = vpop.permute.xlu1 %3437  ;;  %4224 = vrot.lane.b32.xlu0 %v7602_v15, %s5411_s5 }
 0x4ab   : > { %3531 = vst.msk [vmem:[#allocation4 + $0x10] sm:$0xff] %vm1434_vm7, %v3438_v36 }
 0x4ac   : > { %3844 = vrot.lane.b32.xlu1 %v7459_v18, %s5409_s16  ;;  %v4011_v44 = vpop.permute.xlu0 %4010 }
 0x4ad   : > { %4106 = vst.msk [vmem:[#allocation4] sm:$0xff] %vm2014_vm11, %v4011_v44 }
 0x4ae   : > { %v4203_v40 = vpop.permute.xlu1 %4202  ;;  %3842 = vrot.lane.b32.xlu0 %v7465_v60, %s5409_s16  ;;  %v3959_v60 = vld [vmem:[#allocation3 + $0xc9] sm:$0xff] }
 0x4af   : > { %4298 = vst.msk [vmem:[#allocation4] sm:$0xff] %vm2207_vm12, %v4203_v40  ;;  %v3774_v40 = vld [vmem:[#allocation3 + $0x120] sm:$0xff] }
 0x4b0   : > { %3461 = vrot.lane.b32.xlu1 %v3383_v48, %s5407_s14  ;;  %v4013_v4 = vpop.permute.xlu0 %4012 }
 0x4b1   : > { %4107 = vst.msk [vmem:[#allocation4 + $0x8] sm:$0xff] %vm2014_vm11, %v4013_v4  ;;  %v3391_v4 = vld [vmem:[#allocation3 + $0x121] sm:$0xff] }
 0x4b2   : > { %v3630_v15 = vpop.permute.xlu1 %3629  ;;  %4034 = vrot.lane.b32.xlu0 %v3383_v48, %s5410_s17 }
 0x4b3   : > { %3723 = vst.msk [vmem:[#allocation4 + $0x10] sm:$0xff] %vm1627_vm8, %v3630_v15 }
 0x4b4   : > { %4226 = vrot.lane.b32.xlu1 %v7617_v10, %s5411_s5  ;;  %v3440_v18 = vpop.permute.xlu0 %3439 }
 0x4b5   : > { %3532 = vst.msk [vmem:[#allocation4 + $0x18] sm:$0xff] %vm1434_vm7, %v3440_v18 }
 0x4b6   : > { %v3632_v28 = vpop.permute.xlu1 %3631  ;;  %4036 = vrot.lane.b32.xlu0 %v3959_v60, %s5410_s17  ;;  %v4330_v22 = vld [vmem:[#allocation4] sm:$0xff] }
 0x4b7   : > { %3724 = vst.msk [vmem:[#allocation4 + $0x18] sm:$0xff] %vm1627_vm8, %v3632_v28  ;;  %5072 = vmatprep.mubr.msk.f32.mxu1 %vm2284_vm13, %v4330_v22  ;;  %v3967_v22 = vld [vmem:[#allocation3 + $0x129] sm:$0xff] }
 0x4b8   : > { %3653 = vrot.lane.b32.xlu1 %v7617_v10, %s5408_s15  ;;  %v4205_v56 = vpop.permute.xlu0 %4204 }
 0x4b9   : > { %4299 = vst.msk [vmem:[#allocation4 + $0x8] sm:$0xff] %vm2207_vm12, %v4205_v56 }
 0x4ba   : > { %v3825_v52 = vpop.permute.xlu1 %3824  ;;  %3463 = vrot.lane.b32.xlu0 %v3959_v60, %s5407_s14  ;;  %v4158_v60 = vld [vmem:[#allocation3 + $0x122] sm:$0xff] }
 0x4bb   : > { %3917 = vst.msk [vmem:[#allocation4 + $0x18] sm:$0xff] %vm1821_vm10, %v3825_v52 }
 0x4bc   : > { %3655 = vrot.lane.b32.xlu1 %v7612_v51, %s5408_s15  ;;  %v3823_v53 = vpop.permute.xlu0 %3822  ;;  %v3385_v51 = vld [vmem:[#allocation3 + $0xd9] sm:$0xff] }
 0x4bd   : > { %3916 = vst.msk [vmem:[#allocation4 + $0x10] sm:$0xff] %vm1821_vm10, %v3823_v53 }
 0x4be   : > { %v3442_v5 = vpop.permute.xlu1 %3441  ;;  %4228 = vrot.lane.b32.xlu0 %v4151_v0, %s5411_s5 }
 0x4bf   : > { %3533 = vst.msk [vmem:[#allocation4 + $0x20] sm:$0xff] %vm1434_vm7, %v3442_v5  ;;  %v3584_v5 = vld [vmem:[#allocation3 + $0x12a] sm:$0xff] }
 0x4c0   : > { %3848 = vrot.lane.b32.xlu1 %v7473_v16, %s5409_s16  ;;  %v4015_v10 = vpop.permute.xlu0 %4014  ;;  %v4331_v7 = vld [vmem:[#allocation4 + $0x8] sm:$0xff] }
 0x4c1   : > { %4108 = vst.msk [vmem:[#allocation4 + $0x10] sm:$0xff] %vm2014_vm11, %v4015_v10  ;;  %5073 = vmatmul.mubr.msk.f32.vlgmr.msra.gmra.mxu1 %vm2284_vm13, %v4331_v7  ;;  %v4152_v16 = vld [vmem:[#allocation3 + $0xda] sm:$0xff] }
 0x4c2   : > { %v4207_v6 = vpop.permute.xlu1 %4206  ;;  %3846 = vrot.lane.b32.xlu0 %v7479_v38, %s5409_s16  ;;  %v3961_v38 = vld [vmem:[#allocation3 + $0xe1] sm:$0xff] }
 0x4c3   : > { %4300 = vst.msk [vmem:[#allocation4 + $0x10] sm:$0xff] %vm2207_vm12, %v4207_v6  ;;  %v3777_v6 = vld [vmem:[#allocation3 + $0x140] sm:$0xff] }
 0x4c4   : > { %3465 = vrot.lane.b32.xlu1 %v3385_v51, %s5407_s14  ;;  %v4017_v24 = vpop.permute.xlu0 %4016 }
 0x4c5   : > { %4109 = vst.msk [vmem:[#allocation4 + $0x18] sm:$0xff] %vm2014_vm11, %v4017_v24 }
 0x4c6   : > { %v3634_v37 = vpop.permute.xlu1 %3633  ;;  %4038 = vrot.lane.b32.xlu0 %v3385_v51, %s5410_s17 }
 0x4c7   : > { %3725 = vst.msk [vmem:[#allocation4 + $0x20] sm:$0xff] %vm1627_vm8, %v3634_v37  ;;  %v3776_v37 = vld [vmem:[#allocation3 + $0x138] sm:$0xff] }
 0x4c8   : > { %4230 = vrot.lane.b32.xlu1 %v4152_v16, %s5411_s5  ;;  %v3444_v8 = vpop.permute.xlu0 %3443 }
 0x4c9   : > { %3534 = vst.msk [vmem:[#allocation4 + $0x28] sm:$0xff] %vm1434_vm7, %v3444_v8  ;;  %v3393_v8 = vld [vmem:[#allocation3 + $0x139] sm:$0xff] }
 0x4ca   : > { %v3636_v3 = vpop.permute.xlu1 %3635  ;;  %4040 = vrot.lane.b32.xlu0 %v3961_v38, %s5410_s17  ;;  %v4332_v49 = vld [vmem:[#allocation4 + $0x10] sm:$0xff] }
 0x4cb   : > { %3726 = vst.msk [vmem:[#allocation4 + $0x28] sm:$0xff] %vm1627_vm8, %v3636_v3  ;;  %5075 = vmatprep.mubr.msk.f32.mxu1 %vm2284_vm13, %v4332_v49  ;;  %v4160_v49 = vld [vmem:[#allocation3 + $0x13a] sm:$0xff] }
 0x4cc   : > { %3657 = vrot.lane.b32.xlu1 %v4152_v16, %s5408_s15  ;;  %v4209_v39 = vpop.permute.xlu0 %4208 }
 0x4cd   : > { %4301 = vst.msk [vmem:[#allocation4 + $0x18] sm:$0xff] %vm2207_vm12, %v4209_v39 }
 0x4ce   : > { %v3829_v50 = vpop.permute.xlu1 %3828  ;;  %3467 = vrot.lane.b32.xlu0 %v3961_v38, %s5407_s14 }
 0x4cf   : > { %3919 = vst.msk [vmem:[#allocation4 + $0x28] sm:$0xff] %vm1821_vm10, %v3829_v50  ;;  %v3969_v50 = vld [vmem:[#allocation3 + $0x141] sm:$0xff] }
 0x4d0   : > { %3659 = vrot.lane.b32.xlu1 %v3578_v42, %s5408_s15  ;;  %v3827_v21 = vpop.permute.xlu0 %3826 }
 0x4d1   : > { %3918 = vst.msk [vmem:[#allocation4 + $0x20] sm:$0xff] %vm1821_vm10, %v3827_v21 }
 0x4d2   : > { %v3446_v9 = vpop.permute.xlu1 %3445  ;;  %4232 = vrot.lane.b32.xlu0 %v3578_v42, %s5411_s5 }
 0x4d3   : > { %3535 = vst.msk [vmem:[#allocation4 + $0x30] sm:$0xff] %vm1434_vm7, %v3446_v9 }
 0x4d4   : > { %3852 = vrot.lane.b32.xlu1 %v7487_v17, %s5409_s16  ;;  %v4019_v11 = vpop.permute.xlu0 %4018  ;;  %v4333_v12 = vld [vmem:[#allocation4 + $0x18] sm:$0xff]  ;;  %v4154_v17 = vld [vmem:[#allocation3 + $0xf2] sm:$0xff] }
 0x4d5   : > { %4110 = vst.msk [vmem:[#allocation4 + $0x20] sm:$0xff] %vm2014_vm11, %v4019_v11  ;;  %5076 = vmatmul.mubr.msk.f32.gmra.mxu1 %vm2284_vm13, %v4333_v12  ;;  %v3586_v12 = vld [vmem:[#allocation3 + $0x142] sm:$0xff] }
 0x4d6   : > { %v4211_v2 = vpop.permute.xlu1 %4210  ;;  %3850 = vrot.lane.b32.xlu0 %v7493_v26, %s5409_s16  ;;  %v3963_v26 = vld [vmem:[#allocation3 + $0xf9] sm:$0xff] }
 0x4d7   : > { %4302 = vst.msk [vmem:[#allocation4 + $0x20] sm:$0xff] %vm2207_vm12, %v4211_v2 }
 0x4d8   : > { %3469 = vrot.lane.b32.xlu1 %v3387_v35, %s5407_s14  ;;  %v4021_v54 = vpop.permute.xlu0 %4020 }
 0x4d9   : > { %4111 = vst.msk [vmem:[#allocation4 + $0x28] sm:$0xff] %vm2014_vm11, %v4021_v54  ;;  %v3203_v54 = vld [vmem:[#allocation3 + $0x150] sm:$0xff] }
 0x4da   : > { %v3638_v19 = vpop.permute.xlu1 %3637  ;;  %4042 = vrot.lane.b32.xlu0 %v3387_v35, %s5410_s17 }
 0x4db   : > { %3727 = vst.msk [vmem:[#allocation4 + $0x30] sm:$0xff] %vm1627_vm8, %v3638_v19 }
 0x4dc   : > { %4234 = vrot.lane.b32.xlu1 %v4154_v17, %s5411_s5  ;;  %v3448_v1 = vpop.permute.xlu0 %3447 }
 0x4dd   : > { %3536 = vst.msk [vmem:[#allocation4 + $0x38] sm:$0xff] %vm1434_vm7, %v3448_v1 }
 0x4de   : > { %v3640_v41 = vpop.permute.xlu1 %3639  ;;  %4044 = vrot.lane.b32.xlu0 %v3963_v26, %s5410_s17  ;;  %v4334_v55 = vld [vmem:[#allocation4 + $0x20] sm:$0xff] }
 0x4df   : > { %3728 = vst.msk [vmem:[#allocation4 + $0x38] sm:$0xff] %vm1627_vm8, %v3640_v41  ;;  %5078 = vmatprep.mubr.msk.f32.mxu1 %vm2284_vm13, %v4334_v55  ;;  %v3779_v55 = vld [vmem:[#allocation3 + $0x158] sm:$0xff] }
 0x4e0   : > { %3661 = vrot.lane.b32.xlu1 %v4154_v17, %s5408_s15  ;;  %v4213_v58 = vpop.permute.xlu0 %4212 }
 0x4e1   : > { %4303 = vst.msk [vmem:[#allocation4 + $0x28] sm:$0xff] %vm2207_vm12, %v4213_v58 }
 0x4e2   : > { %v3833_v13 = vpop.permute.xlu1 %3832  ;;  %3471 = vrot.lane.b32.xlu0 %v3963_v26, %s5407_s14  ;;  %v3970_v26 = vld [vmem:[#allocation3 + $0x151] sm:$0xff] }
 0x4e3   : > { %3921 = vst.msk [vmem:[#allocation4 + $0x38] sm:$0xff] %vm1821_vm10, %v3833_v13 }
 0x4e4   : > { %3663 = vrot.lane.b32.xlu1 %v3580_v34, %s5408_s15  ;;  %v3831_v20 = vpop.permute.xlu0 %3830 }
 0x4e5   : > { %3920 = vst.msk [vmem:[#allocation4 + $0x30] sm:$0xff] %vm1821_vm10, %v3831_v20 }
 0x4e6   : > { %v3450_v63 = vpop.permute.xlu1 %3449  ;;  %4236 = vrot.lane.b32.xlu0 %v3580_v34, %s5411_s5 }
 0x4e7   : > { %3537 = vst.msk [vmem:[#allocation4 + $0x40] sm:$0xff] %vm1434_vm7, %v3450_v63  ;;  %v4162_v63 = vld [vmem:[#allocation3 + $0x152] sm:$0xff] }
 0x4e8   : > { %3856 = vrot.lane.b32.xlu1 %v7501_v45, %s5409_s16  ;;  %v4023_v33 = vpop.permute.xlu0 %4022  ;;  %v4335_v46 = vld [vmem:[#allocation4 + $0x28] sm:$0xff]  ;;  %v4156_v45 = vld [vmem:[#allocation3 + $0x10a] sm:$0xff] }
 0x4e9   : > { %4112 = vst.msk [vmem:[#allocation4 + $0x30] sm:$0xff] %vm2014_vm11, %v4023_v33  ;;  %5079 = vmatmul.mubr.msk.f32.gmra.mxu1 %vm2284_vm13, %v4335_v46  ;;  %v3971_v46 = vld [vmem:[#allocation3 + $0x159] sm:$0xff] }
 0x4ea   : > { %v4215_v61 = vpop.permute.xlu1 %4214  ;;  %3854 = vrot.lane.b32.xlu0 %v7507_v14, %s5409_s16  ;;  %v3965_v14 = vld [vmem:[#allocation3 + $0x111] sm:$0xff] }
 0x4eb   : > { %4304 = vst.msk [vmem:[#allocation4 + $0x30] sm:$0xff] %vm2207_vm12, %v4215_v61 }
 0x4ec   : > { %3473 = vrot.lane.b32.xlu1 %v3389_v30, %s5407_s14  ;;  %v4025_v23 = vpop.permute.xlu0 %4024 }
 0x4ed   : > { %4113 = vst.msk [vmem:[#allocation4 + $0x38] sm:$0xff] %vm2014_vm11, %v4025_v23 }
 0x4ee   : > { %v3642_v43 = vpop.permute.xlu1 %3641  ;;  %4046 = vrot.lane.b32.xlu0 %v3389_v30, %s5410_s17 }
 0x4ef   : > { %3729 = vst.msk [vmem:[#allocation4 + $0x40] sm:$0xff] %vm1627_vm8, %v3642_v43  ;;  %v3588_v43 = vld [vmem:[#allocation3 + $0x15a] sm:$0xff] }
 0x4f0   : > { %4238 = vrot.lane.b32.xlu1 %v4156_v45, %s5411_s5  ;;  %v3452_v47 = vpop.permute.xlu0 %3451 }
 0x4f1   : > { %3538 = vst.msk [vmem:[#allocation4 + $0x48] sm:$0xff] %vm1434_vm7, %v3452_v47 }
 0x4f2   : > { %v3644_v25 = vpop.permute.xlu1 %3643  ;;  %4048 = vrot.lane.b32.xlu0 %v3965_v14, %s5410_s17  ;;  %v4336_v32 = vld [vmem:[#allocation4 + $0x30] sm:$0xff] }
 0x4f3   : > { %3730 = vst.msk [vmem:[#allocation4 + $0x48] sm:$0xff] %vm1627_vm8, %v3644_v25  ;;  %5081 = vmatprep.mubr.msk.f32.mxu1 %vm2284_vm13, %v4336_v32  ;;  %v3205_v25 = vld [vmem:[#allocation3 + $0x168] sm:$0xff] }
 0x4f4   : > { %3665 = vrot.lane.b32.xlu1 %v4156_v45, %s5408_s15  ;;  %v4217_v57 = vpop.permute.xlu0 %4216 }
 0x4f5   : > { %4305 = vst.msk [vmem:[#allocation4 + $0x38] sm:$0xff] %vm2207_vm12, %v4217_v57 }
 0x4f6   : > { %v3837_v29 = vpop.permute.xlu1 %3836  ;;  %3475 = vrot.lane.b32.xlu0 %v3965_v14, %s5407_s14 }
 0x4f7   : > { %3923 = vst.msk [vmem:[#allocation4 + $0x48] sm:$0xff] %vm1821_vm10, %v3837_v29  ;;  %v3972_v29 = vld [vmem:[#allocation3 + $0x169] sm:$0xff] }
 0x4f8   : > { %3667 = vrot.lane.b32.xlu1 %v3582_v59, %s5408_s15  ;;  %v3835_v27 = vpop.permute.xlu0 %3834 }
 0x4f9   : > { %3922 = vst.msk [vmem:[#allocation4 + $0x40] sm:$0xff] %vm1821_vm10, %v3835_v27  ;;  %v3781_v27 = vld [vmem:[#allocation3 + $0x170] sm:$0xff] }
 0x4fa   : > { %v3454_v31 = vpop.permute.xlu1 %3453  ;;  %4240 = vrot.lane.b32.xlu0 %v3582_v59, %s5411_s5 }
 0x4fb   : > { %3539 = vst.msk [vmem:[#allocation4 + $0x50] sm:$0xff] %vm1434_vm7, %v3454_v31 }
 0x4fc   : > { %3860 = vrot.lane.b32.xlu1 %v3775_v62, %s5409_s16  ;;  %v4027_v36 = vpop.permute.xlu0 %4026  ;;  %v4337_v44 = vld [vmem:[#allocation4 + $0x38] sm:$0xff] }
 0x4fd   : > { %4114 = vst.msk [vmem:[#allocation4 + $0x40] sm:$0xff] %vm2014_vm11, %v4027_v36  ;;  %5082 = vmatmul.mubr.msk.f32.gmra.mxu1 %vm2284_vm13, %v4337_v44 }
 0x4fe   : > { %v4219_v48 = vpop.permute.xlu1 %4218  ;;  %3858 = vrot.lane.b32.xlu0 %v3774_v40, %s5409_s16  ;;  %v4164_v40 = vld [vmem:[#allocation3 + $0x16a] sm:$0xff] }
 0x4ff   : > { %4306 = vst.msk [vmem:[#allocation4 + $0x40] sm:$0xff] %vm2207_vm12, %v4219_v48 }
 0x500   : > { %3477 = vrot.lane.b32.xlu1 %v3391_v4, %s5407_s14  ;;  %v4029_v15 = vpop.permute.xlu0 %4028 }
 0x501   : > { %4115 = vst.msk [vmem:[#allocation4 + $0x48] sm:$0xff] %vm2014_vm11, %v4029_v15 }
 0x502   : > { %v3646_v18 = vpop.permute.xlu1 %3645  ;;  %4050 = vrot.lane.b32.xlu0 %v3391_v4, %s5410_s17  ;;  %v3973_v4 = vld [vmem:[#allocation3 + $0x171] sm:$0xff] }
 0x503   : > { %3731 = vst.msk [vmem:[#allocation4 + $0x50] sm:$0xff] %vm1627_vm8, %v3646_v18 }
 0x504   : > { %4242 = vrot.lane.b32.xlu1 %v4158_v60, %s5411_s5  ;;  %v3456_v28 = vpop.permute.xlu0 %3455 }
 0x505   : > { %3540 = vst.msk [vmem:[#allocation4 + $0x58] sm:$0xff] %vm1434_vm7, %v3456_v28 }
 0x506   : > { %v3648_v56 = vpop.permute.xlu1 %3647  ;;  %4052 = vrot.lane.b32.xlu0 %v3967_v22, %s5410_s17  ;;  %v4338_v52 = vld [vmem:[#allocation4 + $0x40] sm:$0xff] }
 0x507   : > { %3732 = vst.msk [vmem:[#allocation4 + $0x58] sm:$0xff] %vm1627_vm8, %v3648_v56  ;;  %5084 = vmatprep.mubr.msk.f32.mxu1 %vm2284_vm13, %v4338_v52 }
 0x508   : > { %3669 = vrot.lane.b32.xlu1 %v4158_v60, %s5408_s15  ;;  %v4221_v53 = vpop.permute.xlu0 %4220 }
 0x509   : > { %4307 = vst.msk [vmem:[#allocation4 + $0x48] sm:$0xff] %vm2207_vm12, %v4221_v53  ;;  %v3207_v53 = vld [vmem:[#allocation3 + $0x180] sm:$0xff] }
 0x50a   : > { %v3841_v0 = vpop.permute.xlu1 %3840  ;;  %3479 = vrot.lane.b32.xlu0 %v3967_v22, %s5407_s14  ;;  %v3590_v22 = vld [vmem:[#allocation3 + $0x172] sm:$0xff] }
 0x50b   : > { %3925 = vst.msk [vmem:[#allocation4 + $0x58] sm:$0xff] %vm1821_vm10, %v3841_v0 }
 0x50c   : > { %3671 = vrot.lane.b32.xlu1 %v3584_v5, %s5408_s15  ;;  %v3839_v10 = vpop.permute.xlu0 %3838 }
 0x50d   : > { %3924 = vst.msk [vmem:[#allocation4 + $0x50] sm:$0xff] %vm1821_vm10, %v3839_v10 }
 0x50e   : > { %v3458_v7 = vpop.permute.xlu1 %3457  ;;  %4244 = vrot.lane.b32.xlu0 %v3584_v5, %s5411_s5 }
 0x50f   : > { %3541 = vst.msk [vmem:[#allocation4 + $0x60] sm:$0xff] %vm1434_vm7, %v3458_v7  ;;  %v3974_v7 = vld [vmem:[#allocation3 + $0x181] sm:$0xff] }
 0x510   : > { %3864 = vrot.lane.b32.xlu1 %v3777_v6, %s5409_s16  ;;  %v4031_v51 = vpop.permute.xlu0 %4030  ;;  %v4339_v24 = vld [vmem:[#allocation4 + $0x48] sm:$0xff] }
 0x511   : > { %4116 = vst.msk [vmem:[#allocation4 + $0x50] sm:$0xff] %vm2014_vm11, %v4031_v51  ;;  %5085 = vmatmul.mubr.msk.f32.gmra.mxu1 %vm2284_vm13, %v4339_v24  ;;  %v3783_v51 = vld [vmem:[#allocation3 + $0x188] sm:$0xff] }
 0x512   : > { %v4223_v16 = vpop.permute.xlu1 %4222  ;;  %3862 = vrot.lane.b32.xlu0 %v3776_v37, %s5409_s16 }
 0x513   : > { %4308 = vst.msk [vmem:[#allocation4 + $0x50] sm:$0xff] %vm2207_vm12, %v4223_v16 }
 0x514   : > { %3481 = vrot.lane.b32.xlu1 %v3393_v8, %s5407_s14  ;;  %v4033_v38 = vpop.permute.xlu0 %4032 }
 0x515   : > { %4117 = vst.msk [vmem:[#allocation4 + $0x58] sm:$0xff] %vm2014_vm11, %v4033_v38 }
 0x516   : > { %v3650_v3 = vpop.permute.xlu1 %3649  ;;  %4054 = vrot.lane.b32.xlu0 %v3393_v8, %s5410_s17  ;;  %v4166_v8 = vld [vmem:[#allocation3 + $0x182] sm:$0xff] }
 0x517   : > { %3733 = vst.msk [vmem:[#allocation4 + $0x60] sm:$0xff] %vm1627_vm8, %v3650_v3 }
 0x518   : > { %4246 = vrot.lane.b32.xlu1 %v4160_v49, %s5411_s5  ;;  %v3460_v39 = vpop.permute.xlu0 %3459 }
 0x519   : > { %3542 = vst.msk [vmem:[#allocation4 + $0x68] sm:$0xff] %vm1434_vm7, %v3460_v39 }
 0x51a   : > { %v3652_v42 = vpop.permute.xlu1 %3651  ;;  %4056 = vrot.lane.b32.xlu0 %v3969_v50, %s5410_s17  ;;  %v4340_v21 = vld [vmem:[#allocation4 + $0x50] sm:$0xff] }
 0x51b   : > { %3734 = vst.msk [vmem:[#allocation4 + $0x68] sm:$0xff] %vm1627_vm8, %v3652_v42  ;;  %5087 = vmatprep.mubr.msk.f32.mxu1 %vm2284_vm13, %v4340_v21  ;;  %v3592_v21 = vld [vmem:[#allocation3 + $0x18a] sm:$0xff] }
 0x51c   : > { %3673 = vrot.lane.b32.xlu1 %v4160_v49, %s5408_s15  ;;  %v4225_v9 = vpop.permute.xlu0 %4224  ;;  %v3975_v49 = vld [vmem:[#allocation3 + $0x189] sm:$0xff] }
 0x51d   : > { %4309 = vst.msk [vmem:[#allocation4 + $0x58] sm:$0xff] %vm2207_vm12, %v4225_v9 }
 0x51e   : > { %v3845_v11 = vpop.permute.xlu1 %3844  ;;  %3483 = vrot.lane.b32.xlu0 %v3969_v50, %s5407_s14 }
 0x51f   : > { %3927 = vst.msk [vmem:[#allocation4 + $0x68] sm:$0xff] %vm1821_vm10, %v3845_v11  ;;  %v3785_v11 = vld [vmem:[#allocation3 + $0x1a0] sm:$0xff] }
 0x520   : > { %3675 = vrot.lane.b32.xlu1 %v3586_v12, %s5408_s15  ;;  %v3843_v2 = vpop.permute.xlu0 %3842 }
 0x521   : > { %3926 = vst.msk [vmem:[#allocation4 + $0x60] sm:$0xff] %vm1821_vm10, %v3843_v2 }
 0x522   : > { %v3462_v35 = vpop.permute.xlu1 %3461  ;;  %4248 = vrot.lane.b32.xlu0 %v3586_v12, %s5411_s5 }
 0x523   : > { %3543 = vst.msk [vmem:[#allocation4 + $0x70] sm:$0xff] %vm1434_vm7, %v3462_v35  ;;  %v3784_v35 = vld [vmem:[#allocation3 + $0x198] sm:$0xff] }
 0x524   : > { %3293 = vrot.lane.b32.xlu1 %v3203_v54, %s5406_s13  ;;  %v4035_v19 = vpop.permute.xlu0 %4034  ;;  %v4341_v17 = vld [vmem:[#allocation4 + $0x58] sm:$0xff] }
 0x525   : > { %4118 = vst.msk [vmem:[#allocation4 + $0x60] sm:$0xff] %vm2014_vm11, %v4035_v19  ;;  %5088 = vmatmul.mubr.msk.f32.gmra.mxu1 %vm2284_vm13, %v4341_v17  ;;  %v3977_v19 = vld [vmem:[#allocation3 + $0x1a1] sm:$0xff] }
 0x526   : > { %v4227_v1 = vpop.permute.xlu1 %4226  ;;  %3866 = vrot.lane.b32.xlu0 %v3203_v54, %s5409_s16 }
 0x527   : > { %4310 = vst.msk [vmem:[#allocation4 + $0x60] sm:$0xff] %vm2207_vm12, %v4227_v1  ;;  %v3976_v1 = vld [vmem:[#allocation3 + $0x199] sm:$0xff] }
 0x528   : > { %4058 = vrot.lane.b32.xlu1 %v3970_v26, %s5410_s17  ;;  %v4037_v41 = vpop.permute.xlu0 %4036 }
 0x529   : > { %4119 = vst.msk [vmem:[#allocation4 + $0x68] sm:$0xff] %vm2014_vm11, %v4037_v41  ;;  %v4169_v41 = vld [vmem:[#allocation3 + $0x1a2] sm:$0xff] }
 0x52a   : > { %v3654_v58 = vpop.permute.xlu1 %3653  ;;  %3868 = vrot.lane.b32.xlu0 %v3779_v55, %s5409_s16 }
 0x52b   : > { %3735 = vst.msk [vmem:[#allocation4 + $0x70] sm:$0xff] %vm1627_vm8, %v3654_v58  ;;  %v4168_v58 = vld [vmem:[#allocation3 + $0x19a] sm:$0xff] }
 0x52c   : > { %3485 = vrot.lane.b32.xlu1 %v3970_v26, %s5407_s14  ;;  %v3464_v13 = vpop.permute.xlu0 %3463 }
 0x52d   : > { %3544 = vst.msk [vmem:[#allocation4 + $0x78] sm:$0xff] %vm1434_vm7, %v3464_v13 }
 0x52e   : > { %v3656_v34 = vpop.permute.xlu1 %3655  ;;  %3295 = vrot.lane.b32.xlu0 %v3779_v55, %s5406_s13  ;;  %v4342_v20 = vld [vmem:[#allocation4 + $0x60] sm:$0xff] }
 0x52f   : > { %3736 = vst.msk [vmem:[#allocation4 + $0x78] sm:$0xff] %vm1627_vm8, %v3656_v34  ;;  %5090 = vmatprep.mubr.msk.f32.mxu1 %vm2284_vm13, %v4342_v20 }
 0x530   : > { %4250 = vrot.lane.b32.xlu1 %v4162_v63, %s5411_s5  ;;  %v4229_v33 = vpop.permute.xlu0 %4228 }
 0x531   : > { %4311 = vst.msk [vmem:[#allocation4 + $0x68] sm:$0xff] %vm2207_vm12, %v4229_v33 }
 0x532   : > { %v3849_v61 = vpop.permute.xlu1 %3848  ;;  %4060 = vrot.lane.b32.xlu0 %v3971_v46, %s5410_s17 }
 0x533   : > { %3929 = vst.msk [vmem:[#allocation4 + $0x78] sm:$0xff] %vm1821_vm10, %v3849_v61 }
 0x534   : > { %3677 = vrot.lane.b32.xlu1 %v4162_v63, %s5408_s15  ;;  %v3847_v30 = vpop.permute.xlu0 %3846 }
 0x535   : > { %3928 = vst.msk [vmem:[#allocation4 + $0x70] sm:$0xff] %vm1821_vm10, %v3847_v30 }
 0x536   : > { %v3466_v23 = vpop.permute.xlu1 %3465  ;;  %3487 = vrot.lane.b32.xlu0 %v3971_v46, %s5407_s14 }
 0x537   : > { %3545 = vst.msk [vmem:[#allocation4 + $0x80] sm:$0xff] %vm1434_vm7, %v3466_v23  ;;  %v8160_v23 = vld [vmem:[%s8368_s4] ss:$0 sm:$0xff] }
 0x538   : > { %3679 = vrot.lane.b32.xlu1 %v3588_v43, %s5408_s15  ;;  %v4039_v45 = vpop.permute.xlu0 %4038  ;;  %v4343_v47 = vld [vmem:[#allocation4 + $0x68] sm:$0xff] }
 0x539   : > { %4120 = vst.msk [vmem:[#allocation4 + $0x70] sm:$0xff] %vm2014_vm11, %v4039_v45  ;;  %5091 = vmatmul.mubr.msk.f32.gmra.mxu1 %vm2284_vm13, %v4343_v47 }
 0x53a   : > { %v4231_v14 = vpop.permute.xlu1 %4230  ;;  %4252 = vrot.lane.b32.xlu0 %v3588_v43, %s5411_s5 }
 0x53b   : > { %4312 = vst.msk [vmem:[#allocation4 + $0x70] sm:$0xff] %vm2207_vm12, %v4231_v14 }
 0x53c   : > { %3297 = vrot.lane.b32.xlu1 %v3205_v25, %s5406_s13  ;;  %v4041_v32 = vpop.permute.xlu0 %4040 }
 0x53d   : > { %4121 = vst.msk [vmem:[#allocation4 + $0x78] sm:$0xff] %vm2014_vm11, %v4041_v32  ;;  %v8582_v32 = vld [vmem:[#allocation8_spill] sm:$0xff] }
 0x53e   : > { %v3658_v57 = vpop.permute.xlu1 %3657  ;;  %3870 = vrot.lane.b32.xlu0 %v3205_v25, %s5409_s16 }
 0x53f   : > { %3737 = vst.msk [vmem:[#allocation4 + $0x80] sm:$0xff] %vm1627_vm8, %v3658_v57 }
 0x540   : > { %4062 = vrot.lane.b32.xlu1 %v3972_v29, %s5410_s17  ;;  %v3468_v59 = vpop.permute.xlu0 %3467 }
 0x541   : > { %3546 = vst.msk [vmem:[#allocation4 + $0x88] sm:$0xff] %vm1434_vm7, %v3468_v59 }
 0x542   : > { %v3660_v31 = vpop.permute.xlu1 %3659  ;;  %3872 = vrot.lane.b32.xlu0 %v3781_v27, %s5409_s16  ;;  %v4344_v62 = vld [vmem:[#allocation4 + $0x70] sm:$0xff] }
 0x543   : > { %3738 = vst.msk [vmem:[#allocation4 + $0x88] sm:$0xff] %vm1627_vm8, %v3660_v31  ;;  %5093 = vmatprep.mubr.msk.f32.mxu1 %vm2284_vm13, %v4344_v62  ;;  %v8583_v31 = vld [vmem:[#allocation7_spill] sm:$0xff] }
 0x544   : > { %3489 = vrot.lane.b32.xlu1 %v3972_v29, %s5407_s14  ;;  %v4233_v36 = vpop.permute.xlu0 %4232 }
 0x545   : > { %4313 = vst.msk [vmem:[#allocation4 + $0x78] sm:$0xff] %vm2207_vm12, %v4233_v36 }
 0x546   : > { %v3853_v44 = vpop.permute.xlu1 %3852  ;;  %3299 = vrot.lane.b32.xlu0 %v3781_v27, %s5406_s13 }
 0x547   : > { %3931 = vst.msk [vmem:[#allocation4 + $0x88] sm:$0xff] %vm1821_vm10, %v3853_v44 }
 0x548   : > { %4254 = vrot.lane.b32.xlu1 %v4164_v40, %s5411_s5  ;;  %v3851_v48 = vpop.permute.xlu0 %3850 }
 0x549   : > { %3930 = vst.msk [vmem:[#allocation4 + $0x80] sm:$0xff] %vm1821_vm10, %v3851_v48 }
 0x54a   : > { %v3470_v15 = vpop.permute.xlu1 %3469  ;;  %4064 = vrot.lane.b32.xlu0 %v3973_v4, %s5410_s17 }
 0x54b   : > { %3547 = vst.msk [vmem:[#allocation4 + $0x90] sm:$0xff] %vm1434_vm7, %v3470_v15 }
 0x54c   : > { %3681 = vrot.lane.b32.xlu1 %v4164_v40, %s5408_s15  ;;  %v4043_v18 = vpop.permute.xlu0 %4042  ;;  %v4345_v60 = vld [vmem:[#allocation4 + $0x78] sm:$0xff] }
 0x54d   : > { %4122 = vst.msk [vmem:[#allocation4 + $0x80] sm:$0xff] %vm2014_vm11, %v4043_v18  ;;  %5094 = vmatmul.mubr.msk.f32.gmra.mxu1 %vm2284_vm13, %v4345_v60 }
 0x54e   : > { %v4235_v28 = vpop.permute.xlu1 %4234  ;;  %3491 = vrot.lane.b32.xlu0 %v3973_v4, %s5407_s14 }
 0x54f   : > { %4314 = vst.msk [vmem:[#allocation4 + $0x80] sm:$0xff] %vm2207_vm12, %v4235_v28 }
 0x550   : > { %3683 = vrot.lane.b32.xlu1 %v3590_v22, %s5408_s15  ;;  %v4045_v56 = vpop.permute.xlu0 %4044 }
 0x551   : > { %4123 = vst.msk [vmem:[#allocation4 + $0x88] sm:$0xff] %vm2014_vm11, %v4045_v56 }
 0x552   : > { %v3662_v52 = vpop.permute.xlu1 %3661  ;;  %4256 = vrot.lane.b32.xlu0 %v3590_v22, %s5411_s5 }
 0x553   : > { %3739 = vst.msk [vmem:[#allocation4 + $0x90] sm:$0xff] %vm1627_vm8, %v3662_v52 }
 0x554   : > { %3301 = vrot.lane.b32.xlu1 %v3207_v53, %s5406_s13  ;;  %v3472_v0 = vpop.permute.xlu0 %3471 }
 0x555   : > { %3548 = vst.msk [vmem:[#allocation4 + $0x98] sm:$0xff] %vm1434_vm7, %v3472_v0 }
 0x556   : > { %v3664_v5 = vpop.permute.xlu1 %3663  ;;  %3874 = vrot.lane.b32.xlu0 %v3207_v53, %s5409_s16  ;;  %v4346_v10 = vld [vmem:[#allocation4 + $0x80] sm:$0xff] }
 0x557   : > { %3740 = vst.msk [vmem:[#allocation4 + $0x98] sm:$0xff] %vm1627_vm8, %v3664_v5  ;;  %5096 = vmatprep.mubr.msk.f32.mxu1 %vm2284_vm13, %v4346_v10  ;;  %v8584_v10 = vld [vmem:[#allocation10_spill] sm:$0xff] }
 0x558   : > { %4066 = vrot.lane.b32.xlu1 %v3974_v7, %s5410_s17  ;;  %v4237_v6 = vpop.permute.xlu0 %4236 }
 0x559   : > { %4315 = vst.msk [vmem:[#allocation4 + $0x88] sm:$0xff] %vm2207_vm12, %v4237_v6 }
 0x55a   : > { %v3857_v24 = vpop.permute.xlu1 %3856  ;;  %3876 = vrot.lane.b32.xlu0 %v3783_v51, %s5409_s16 }
 0x55b   : > { %3933 = vst.msk [vmem:[#allocation4 + $0x98] sm:$0xff] %vm1821_vm10, %v3857_v24 }
 0x55c   : > { %3493 = vrot.lane.b32.xlu1 %v3974_v7, %s5407_s14  ;;  %v3855_v37 = vpop.permute.xlu0 %3854 }
 0x55d   : > { %3932 = vst.msk [vmem:[#allocation4 + $0x90] sm:$0xff] %vm1821_vm10, %v3855_v37  ;;  %v8585_v37 = vld [vmem:[#allocation9_spill] sm:$0xff] }
 0x55e   : > { %v3474_v16 = vpop.permute.xlu1 %3473  ;;  %3303 = vrot.lane.b32.xlu0 %v3783_v51, %s5406_s13 }
 0x55f   : > { %3549 = vst.msk [vmem:[#allocation4 + $0xa0] sm:$0xff] %vm1434_vm7, %v3474_v16 }
 0x560   : > { %4258 = vrot.lane.b32.xlu1 %v4166_v8, %s5411_s5  ;;  %v4047_v38 = vpop.permute.xlu0 %4046  ;;  %v4347_v3 = vld [vmem:[#allocation4 + $0x88] sm:$0xff] }
 0x561   : > { %4124 = vst.msk [vmem:[#allocation4 + $0x90] sm:$0xff] %vm2014_vm11, %v4047_v38  ;;  %5097 = vmatmul.mubr.msk.f32.gmra.mxu1 %vm2284_vm13, %v4347_v3 }
 0x562   : > { %v4239_v39 = vpop.permute.xlu1 %4238  ;;  %4068 = vrot.lane.b32.xlu0 %v3975_v49, %s5410_s17 }
 0x563   : > { %4316 = vst.msk [vmem:[#allocation4 + $0x90] sm:$0xff] %vm2207_vm12, %v4239_v39 }
 0x564   : > { %3685 = vrot.lane.b32.xlu1 %v4166_v8, %s5408_s15  ;;  %v4049_v50 = vpop.permute.xlu0 %4048 }
 0x565   : > { %4125 = vst.msk [vmem:[#allocation4 + $0x98] sm:$0xff] %vm2014_vm11, %v4049_v50 }
 0x566   : > { %v3666_v42 = vpop.permute.xlu1 %3665  ;;  %3495 = vrot.lane.b32.xlu0 %v3975_v49, %s5407_s14 }
 0x567   : > { %3741 = vst.msk [vmem:[#allocation4 + $0xa0] sm:$0xff] %vm1627_vm8, %v3666_v42 }
 0x568   : > { %3687 = vrot.lane.b32.xlu1 %v3592_v21, %s5408_s15  ;;  %v3476_v9 = vpop.permute.xlu0 %3475 }
 0x569   : > { %3550 = vst.msk [vmem:[#allocation4 + $0xa8] sm:$0xff] %vm1434_vm7, %v3476_v9 }
 0x56a   : > { %v3668_v12 = vpop.permute.xlu1 %3667  ;;  %4260 = vrot.lane.b32.xlu0 %v3592_v21, %s5411_s5  ;;  %v4348_v2 = vld [vmem:[#allocation4 + $0x90] sm:$0xff] }
 0x56b   : > { %3742 = vst.msk [vmem:[#allocation4 + $0xa8] sm:$0xff] %vm1627_vm8, %v3668_v12  ;;  %5099 = vmatprep.mubr.msk.f32.mxu1 %vm2284_vm13, %v4348_v2 }
 0x56c   : > { %v4241_v54 = vpop.permute.xlu0 %4240  ;;  %3880 = vrot.lane.b32.xlu1 %v3785_v11, %s5409_s16 }
 0x56d   : > { %4317 = vst.msk [vmem:[#allocation4 + $0x98] sm:$0xff] %vm2207_vm12, %v4241_v54 }
 0x56e   : > { %v3861_v17 = vpop.permute.xlu1 %3860  ;;  %3878 = vrot.lane.b32.xlu0 %v3784_v35, %s5409_s16 }
 0x56f   : > { %3935 = vst.msk [vmem:[#allocation4 + $0xa8] sm:$0xff] %vm1821_vm10, %v3861_v17  ;;  %v8586_v17 = vld [vmem:[#allocation12_spill] sm:$0xff] }
 0x570   : > { %v3859_v26 = vpop.permute.xlu0 %3858  ;;  %4072 = vrot.lane.b32.xlu1 %v3977_v19, %s5410_s17 }
 0x571   : > { %3934 = vst.msk [vmem:[#allocation4 + $0xa0] sm:$0xff] %vm1821_vm10, %v3859_v26 }
 0x572   : > { %v3478_v55 = vpop.permute.xlu1 %3477  ;;  %4070 = vrot.lane.b32.xlu0 %v3976_v1, %s5410_s17  ;;  %s8172_s17 = scalar_lea.vmem %s8371_s7, %s4928_s30 }
 0x573   : > { %3551 = vst.msk [vmem:[#allocation4 + $0xb0] sm:$0xff] %vm1434_vm7, %v3478_v55 }
 0x574   : > { %v4051_v13 = vpop.permute.xlu0 %4050  ;;  %v4349_v34 = vld [vmem:[#allocation4 + $0x98] sm:$0xff]  ;;  %4264 = vrot.lane.b32.xlu1 %v4169_v41, %s5411_s5 }
 0x575   : > { %4126 = vst.msk [vmem:[#allocation4 + $0xa0] sm:$0xff] %vm2014_vm11, %v4051_v13  ;;  %5100 = vmatmul.mubr.msk.f32.gmra.mxu1 %vm2284_vm13, %v4349_v34 }
 0x576   : > { %v4243_v20 = vpop.permute.xlu1 %4242  ;;  %4262 = vrot.lane.b32.xlu0 %v4168_v58, %s5411_s5  ;;  %v8587_v58 = vld [vmem:[#allocation11_spill] sm:$0xff] }
 0x577   : > { %4318 = vst.msk [vmem:[#allocation4 + $0xa0] sm:$0xff] %vm2207_vm12, %v4243_v20 }
 0x578   : > { %v4053_v63 = vpop.permute.xlu0 %4052 }
 0x579   : > { %4127 = vst.msk [vmem:[#allocation4 + $0xa8] sm:$0xff] %vm2014_vm11, %v4053_v63 }
 0x57a   : > { %v3670_v33 = vpop.permute.xlu1 %3669 }
 0x57b   : > { %3743 = vst.msk [vmem:[#allocation4 + $0xb0] sm:$0xff] %vm1627_vm8, %v3670_v33 }
 0x57c   : > { %v3480_v46 = vpop.permute.xlu0 %3479 }
 0x57d   : > { %3552 = vst.msk [vmem:[#allocation4 + $0xb8] sm:$0xff] %vm1434_vm7, %v3480_v46 }
 0x57e   : > { %v3672_v61 = vpop.permute.xlu1 %3671  ;;  %v4350_v30 = vld [vmem:[#allocation4 + $0xa0] sm:$0xff] }
 0x57f   : > { %3744 = vst.msk [vmem:[#allocation4 + $0xb8] sm:$0xff] %vm1627_vm8, %v3672_v61  ;;  %5102 = vmatprep.mubr.msk.f32.mxu1 %vm2284_vm13, %v4350_v30 }
 0x580   : > { %v4245_v43 = vpop.permute.xlu0 %4244 }
 0x581   : > { %4319 = vst.msk [vmem:[#allocation4 + $0xa8] sm:$0xff] %vm2207_vm12, %v4245_v43  ;;  %v5074_v45 = vpop.f32.mrf.mxu1 }
 0x582   : > { %v4545_v47 = vadd.f32 %v5074_v45, %v8160_v23  ;;  %v3865_v14 = vpop.permute.xlu1 %3864 }
 0x583   : > { %3937 = vst.msk [vmem:[#allocation4 + $0xb8] sm:$0xff] %vm1821_vm10, %v3865_v14  ;;  %v4539_v25 = vpop.f32.mrf.mxu1 }
 0x584   : > { %v4699_v57 = vadd.f32 %v4545_v47, %v8582_v32  ;;  %v4540_v29 = vadd.f32 %v8160_v23, %v4539_v25  ;;  %v3863_v59 = vpop.permute.xlu0 %3862 }
 0x585   : > { %3936 = vst.msk [vmem:[#allocation4 + $0xb0] sm:$0xff] %vm1821_vm10, %v3863_v59 }
 0x586   : > { %v4731_v27 = vmax.f32 %v4699_v57, 0.0  ;;  %v4698_v62 = vadd.f32 %v4540_v29, %v8583_v31  ;;  %v3482_v36 = vpop.permute.xlu1 %3481  ;;  %v8588_v29 = vld [vmem:[#allocation14_spill] sm:$0xff] }
 0x587   : > { %3553 = vst.msk [vmem:[#allocation4 + $0xc0] sm:$0xff] %vm1434_vm7, %v3482_v36  ;;  %v8589_v36 = vld [vmem:[#allocation13_spill] sm:$0xff] }
 0x588   : > { %4763 = vst.msk [vmem:[%s8172_s17 + $0x8] sm:$0xff] %vm542_vm0, %v4731_v27  ;;  %v4730_v44 = vmax.f32 %v4698_v62, 0.0  ;;  %v4055_v40 = vpop.permute.xlu0 %4054  ;;  %v4351_v48 = vld [vmem:[#allocation4 + $0xa8] sm:$0xff] }
 0x589   : > { %4128 = vst.msk [vmem:[#allocation4 + $0xb0] sm:$0xff] %vm2014_vm11, %v4055_v40  ;;  %5103 = vmatmul.mubr.msk.f32.gmra.mxu1 %vm2284_vm13, %v4351_v48 }
 0x58a   : > { %4762 = vst.msk [vmem:[%s8172_s17] sm:$0xff] %vm542_vm0, %v4730_v44  ;;  %v4247_v4 = vpop.permute.xlu1 %4246 }
 0x58b   : > { %4320 = vst.msk [vmem:[#allocation4 + $0xb0] sm:$0xff] %vm2207_vm12, %v4247_v4 }
 0x58c   : > { %v4057_v15 = vpop.permute.xlu0 %4056 }
 0x58d   : > { %4129 = vst.msk [vmem:[#allocation4 + $0xb8] sm:$0xff] %vm2014_vm11, %v4057_v15 }
 0x58e   : > { %v3674_v18 = vpop.permute.xlu1 %3673 }
 0x58f   : > { %3745 = vst.msk [vmem:[#allocation4 + $0xc0] sm:$0xff] %vm1627_vm8, %v3674_v18 }
 0x590   : > { %v3484_v60 = vpop.permute.xlu0 %3483 }
 0x591   : > { %3554 = vst.msk [vmem:[#allocation4 + $0xc8] sm:$0xff] %vm1434_vm7, %v3484_v60 }
 0x592   : > { %v3676_v28 = vpop.permute.xlu1 %3675  ;;  %v4352_v22 = vld [vmem:[#allocation4 + $0xb0] sm:$0xff] }
 0x593   : > { %3746 = vst.msk [vmem:[#allocation4 + $0xc8] sm:$0xff] %vm1627_vm8, %v3676_v28  ;;  %5105 = vmatprep.mubr.msk.f32.mxu1 %vm2284_vm13, %v4352_v22 }
 0x594   : > { %v4249_v56 = vpop.permute.xlu0 %4248 }
 0x595   : > { %4321 = vst.msk [vmem:[#allocation4 + $0xb8] sm:$0xff] %vm2207_vm12, %v4249_v56  ;;  %v5077_v52 = vpop.f32.mrf.mxu1 }
 0x596   : > { %v4555_v53 = vadd.f32 %v5077_v52, %v8160_v23  ;;  %v3294_v0 = vpop.permute.xlu1 %3293 }
 0x597   : > { %3363 = vst.msk [vmem:[#allocation4 + $0xd0] sm:$0xff] %vm1241_vm6, %v3294_v0  ;;  %v4549_v5 = vpop.f32.mrf.mxu1 }
 0x598   : > { %v4701_v7 = vadd.f32 %v4555_v53, %v8584_v10  ;;  %v4550_v6 = vadd.f32 %v8160_v23, %v4549_v5  ;;  %v3867_v51 = vpop.permute.xlu0 %3866 }
 0x599   : > { %3938 = vst.msk [vmem:[#allocation4 + $0xc0] sm:$0xff] %vm1821_vm10, %v3867_v51 }
 0x59a   : > { %v4733_v24 = vmax.f32 %v4701_v7, 0.0  ;;  %v4700_v16 = vadd.f32 %v4550_v6, %v8585_v37  ;;  %v4059_v8 = vpop.permute.xlu1 %4058  ;;  %v8590_v6 = vld [vmem:[#allocation16_spill] sm:$0xff] }
 0x59b   : > { %4130 = vst.msk [vmem:[#allocation4 + $0xc0] sm:$0xff] %vm2014_vm11, %v4059_v8  ;;  %v8591_v8 = vld [vmem:[#allocation15_spill] sm:$0xff] }
 0x59c   : > { %4765 = vst.msk [vmem:[%s8172_s17 + $0x18] sm:$0xff] %vm542_vm0, %v4733_v24  ;;  %v4732_v38 = vmax.f32 %v4700_v16, 0.0  ;;  %v3869_v3 = vpop.permute.xlu0 %3868  ;;  %v4353_v49 = vld [vmem:[#allocation4 + $0xb8] sm:$0xff] }
 0x59d   : > { %3939 = vst.msk [vmem:[#allocation4 + $0xc8] sm:$0xff] %vm1821_vm10, %v3869_v3  ;;  %5106 = vmatmul.mubr.msk.f32.gmra.mxu1 %vm2284_vm13, %v4353_v49 }
 0x59e   : > { %4764 = vst.msk [vmem:[%s8172_s17 + $0x10] sm:$0xff] %vm542_vm0, %v4732_v38  ;;  %v3486_v39 = vpop.permute.xlu1 %3485 }
 0x59f   : > { %3555 = vst.msk [vmem:[#allocation4 + $0xd0] sm:$0xff] %vm1434_vm7, %v3486_v39 }
 0x5a0   : > { %v3296_v50 = vpop.permute.xlu0 %3295 }
 0x5a1   : > { %3364 = vst.msk [vmem:[#allocation4 + $0xd8] sm:$0xff] %vm1241_vm6, %v3296_v50 }
 0x5a2   : > { %v4251_v42 = vpop.permute.xlu1 %4250 }
 0x5a3   : > { %4322 = vst.msk [vmem:[#allocation4 + $0xc0] sm:$0xff] %vm2207_vm12, %v4251_v42 }
 0x5a4   : > { %v4061_v21 = vpop.permute.xlu0 %4060 }
 0x5a5   : > { %4131 = vst.msk [vmem:[#allocation4 + $0xc8] sm:$0xff] %vm2014_vm11, %v4061_v21 }
 0x5a6   : > { %v3678_v9 = vpop.permute.xlu1 %3677 }
 0x5a7   : > { %3747 = vst.msk [vmem:[#allocation4 + $0xd0] sm:$0xff] %vm1627_vm8, %v3678_v9 }
 0x5a8   : > { %v3488_v11 = vpop.permute.xlu0 %3487 }
 0x5a9   : > { %3556 = vst.msk [vmem:[#allocation4 + $0xd8] sm:$0xff] %vm1434_vm7, %v3488_v11  ;;  %v5080_v12 = vpop.f32.mrf.mxu1 }
 0x5aa   : > { %v4565_v2 = vadd.f32 %v5080_v12, %v8160_v23  ;;  %v3680_v35 = vpop.permute.xlu1 %3679  ;;  %v4354_v54 = vld [vmem:[#allocation4 + $0xc0] sm:$0xff] }
 0x5ab   : > { %3748 = vst.msk [vmem:[#allocation4 + $0xd8] sm:$0xff] %vm1627_vm8, %v3680_v35  ;;  %v4559_v19 = vpop.f32.mrf.mxu1  ;;  %5108 = vmatprep.mubr.msk.f32.mxu1 %vm2284_vm13, %v4354_v54 }
 0x5ac   : > { %v4703_v1 = vadd.f32 %v4565_v2, %v8586_v17  ;;  %v4560_v26 = vadd.f32 %v8160_v23, %v4559_v19  ;;  %v4253_v41 = vpop.permute.xlu0 %4252 }
 0x5ad   : > { %4323 = vst.msk [vmem:[#allocation4 + $0xc8] sm:$0xff] %vm2207_vm12, %v4253_v41 }
 0x5ae   : > { %v4735_v55 = vmax.f32 %v4703_v1, 0.0  ;;  %v4702_v13 = vadd.f32 %v4560_v26, %v8587_v58  ;;  %v3298_v34 = vpop.permute.xlu1 %3297  ;;  %v8592_v26 = vld [vmem:[#allocation18_spill] sm:$0xff] }
 0x5af   : > { %3365 = vst.msk [vmem:[#allocation4 + $0xe0] sm:$0xff] %vm1241_vm6, %v3298_v34  ;;  %v8593_v34 = vld [vmem:[#allocation17_spill] sm:$0xff] }
 0x5b0   : > { %4767 = vst.msk [vmem:[%s8172_s17 + $0x28] sm:$0xff] %vm542_vm0, %v4735_v55  ;;  %v4734_v20 = vmax.f32 %v4702_v13, 0.0  ;;  %v3871_v63 = vpop.permute.xlu0 %3870 }
 0x5b1   : > { %3940 = vst.msk [vmem:[#allocation4 + $0xd0] sm:$0xff] %vm1821_vm10, %v3871_v63 }
 0x5b2   : > { %4766 = vst.msk [vmem:[%s8172_s17 + $0x20] sm:$0xff] %vm542_vm0, %v4734_v20  ;;  %v4063_v33 = vpop.permute.xlu1 %4062 }
 0x5b3   : > { %4132 = vst.msk [vmem:[#allocation4 + $0xd0] sm:$0xff] %vm2014_vm11, %v4063_v33 }
 0x5b4   : > { %v3873_v46 = vpop.permute.xlu0 %3872  ;;  %v4355_v61 = vld [vmem:[#allocation4 + $0xc8] sm:$0xff] }
 0x5b5   : > { %3941 = vst.msk [vmem:[#allocation4 + $0xd8] sm:$0xff] %vm1821_vm10, %v3873_v46  ;;  %5109 = vmatmul.mubr.msk.f32.gmra.mxu1 %vm2284_vm13, %v4355_v61 }
 0x5b6   : > { %v3490_v30 = vpop.permute.xlu1 %3489 }
 0x5b7   : > { %3557 = vst.msk [vmem:[#allocation4 + $0xe0] sm:$0xff] %vm1434_vm7, %v3490_v30 }
 0x5b8   : > { %v3300_v43 = vpop.permute.xlu0 %3299 }
 0x5b9   : > { %3366 = vst.msk [vmem:[#allocation4 + $0xe8] sm:$0xff] %vm1241_vm6, %v3300_v43 }
 0x5ba   : > { %v4255_v45 = vpop.permute.xlu1 %4254 }
 0x5bb   : > { %4324 = vst.msk [vmem:[#allocation4 + $0xd0] sm:$0xff] %vm2207_vm12, %v4255_v45  ;;  %v8594_v45 = vld [vmem:[#allocation20_spill] sm:$0xff] }
 0x5bc   : > { %v4065_v47 = vpop.permute.xlu0 %4064 }
 0x5bd   : > { %4133 = vst.msk [vmem:[#allocation4 + $0xd8] sm:$0xff] %vm2014_vm11, %v4065_v47  ;;  %v5083_v14 = vpop.f32.mrf.mxu1 }
 0x5be   : > { %v4575_v25 = vadd.f32 %v5083_v14, %v8160_v23  ;;  %v3682_v32 = vpop.permute.xlu1 %3681 }
 0x5bf   : > { %3749 = vst.msk [vmem:[#allocation4 + $0xe0] sm:$0xff] %vm1627_vm8, %v3682_v32  ;;  %v4569_v57 = vpop.f32.mrf.mxu1  ;;  %v8595_v32 = vld [vmem:[#allocation19_spill] sm:$0xff] }
 0x5c0   : > { %v4705_v59 = vadd.f32 %v4575_v25, %v8588_v29  ;;  %v4570_v27 = vadd.f32 %v8160_v23, %v4569_v57  ;;  %v3492_v31 = vpop.permute.xlu0 %3491 }
 0x5c1   : > { %3558 = vst.msk [vmem:[#allocation4 + $0xe8] sm:$0xff] %vm1434_vm7, %v3492_v31 }
 0x5c2   : > { %v4737_v62 = vmax.f32 %v4705_v59, 0.0  ;;  %v4704_v44 = vadd.f32 %v4570_v27, %v8589_v36  ;;  %v3684_v40 = vpop.permute.xlu1 %3683  ;;  %v4356_v48 = vld [vmem:[#allocation4 + $0xd0] sm:$0xff] }
 0x5c3   : > { %3750 = vst.msk [vmem:[#allocation4 + $0xe8] sm:$0xff] %vm1627_vm8, %v3684_v40  ;;  %5111 = vmatprep.mubr.msk.f32.mxu1 %vm2284_vm13, %v4356_v48  ;;  %v8597_v48 = vld [vmem:[#allocation21_spill] sm:$0xff] }
 0x5c4   : > { %4769 = vst.msk [vmem:[%s8172_s17 + $0x38] sm:$0xff] %vm542_vm0, %v4737_v62  ;;  %v4736_v4 = vmax.f32 %v4704_v44, 0.0  ;;  %v4257_v15 = vpop.permute.xlu0 %4256  ;;  %v8596_v62 = vld [vmem:[#allocation22_spill] sm:$0xff] }
 0x5c5   : > { %4325 = vst.msk [vmem:[#allocation4 + $0xd8] sm:$0xff] %vm2207_vm12, %v4257_v15 }
 0x5c6   : > { %4768 = vst.msk [vmem:[%s8172_s17 + $0x30] sm:$0xff] %vm542_vm0, %v4736_v4  ;;  %v3302_v18 = vpop.permute.xlu1 %3301 }
 0x5c7   : > { %3367 = vst.msk [vmem:[#allocation4 + $0xf0] sm:$0xff] %vm1241_vm6, %v3302_v18 }
 0x5c8   : > { %v3875_v60 = vpop.permute.xlu0 %3874 }
 0x5c9   : > { %3942 = vst.msk [vmem:[#allocation4 + $0xe0] sm:$0xff] %vm1821_vm10, %v3875_v60 }
 0x5ca   : > { %v4067_v28 = vpop.permute.xlu1 %4066 }
 0x5cb   : > { %4134 = vst.msk [vmem:[#allocation4 + $0xe0] sm:$0xff] %vm2014_vm11, %v4067_v28 }
 0x5cc   : > { %v3877_v22 = vpop.permute.xlu0 %3876  ;;  %v4357_v56 = vld [vmem:[#allocation4 + $0xd8] sm:$0xff] }
 0x5cd   : > { %3943 = vst.msk [vmem:[#allocation4 + $0xe8] sm:$0xff] %vm1821_vm10, %v3877_v22  ;;  %5112 = vmatmul.mubr.msk.f32.gmra.mxu1 %vm2284_vm13, %v4357_v56  ;;  %v8598_v22 = vld [vmem:[#allocation24_spill] sm:$0xff] }
 0x5ce   : > { %v3494_v52 = vpop.permute.xlu1 %3493 }
 0x5cf   : > { %3559 = vst.msk [vmem:[#allocation4 + $0xf0] sm:$0xff] %vm1434_vm7, %v3494_v52 }
 0x5d0   : > { %v3304_v53 = vpop.permute.xlu0 %3303 }
 0x5d1   : > { %3368 = vst.msk [vmem:[#allocation4 + $0xf8] sm:$0xff] %vm1241_vm6, %v3304_v53  ;;  %v5086_v0 = vpop.f32.mrf.mxu1 }
 0x5d2   : > { %v4585_v5 = vadd.f32 %v5086_v0, %v8160_v23  ;;  %v4259_v10 = vpop.permute.xlu1 %4258  ;;  %v8599_v0 = vld [vmem:[#allocation23_spill] sm:$0xff] }
 0x5d3   : > { %4326 = vst.msk [vmem:[#allocation4 + $0xe0] sm:$0xff] %vm2207_vm12, %v4259_v10  ;;  %v4579_v7 = vpop.f32.mrf.mxu1 }
 0x5d4   : > { %v4707_v51 = vadd.f32 %v4585_v5, %v8590_v6  ;;  %v4580_v24 = vadd.f32 %v8160_v23, %v4579_v7  ;;  %v4069_v37 = vpop.permute.xlu0 %4068 }
 0x5d5   : > { %4135 = vst.msk [vmem:[#allocation4 + $0xe8] sm:$0xff] %vm2014_vm11, %v4069_v37 }
 0x5d6   : > { %v4739_v16 = vmax.f32 %v4707_v51, 0.0  ;;  %v4706_v38 = vadd.f32 %v4580_v24, %v8591_v8  ;;  %v3686_v3 = vpop.permute.xlu1 %3685  ;;  %v8600_v24 = vld [vmem:[#allocation26_spill] sm:$0xff] }
 0x5d7   : > { %3751 = vst.msk [vmem:[#allocation4 + $0xf0] sm:$0xff] %vm1627_vm8, %v3686_v3 }
 0x5d8   : > { %4771 = vst.msk [vmem:[%s8172_s17 + $0x48] sm:$0xff] %vm542_vm0, %v4739_v16  ;;  %v4738_v49 = vmax.f32 %v4706_v38, 0.0  ;;  %v3496_v39 = vpop.permute.xlu0 %3495  ;;  %v8601_v38 = vld [vmem:[#allocation25_spill] sm:$0xff] }
 0x5d9   : > { %3560 = vst.msk [vmem:[#allocation4 + $0xf8] sm:$0xff] %vm1434_vm7, %v3496_v39 }
 0x5da   : > { %4770 = vst.msk [vmem:[%s8172_s17 + $0x40] sm:$0xff] %vm542_vm0, %v4738_v49  ;;  %v3688_v50 = vpop.permute.xlu1 %3687  ;;  %v4358_v42 = vld [vmem:[#allocation4 + $0xe0] sm:$0xff] }
 0x5db   : > { %3752 = vst.msk [vmem:[#allocation4 + $0xf8] sm:$0xff] %vm1627_vm8, %v3688_v50  ;;  %5114 = vmatprep.mubr.msk.f32.mxu1 %vm2284_vm13, %v4358_v42 }
 0x5dc   : > { %v4261_v21 = vpop.permute.xlu0 %4260 }
 0x5dd   : > { %4327 = vst.msk [vmem:[#allocation4 + $0xe8] sm:$0xff] %vm2207_vm12, %v4261_v21  ;;  %v8602_v21 = vld [vmem:[#allocation28_spill] sm:$0xff] }
 0x5de   : > { %v3881_v9 = vpop.permute.xlu1 %3880 }
 0x5df   : > { %3945 = vst.msk [vmem:[#allocation4 + $0xf8] sm:$0xff] %vm1821_vm10, %v3881_v9 }
 0x5e0   : > { %v3879_v11 = vpop.permute.xlu0 %3878 }
 0x5e1   : > { %3944 = vst.msk [vmem:[#allocation4 + $0xf0] sm:$0xff] %vm1821_vm10, %v3879_v11 }
 0x5e2   : > { %v4073_v12 = vpop.permute.xlu1 %4072 }
 0x5e3   : > { %4137 = vst.msk [vmem:[#allocation4 + $0xf8] sm:$0xff] %vm2014_vm11, %v4073_v12 }
 0x5e4   : > { %v4071_v2 = vpop.permute.xlu0 %4070  ;;  %v4359_v35 = vld [vmem:[#allocation4 + $0xe8] sm:$0xff] }
 0x5e5   : > { %4136 = vst.msk [vmem:[#allocation4 + $0xf0] sm:$0xff] %vm2014_vm11, %v4071_v2  ;;  %v5089_v54 = vpop.f32.mrf.mxu1  ;;  %5115 = vmatmul.mubr.msk.f32.gmra.mxu1 %vm2284_vm13, %v4359_v35  ;;  %v8603_v2 = vld [vmem:[#allocation27_spill] sm:$0xff] }
 0x5e6   : > { %v4595_v19 = vadd.f32 %v5089_v54, %v8160_v23  ;;  %v4265_v17 = vpop.permute.xlu1 %4264 }
 0x5e7   : > { %v4589_v1 = vpop.f32.mrf.mxu1  ;;  %4329 = vst.msk [vmem:[#allocation4 + $0xf8] sm:$0xff] %vm2207_vm12, %v4265_v17 }
 0x5e8   : > { %v4709_v41 = vadd.f32 %v4595_v19, %v8592_v26  ;;  %v4590_v55 = vadd.f32 %v8160_v23, %v4589_v1  ;;  %v4263_v58 = vpop.permute.xlu0 %4262  ;;  %v8604_v26 = vld [vmem:[#allocation30_spill] sm:$0xff] }
 0x5e9   : > { %4328 = vst.msk [vmem:[#allocation4 + $0xf0] sm:$0xff] %vm2207_vm12, %v4263_v58 }
 0x5ea   : > { %v4741_v13 = vmax.f32 %v4709_v41, 0.0  ;;  %v4708_v20 = vadd.f32 %v4590_v55, %v8593_v34 }
 0x5ec   : > { %4773 = vst.msk [vmem:[%s8172_s17 + $0x58] sm:$0xff] %vm542_vm0, %v4741_v13  ;;  %v4740_v63 = vmax.f32 %v4708_v20, 0.0  ;;  %v8605_v13 = vld [vmem:[#allocation29_spill] sm:$0xff] }
 0x5ee   : > { %4772 = vst.msk [vmem:[%s8172_s17 + $0x50] sm:$0xff] %vm542_vm0, %v4740_v63  ;;  %v4361_v33 = vld [vmem:[#allocation4 + $0xf8] sm:$0xff] }
 0x5f0   : > { %v4360_v46 = vld [vmem:[#allocation4 + $0xf0] sm:$0xff] }
 0x5f1   : > { %5117 = vmatprep.mubr.msk.f32.mxu1 %vm2284_vm13, %v4360_v46 }
 0x5f2   : > { %5118 = vmatmul.mubr.msk.f32.gmra.mxu1 %vm2284_vm13, %v4361_v33 }
 0x5f9   : > { %v5092_v61 = vpop.f32.mrf.mxu1 }
 0x5fa   : > { %v4605_v30 = vadd.f32 %v5092_v61, %v8160_v23  ;;  %v8606_v61 = vld [vmem:[#allocation32_spill] sm:$0xff] }
 0x5fb   : > { %v4599_v43 = vpop.f32.mrf.mxu1 }
 0x5fc   : > { %v4711_v47 = vadd.f32 %v4605_v30, %v8594_v45  ;;  %v4600_v14 = vadd.f32 %v8160_v23, %v4599_v43 }
 0x5fe   : > { %v4743_v25 = vmax.f32 %v4711_v47, 0.0  ;;  %v4710_v57 = vadd.f32 %v4600_v14, %v8595_v32  ;;  %v8607_v47 = vld [vmem:[#allocation31_spill] sm:$0xff] }
 0x600   : > { %4775 = vst.msk [vmem:[%s8172_s17 + $0x68] sm:$0xff] %vm542_vm0, %v4743_v25  ;;  %v4742_v29 = vmax.f32 %v4710_v57, 0.0 }
 0x602   : > { %4774 = vst.msk [vmem:[%s8172_s17 + $0x60] sm:$0xff] %vm542_vm0, %v4742_v29 }
 0x60d   : > { %v5095_v59 = vpop.f32.mrf.mxu1 }
 0x60e   : > { %v4615_v27 = vadd.f32 %v5095_v59, %v8160_v23  ;;  %v8608_v59 = vld [vmem:[#allocation34_spill] sm:$0xff] }
 0x60f   : > { %v4609_v31 = vpop.f32.mrf.mxu1 }
 0x610   : > { %v4713_v36 = vadd.f32 %v4615_v27, %v8596_v62  ;;  %v4610_v44 = vadd.f32 %v8160_v23, %v4609_v31 }
 0x612   : > { %v4745_v40 = vmax.f32 %v4713_v36, 0.0  ;;  %v4712_v4 = vadd.f32 %v4610_v44, %v8597_v48  ;;  %v8609_v36 = vld [vmem:[#allocation33_spill] sm:$0xff] }
 0x614   : > { %4777 = vst.msk [vmem:[%s8172_s17 + $0x78] sm:$0xff] %vm542_vm0, %v4745_v40  ;;  %v4744_v15 = vmax.f32 %v4712_v4, 0.0 }
 0x616   : > { %4776 = vst.msk [vmem:[%s8172_s17 + $0x70] sm:$0xff] %vm542_vm0, %v4744_v15 }
 0x621   : > { %v5098_v18 = vpop.f32.mrf.mxu1 }
 0x622   : > { %v4625_v60 = vadd.f32 %v5098_v18, %v8160_v23  ;;  %v8610_v18 = vld [vmem:[#allocation36_spill] sm:$0xff] }
 0x623   : > { %v4619_v28 = vpop.f32.mrf.mxu1 }
 0x624   : > { %v4715_v56 = vadd.f32 %v4625_v60, %v8598_v22  ;;  %v4620_v52 = vadd.f32 %v8160_v23, %v4619_v28 }
 0x626   : > { %v4747_v53 = vmax.f32 %v4715_v56, 0.0  ;;  %v4714_v5 = vadd.f32 %v4620_v52, %v8599_v0  ;;  %v8611_v56 = vld [vmem:[#allocation35_spill] sm:$0xff] }
 0x628   : > { %4779 = vst.msk [vmem:[%s8172_s17 + $0x88] sm:$0xff] %vm542_vm0, %v4747_v53  ;;  %v4746_v10 = vmax.f32 %v4714_v5, 0.0 }
 0x62a   : > { %4778 = vst.msk [vmem:[%s8172_s17 + $0x80] sm:$0xff] %vm542_vm0, %v4746_v10 }
 0x635   : > { %v5101_v7 = vpop.f32.mrf.mxu1 }
 0x636   : > { %v4635_v6 = vadd.f32 %v5101_v7, %v8160_v23  ;;  %v8612_v7 = vld [vmem:[#allocation40_spill] sm:$0xff] }
 0x637   : > { %v4629_v51 = vpop.f32.mrf.mxu1 }
 0x638   : > { %v4717_v37 = vadd.f32 %v4635_v6, %v8600_v24  ;;  %v4630_v16 = vadd.f32 %v8160_v23, %v4629_v51 }
 0x63a   : > { %v4749_v8 = vmax.f32 %v4717_v37, 0.0  ;;  %v4716_v3 = vadd.f32 %v4630_v16, %v8601_v38  ;;  %v8613_v37 = vld [vmem:[#allocation38_spill] sm:$0xff] }
 0x63c   : > { %4781 = vst.msk [vmem:[%s8172_s17 + $0x98] sm:$0xff] %vm542_vm0, %v4749_v8  ;;  %v4748_v49 = vmax.f32 %v4716_v3, 0.0 }
 0x63e   : > { %4780 = vst.msk [vmem:[%s8172_s17 + $0x90] sm:$0xff] %vm542_vm0, %v4748_v49 }
 0x649   : > { %v5104_v39 = vpop.f32.mrf.mxu1 }
 0x64a   : > { %v4645_v50 = vadd.f32 %v5104_v39, %v8160_v23 }
 0x64b   : > { %v4639_v42 = vpop.f32.mrf.mxu1 }
 0x64c   : > { %v4719_v9 = vadd.f32 %v4645_v50, %v8602_v21  ;;  %v4640_v11 = vadd.f32 %v8160_v23, %v4639_v42 }
 0x64e   : > { %v4751_v12 = vmax.f32 %v4719_v9, 0.0  ;;  %v4718_v35 = vadd.f32 %v4640_v11, %v8603_v2 }
 0x650   : > { %4783 = vst.msk [vmem:[%s8172_s17 + $0xa8] sm:$0xff] %vm542_vm0, %v4751_v12  ;;  %v4750_v54 = vmax.f32 %v4718_v35, 0.0 }
 0x652   : > { %4782 = vst.msk [vmem:[%s8172_s17 + $0xa0] sm:$0xff] %vm542_vm0, %v4750_v54 }
 0x65d   : > { %v5107_v19 = vpop.f32.mrf.mxu1 }
 0x65e   : > { %v4655_v17 = vadd.f32 %v5107_v19, %v8160_v23 }
 0x65f   : > { %v4649_v1 = vpop.f32.mrf.mxu1 }
 0x660   : > { %v4721_v41 = vadd.f32 %v4655_v17, %v8604_v26  ;;  %v4650_v55 = vadd.f32 %v8160_v23, %v4649_v1 }
 0x662   : > { %v4753_v58 = vmax.f32 %v4721_v41, 0.0  ;;  %v4720_v34 = vadd.f32 %v4650_v55, %v8605_v13 }
 0x664   : > { %4785 = vst.msk [vmem:[%s8172_s17 + $0xb8] sm:$0xff] %vm542_vm0, %v4753_v58  ;;  %v4752_v20 = vmax.f32 %v4720_v34, 0.0 }
 0x666   : > { %4784 = vst.msk [vmem:[%s8172_s17 + $0xb0] sm:$0xff] %vm542_vm0, %v4752_v20 }
 0x675   : > { %v5110_v63 = vpop.f32.mrf.mxu1 }
 0x676   : > { %v4665_v33 = vadd.f32 %v5110_v63, %v8160_v23 }
 0x677   : > { %v4659_v46 = vpop.f32.mrf.mxu1 }
 0x678   : > { %v4723_v30 = vadd.f32 %v4665_v33, %v8606_v61  ;;  %v4660_v43 = vadd.f32 %v8160_v23, %v4659_v46 }
 0x67a   : > { %v4755_v45 = vmax.f32 %v4723_v30, 0.0  ;;  %v4722_v14 = vadd.f32 %v4660_v43, %v8607_v47 }
 0x67c   : > { %4787 = vst.msk [vmem:[%s8172_s17 + $0xc8] sm:$0xff] %vm542_vm0, %v4755_v45  ;;  %v4754_v25 = vmax.f32 %v4722_v14, 0.0 }
 0x67e   : > { %4786 = vst.msk [vmem:[%s8172_s17 + $0xc0] sm:$0xff] %vm542_vm0, %v4754_v25 }
 0x68d   : > { %v5113_v32 = vpop.f32.mrf.mxu1 }
 0x68e   : > { %v4675_v57 = vadd.f32 %v5113_v32, %v8160_v23 }
 0x68f   : > { %v4669_v29 = vpop.f32.mrf.mxu1 }
 0x690   : > { %v4725_v27 = vadd.f32 %v4675_v57, %v8608_v59  ;;  %v4670_v31 = vadd.f32 %v8160_v23, %v4669_v29 }
 0x692   : > { %v4757_v62 = vmax.f32 %v4725_v27, 0.0  ;;  %v4724_v44 = vadd.f32 %v4670_v31, %v8609_v36 }
 0x694   : > { %4789 = vst.msk [vmem:[%s8172_s17 + $0xd8] sm:$0xff] %vm542_vm0, %v4757_v62  ;;  %v4756_v40 = vmax.f32 %v4724_v44, 0.0 }
 0x696   : > { %4788 = vst.msk [vmem:[%s8172_s17 + $0xd0] sm:$0xff] %vm542_vm0, %v4756_v40 }
 0x6a5   : > { %v5116_v48 = vpop.f32.mrf.mxu1 }
 0x6a6   : > { %v4685_v4 = vadd.f32 %v5116_v48, %v8160_v23 }
 0x6a7   : > { %v4679_v15 = vpop.f32.mrf.mxu1 }
 0x6a8   : > { %v4727_v60 = vadd.f32 %v4685_v4, %v8610_v18  ;;  %v4680_v28 = vadd.f32 %v8160_v23, %v4679_v15 }
 0x6aa   : > { %v4759_v22 = vmax.f32 %v4727_v60, 0.0  ;;  %v4726_v52 = vadd.f32 %v4680_v28, %v8611_v56 }
 0x6ac   : > { %4791 = vst.msk [vmem:[%s8172_s17 + $0xe8] sm:$0xff] %vm542_vm0, %v4759_v22  ;;  %v4758_v53 = vmax.f32 %v4726_v52, 0.0 }
 0x6ae   : > { %4790 = vst.msk [vmem:[%s8172_s17 + $0xe0] sm:$0xff] %vm542_vm0, %v4758_v53 }
 0x6b2   : > { %v5119_v0 = vpop.f32.mrf.mxu1 }
 0x6b3   : > { %v4695_v5 = vadd.f32 %v5119_v0, %v8160_v23 }
 0x6b4   : > { %v4689_v10 = vpop.f32.mrf.mxu1 }
 0x6b5   : > { %v4729_v6 = vadd.f32 %v4695_v5, %v8612_v7  ;;  %v4690_v51 = vadd.f32 %v8160_v23, %v4689_v10 }
 0x6b7   : > { %v4761_v24 = vmax.f32 %v4729_v6, 0.0  ;;  %v4728_v16 = vadd.f32 %v4690_v51, %v8613_v37 }
 0x6b9   : > { %4793 = vst.msk [vmem:[%s8172_s17 + $0xf8] sm:$0xff] %vm542_vm0, %v4761_v24  ;;  %v4760_v8 = vmax.f32 %v4728_v16, 0.0 }
 0x6bb   : > { %4792 = vst.msk [vmem:[%s8172_s17 + $0xf0] sm:$0xff] %vm542_vm0, %v4760_v8 }
 0x6bc PF: > { %s19_s28 = sadd.s32 1, %s5401_s28  }
 0x6bd   : > { %p16_p4 = scmp.ge.s32.totalorder %s19_s28, 4  }
 0x6bf   :  { %18 = sbr.rel (!%p16_p4) target bundleno = 3 (0x3), region = 82 }

</bundles_post_ra>
